<compile_context>
chip_gen: v6e
topology: v6e:2x2x1
jax: 0.10.0
libtpu: 0.0.40
codegen_flags: <defaults>
</compile_context>

<pallas_src>
import functools

import numpy as np
import jax
import jax.numpy as jnp
from jax.experimental import pallas as pl
from jax.experimental.pallas import tpu as pltpu


# ---------------------------------------------------------------------------
# Fused LeNet kernel: one grid step == one image, everything stays in VMEM.
# ---------------------------------------------------------------------------
def _lenet_kernel(x_ref, m1_ref, b1_ref, sw1_ref, sh1_ref,
                  m2_ref, b2_ref, sw2_ref, sh2_ref,
                  wf1_ref, bf1_ref, wf2_ref, bf2_ref, wf3_ref, bf3_ref,
                  out_ref, p1_ref, p2_ref):
    f32 = jnp.float32
    bf16 = jnp.bfloat16

    # ---- conv1 + bias + ReLU: (32, 32*4) -> (28, 28*16) --------------------
    # Block-Toeplitz matmul per kernel row ki (in-kernel im2col).
    acc1 = jnp.zeros((28, 448), f32)
    for ki in range(5):
        xk = x_ref[0, ki:ki + 28, :]                          # (28, 128) bf16
        acc1 = acc1 + jnp.dot(xk, m1_ref[ki], preferred_element_type=f32)
    a1 = jnp.maximum(acc1 + b1_ref[...], 0.0)                 # (28, 448) f32

    # ---- pool1: 2x2/2 max -> (14, 14*16) via exact 0/1-selection matmuls ---
    yw = jnp.maximum(jnp.dot(a1, sw1_ref[0], preferred_element_type=f32),
                     jnp.dot(a1, sw1_ref[1], preferred_element_type=f32))
    p1_ref[...] = jnp.maximum(
        jnp.dot(sh1_ref[0], yw, preferred_element_type=f32),
        jnp.dot(sh1_ref[1], yw, preferred_element_type=f32))  # (14, 224)

    # ---- conv2 + bias + ReLU: (14, 14*16) -> (10, 10*32) -------------------
    acc2 = jnp.zeros((10, 320), f32)
    for ki in range(5):
        xk = p1_ref[ki:ki + 10, :].astype(bf16)               # (10, 224)
        acc2 = acc2 + jnp.dot(xk, m2_ref[ki], preferred_element_type=f32)
    a2 = jnp.maximum(acc2 + b2_ref[...], 0.0)                 # (10, 320)

    # ---- pool2 -> (5, 5*32) -------------------------------------------------
    yw2 = jnp.maximum(jnp.dot(a2, sw2_ref[0], preferred_element_type=f32),
                      jnp.dot(a2, sw2_ref[1], preferred_element_type=f32))
    p2_ref[...] = jnp.maximum(
        jnp.dot(sh2_ref[0], yw2, preferred_element_type=f32),
        jnp.dot(sh2_ref[1], yw2, preferred_element_type=f32))  # (5, 160)

    # ---- fc1 (+ReLU): PyTorch NCHW flatten is baked into wf1's row order ---
    h1 = jnp.zeros((1, 128), f32)
    for h in range(5):
        row = p2_ref[h:h + 1, :].astype(bf16)                 # (1, 160)
        h1 = h1 + jnp.dot(row, wf1_ref[h], preferred_element_type=f32)
    h1 = jnp.maximum(h1 + bf1_ref[...], 0.0)                  # (1, 128)

    # ---- fc2 (+ReLU), fc3 ----------------------------------------------------
    h2 = jnp.dot(h1.astype(bf16), wf2_ref[...], preferred_element_type=f32)
    h2 = jnp.maximum(h2 + bf2_ref[...], 0.0)
    h3 = jnp.dot(h2.astype(bf16), wf3_ref[...], preferred_element_type=f32)
    h3 = h3 + bf3_ref[...]                                    # (1, 128), lanes 10+ are 0

    # Lane-dense store (full (8,128) tile), wrapper keeps row 0, lanes :10.
    out_ref[...] = jnp.broadcast_to(h3, (1, 8, 128))


# ---------------------------------------------------------------------------
# One-time parameter repacking (PyTorch layouts -> MXU-friendly matrices).
# ---------------------------------------------------------------------------
def pack_params(params):
    P = {k: np.asarray(v, np.float32) for k, v in params.items()}

    def conv_toeplitz(w, win, cinp):
        # w: (Cout, Cin, KH, KW)  ->  m[ki]: (win*cinp, wout*Cout) with
        # m[ki, (wo+kj)*cinp + c, wo*Cout + o] = w[o, c, ki, kj]
        co, ci, kh, kw = w.shape
        wout = win - kw + 1
        m = np.zeros((kh, win * cinp, wout * co), np.float32)
        wo = np.arange(wout)
        for ki in range(kh):
            for kj in range(kw):
                rows = (wo[:, None] + kj) * cinp + np.arange(ci)[None, :]   # (wout, ci)
                cols = wo[:, None] * co + np.arange(co)[None, :]            # (wout, co)
                m[ki, rows[:, :, None], cols[:, None, :]] = w[:, :, ki, kj].T[None]
        return m

    def pool_w_sel(wd, c):
        # lane gather (wd*c -> (wd//2)*c): s[j, (2m+j)*c + cc, m*c + cc] = 1
        s = np.zeros((2, wd * c, (wd // 2) * c), np.float32)
        m = np.arange(wd // 2)[:, None]
        cc = np.arange(c)[None, :]
        for j in (0, 1):
            s[j, (2 * m + j) * c + cc, m * c + cc] = 1.0
        return s

    def pool_h_sel(hd):
        s = np.zeros((2, hd // 2, hd), np.float32)
        idx = np.arange(hd // 2)
        s[0, idx, 2 * idx] = 1.0
        s[1, idx, 2 * idx + 1] = 1.0
        return s

    # fc1: PyTorch flattens NCHW (row index c*25 + h*5 + w); the kernel's
    # pooled activation is laid out (h, w*32 + c).  Permute + pad once here.
    wf1 = P["fc1_w"].T.reshape(32, 5, 5, 120)          # (c, h, w, o)
    wf1 = wf1.transpose(1, 2, 0, 3).reshape(5, 160, 120)
    wf1 = np.pad(wf1, ((0, 0), (0, 0), (0, 8)))        # out lanes 120 -> 128

    def pad2(a, rows, cols):
        out = np.zeros((rows, cols), np.float32)
        out[:a.shape[0], :a.shape[1]] = a
        return out

    def padrow(b, n):
        out = np.zeros((1, n), np.float32)
        out[0, :b.shape[0]] = b
        return out

    return dict(
        m1=jnp.asarray(conv_toeplitz(P["conv1_w"], 32, 4), jnp.bfloat16),   # (5,128,448)
        b1=jnp.asarray(np.tile(P["conv1_b"], 28)[None, :]),                 # (1,448)
        sw1=jnp.asarray(pool_w_sel(28, 16)),                                 # (2,448,224)
        sh1=jnp.asarray(pool_h_sel(28)),                                     # (2,14,28)
        m2=jnp.asarray(conv_toeplitz(P["conv2_w"], 14, 16), jnp.bfloat16),  # (5,224,320)
        b2=jnp.asarray(np.tile(P["conv2_b"], 10)[None, :]),                  # (1,320)
        sw2=jnp.asarray(pool_w_sel(10, 32)),                                 # (2,320,160)
        sh2=jnp.asarray(pool_h_sel(10)),                                     # (2,5,10)
        wf1=jnp.asarray(wf1, jnp.bfloat16),                                  # (5,160,128)
        bf1=jnp.asarray(padrow(P["fc1_b"], 128)),
        wf2=jnp.asarray(pad2(P["fc2_w"].T, 128, 128), jnp.bfloat16),
        bf2=jnp.asarray(padrow(P["fc2_b"], 128)),
        wf3=jnp.asarray(pad2(P["fc3_w"].T, 128, 128), jnp.bfloat16),
        bf3=jnp.asarray(padrow(P["fc3_b"], 128)),
    )


_OPERAND_ORDER = ("m1", "b1", "sw1", "sh1", "m2", "b2", "sw2", "sh2",
                  "wf1", "bf1", "wf2", "bf2", "wf3", "bf3")


@jax.jit
def lenet_forward(packed, x_nchw):
    B = x_nchw.shape[0]
    # NCHW -> NHWC, pad channels 3 -> 4, pack (W, C) into a 128-wide lane dim.
    x = jnp.transpose(x_nchw, (0, 2, 3, 1)).astype(jnp.float32)
    x = jnp.pad(x, ((0, 0), (0, 0), (0, 0), (0, 1)))
    x = x.reshape(B, 32, 128).astype(jnp.bfloat16)

    weights = [packed[k] for k in _OPERAND_ORDER]

    def _const_map(ndim):
        return lambda b, _n=ndim: (0,) * _n

    in_specs = [pl.BlockSpec((1, 32, 128), lambda b: (b, 0, 0))]
    in_specs += [pl.BlockSpec(w.shape, _const_map(w.ndim)) for w in weights]

    flops = 2 * B * (5 * 28 * 128 * 448 + 5 * 10 * 224 * 320        # convs
                     + 2 * 28 * 448 * 224 + 2 * 14 * 28 * 224       # pool1
                     + 2 * 10 * 320 * 160 + 2 * 5 * 10 * 160        # pool2
                     + 5 * 160 * 128 + 2 * 128 * 128)               # fcs
    bytes_accessed = int(sum(int(w.size) * w.dtype.itemsize for w in weights)
                         + int(x.size) * 2 + B * 8 * 128 * 4)

    out = pl.pallas_call(
        _lenet_kernel,
        out_shape=jax.ShapeDtypeStruct((B, 8, 128), jnp.float32),
        grid=(B,),
        in_specs=in_specs,
        out_specs=pl.BlockSpec((1, 8, 128), lambda b: (b, 0, 0)),
        scratch_shapes=[pltpu.VMEM((14, 224), jnp.float32),   # pool1 output
                        pltpu.VMEM((5, 160), jnp.float32)],   # pool2 output
        compiler_params=pltpu.CompilerParams(
            dimension_semantics=("parallel",)),
        cost_estimate=pl.CostEstimate(flops=int(flops), transcendentals=0,
                                      bytes_accessed=bytes_accessed),
    )(x, *weights)
    return out[:, 0, :10]


# ---------------------------------------------------------------------------
# Parameters (PyTorch layouts) + pure-JAX f32 reference for verification.
# ---------------------------------------------------------------------------
def init_params(key):
    ks = jax.random.split(key, 10)

    def u(k, shape, fan_in):
        bound = 1.0 / np.sqrt(fan_in)
        return jax.random.uniform(k, shape, jnp.float32, -bound, bound)

    return dict(
        conv1_w=u(ks[0], (16, 3, 5, 5), 3 * 5 * 5),
        conv1_b=u(ks[1], (16,), 3 * 5 * 5),
        conv2_w=u(ks[2], (32, 16, 5, 5), 16 * 5 * 5),
        conv2_b=u(ks[3], (32,), 16 * 5 * 5),
        fc1_w=u(ks[4], (120, 800), 800),
        fc1_b=u(ks[5], (120,), 800),
        fc2_w=u(ks[6], (84, 120), 120),
        fc2_b=u(ks[7], (84,), 120),
        fc3_w=u(ks[8], (10, 84), 84),
        fc3_b=u(ks[9], (10,), 84),
    )


def lenet_reference(params, x_nchw):
    def conv(x, w, b):
        y = jax.lax.conv_general_dilated(
            x, w, window_strides=(1, 1), padding="VALID",
            dimension_numbers=("NCHW", "OIHW", "NCHW"))
        return jax.nn.relu(y + b[None, :, None, None])

    def pool(x):
        b, c, h, w = x.shape
        return x.reshape(b, c, h // 2, 2, w // 2, 2).max(axis=(3, 5))

    x = pool(conv(x_nchw.astype(jnp.float32), params["conv1_w"], params["conv1_b"]))
    x = pool(conv(x, params["conv2_w"], params["conv2_b"]))
    x = x.reshape(x.shape[0], -1)                     # NCHW flatten == torch .view
    x = jax.nn.relu(x @ params["fc1_w"].T + params["fc1_b"])
    x = jax.nn.relu(x @ params["fc2_w"].T + params["fc2_b"])
    return x @ params["fc3_w"].T + params["fc3_b"]


if __name__ == "__main__":
    key = jax.random.PRNGKey(0)
    k_param, k_input = jax.random.split(key)
    params = init_params(k_param)
    packed = pack_params(params)
    # fc1 = Linear(32*5*5, 120) implies a 3x32x32 input.
    x = jax.random.normal(k_input, (2, 3, 32, 32), dtype=jnp.float32)

    out = jax.block_until_ready(lenet_forward(packed, x))
    assert out.shape == (2, 10) and out.dtype == jnp.float32, (out.shape, out.dtype)

    ref = jax.block_until_ready(lenet_reference(params, x))
    scale = float(jnp.max(jnp.abs(ref)))
    err = float(jnp.max(jnp.abs(out - ref)))
    # bf16 MXU operands with f32 accumulation -> allow a small relative error.
    assert err <= 0.1 * scale + 1e-3, f"mismatch: max|diff|={err}, max|ref|={scale}"
    print("KERNEL_OK")
</pallas_src>

<mosaic_0001>
module attributes {stable_mosaic.version = 11 : i64} {
  func.func @_lenet_kernel(%arg0: i32, %arg1: memref<1x32x128xbf16, #tpu.memory_space<vmem>>, %arg2: memref<5x128x448xbf16, #tpu.memory_space<vmem>>, %arg3: memref<1x448xf32, #tpu.memory_space<vmem>>, %arg4: memref<2x448x224xf32, #tpu.memory_space<vmem>>, %arg5: memref<2x14x28xf32, #tpu.memory_space<vmem>>, %arg6: memref<5x224x320xbf16, #tpu.memory_space<vmem>>, %arg7: memref<1x320xf32, #tpu.memory_space<vmem>>, %arg8: memref<2x320x160xf32, #tpu.memory_space<vmem>>, %arg9: memref<2x5x10xf32, #tpu.memory_space<vmem>>, %arg10: memref<5x160x128xbf16, #tpu.memory_space<vmem>>, %arg11: memref<1x128xf32, #tpu.memory_space<vmem>>, %arg12: memref<128x128xbf16, #tpu.memory_space<vmem>>, %arg13: memref<1x128xf32, #tpu.memory_space<vmem>>, %arg14: memref<128x128xbf16, #tpu.memory_space<vmem>>, %arg15: memref<1x128xf32, #tpu.memory_space<vmem>>, %arg16: memref<1x8x128xf32, #tpu.memory_space<vmem>>, %arg17: memref<14x224xf32, #tpu.memory_space<vmem>>, %arg18: memref<5x160xf32, #tpu.memory_space<vmem>>) attributes {dimension_semantics = [#tpu.dimension_semantics<parallel>], iteration_bounds = array<i64: 2>, scalar_prefetch = 0 : i64, scratch_operands = 2 : i64, tpu.core_type = #tpu.core_type<tc>, window_params = [{transform_indices = @transform_0, window_bounds = array<i64: 1, 32, 128>}, {pipeline_mode = #tpu.pipeline_mode<synchronous>, transform_indices = @transform_1, window_bounds = array<i64: 5, 128, 448>}, {pipeline_mode = #tpu.pipeline_mode<synchronous>, transform_indices = @transform_2, window_bounds = array<i64: 1, 448>}, {pipeline_mode = #tpu.pipeline_mode<synchronous>, transform_indices = @transform_3, window_bounds = array<i64: 2, 448, 224>}, {pipeline_mode = #tpu.pipeline_mode<synchronous>, transform_indices = @transform_4, window_bounds = array<i64: 2, 14, 28>}, {pipeline_mode = #tpu.pipeline_mode<synchronous>, transform_indices = @transform_5, window_bounds = array<i64: 5, 224, 320>}, {pipeline_mode = #tpu.pipeline_mode<synchronous>, transform_indices = @transform_6, window_bounds = array<i64: 1, 320>}, {pipeline_mode = #tpu.pipeline_mode<synchronous>, transform_indices = @transform_7, window_bounds = array<i64: 2, 320, 160>}, {pipeline_mode = #tpu.pipeline_mode<synchronous>, transform_indices = @transform_8, window_bounds = array<i64: 2, 5, 10>}, {pipeline_mode = #tpu.pipeline_mode<synchronous>, transform_indices = @transform_9, window_bounds = array<i64: 5, 160, 128>}, {pipeline_mode = #tpu.pipeline_mode<synchronous>, transform_indices = @transform_10, window_bounds = array<i64: 1, 128>}, {pipeline_mode = #tpu.pipeline_mode<synchronous>, transform_indices = @transform_11, window_bounds = array<i64: 128, 128>}, {pipeline_mode = #tpu.pipeline_mode<synchronous>, transform_indices = @transform_12, window_bounds = array<i64: 1, 128>}, {pipeline_mode = #tpu.pipeline_mode<synchronous>, transform_indices = @transform_13, window_bounds = array<i64: 128, 128>}, {pipeline_mode = #tpu.pipeline_mode<synchronous>, transform_indices = @transform_14, window_bounds = array<i64: 1, 128>}, {transform_indices = @transform_15, window_bounds = array<i64: 1, 8, 128>}]} {
    %cst = arith.constant 0.000000e+00 : f32
    %0 = vector.broadcast %cst : f32 to vector<28x448xf32>
    %c0 = arith.constant 0 : index
    %c0_0 = arith.constant 0 : index
    %c0_1 = arith.constant 0 : index
    %1 = vector.load %arg1[%c0, %c0_0, %c0_1] : memref<1x32x128xbf16, #tpu.memory_space<vmem>>, vector<1x28x128xbf16>
    %2 = vector.shape_cast %1 : vector<1x28x128xbf16> to vector<28x128xbf16>
    %c0_2 = arith.constant 0 : index
    %c0_3 = arith.constant 0 : index
    %c0_4 = arith.constant 0 : index
    %3 = vector.load %arg2[%c0_2, %c0_3, %c0_4] : memref<5x128x448xbf16, #tpu.memory_space<vmem>>, vector<1x128x448xbf16>
    %4 = vector.shape_cast %3 : vector<1x128x448xbf16> to vector<128x448xbf16>
    %cst_5 = arith.constant dense<0.000000e+00> : vector<28x448xf32>
    %5 = tpu.matmul %2, %4, %cst_5 {dimension_numbers = #tpu.dot_dimension_numbers<[1], [0], [0], [1], [0, 0, 1, 1], [], []>} : vector<28x128xbf16>, vector<128x448xbf16>, vector<28x448xf32> -> vector<28x448xf32>
    %6 = arith.addf %0, %5 : vector<28x448xf32>
    %c0_6 = arith.constant 0 : index
    %c1 = arith.constant 1 : index
    %c0_7 = arith.constant 0 : index
    %7 = vector.load %arg1[%c0_6, %c1, %c0_7] : memref<1x32x128xbf16, #tpu.memory_space<vmem>>, vector<1x28x128xbf16>
    %8 = vector.shape_cast %7 : vector<1x28x128xbf16> to vector<28x128xbf16>
    %c1_8 = arith.constant 1 : index
    %c0_9 = arith.constant 0 : index
    %c0_10 = arith.constant 0 : index
    %9 = vector.load %arg2[%c1_8, %c0_9, %c0_10] : memref<5x128x448xbf16, #tpu.memory_space<vmem>>, vector<1x128x448xbf16>
    %10 = vector.shape_cast %9 : vector<1x128x448xbf16> to vector<128x448xbf16>
    %cst_11 = arith.constant dense<0.000000e+00> : vector<28x448xf32>
    %11 = tpu.matmul %8, %10, %cst_11 {dimension_numbers = #tpu.dot_dimension_numbers<[1], [0], [0], [1], [0, 0, 1, 1], [], []>} : vector<28x128xbf16>, vector<128x448xbf16>, vector<28x448xf32> -> vector<28x448xf32>
    %12 = arith.addf %6, %11 : vector<28x448xf32>
    %c0_12 = arith.constant 0 : index
    %c2 = arith.constant 2 : index
    %c0_13 = arith.constant 0 : index
    %13 = vector.load %arg1[%c0_12, %c2, %c0_13] : memref<1x32x128xbf16, #tpu.memory_space<vmem>>, vector<1x28x128xbf16>
    %14 = vector.shape_cast %13 : vector<1x28x128xbf16> to vector<28x128xbf16>
    %c2_14 = arith.constant 2 : index
    %c0_15 = arith.constant 0 : index
    %c0_16 = arith.constant 0 : index
    %15 = vector.load %arg2[%c2_14, %c0_15, %c0_16] : memref<5x128x448xbf16, #tpu.memory_space<vmem>>, vector<1x128x448xbf16>
    %16 = vector.shape_cast %15 : vector<1x128x448xbf16> to vector<128x448xbf16>
    %cst_17 = arith.constant dense<0.000000e+00> : vector<28x448xf32>
    %17 = tpu.matmul %14, %16, %cst_17 {dimension_numbers = #tpu.dot_dimension_numbers<[1], [0], [0], [1], [0, 0, 1, 1], [], []>} : vector<28x128xbf16>, vector<128x448xbf16>, vector<28x448xf32> -> vector<28x448xf32>
    %18 = arith.addf %12, %17 : vector<28x448xf32>
    %c0_18 = arith.constant 0 : index
    %c3 = arith.constant 3 : index
    %c0_19 = arith.constant 0 : index
    %19 = vector.load %arg1[%c0_18, %c3, %c0_19] : memref<1x32x128xbf16, #tpu.memory_space<vmem>>, vector<1x28x128xbf16>
    %20 = vector.shape_cast %19 : vector<1x28x128xbf16> to vector<28x128xbf16>
    %c3_20 = arith.constant 3 : index
    %c0_21 = arith.constant 0 : index
    %c0_22 = arith.constant 0 : index
    %21 = vector.load %arg2[%c3_20, %c0_21, %c0_22] : memref<5x128x448xbf16, #tpu.memory_space<vmem>>, vector<1x128x448xbf16>
    %22 = vector.shape_cast %21 : vector<1x128x448xbf16> to vector<128x448xbf16>
    %cst_23 = arith.constant dense<0.000000e+00> : vector<28x448xf32>
    %23 = tpu.matmul %20, %22, %cst_23 {dimension_numbers = #tpu.dot_dimension_numbers<[1], [0], [0], [1], [0, 0, 1, 1], [], []>} : vector<28x128xbf16>, vector<128x448xbf16>, vector<28x448xf32> -> vector<28x448xf32>
    %24 = arith.addf %18, %23 : vector<28x448xf32>
    %c0_24 = arith.constant 0 : index
    %c4 = arith.constant 4 : index
    %c0_25 = arith.constant 0 : index
    %25 = vector.load %arg1[%c0_24, %c4, %c0_25] : memref<1x32x128xbf16, #tpu.memory_space<vmem>>, vector<1x28x128xbf16>
    %26 = vector.shape_cast %25 : vector<1x28x128xbf16> to vector<28x128xbf16>
    %c4_26 = arith.constant 4 : index
    %c0_27 = arith.constant 0 : index
    %c0_28 = arith.constant 0 : index
    %27 = vector.load %arg2[%c4_26, %c0_27, %c0_28] : memref<5x128x448xbf16, #tpu.memory_space<vmem>>, vector<1x128x448xbf16>
    %28 = vector.shape_cast %27 : vector<1x128x448xbf16> to vector<128x448xbf16>
    %cst_29 = arith.constant dense<0.000000e+00> : vector<28x448xf32>
    %29 = tpu.matmul %26, %28, %cst_29 {dimension_numbers = #tpu.dot_dimension_numbers<[1], [0], [0], [1], [0, 0, 1, 1], [], []>} : vector<28x128xbf16>, vector<128x448xbf16>, vector<28x448xf32> -> vector<28x448xf32>
    %30 = arith.addf %24, %29 : vector<28x448xf32>
    %c0_30 = arith.constant 0 : index
    %c0_31 = arith.constant 0 : index
    %31 = vector.load %arg3[%c0_30, %c0_31] : memref<1x448xf32, #tpu.memory_space<vmem>>, vector<1x448xf32>
    %32 = vector.broadcast %31 : vector<1x448xf32> to vector<28x448xf32>
    %33 = arith.addf %30, %32 : vector<28x448xf32>
    %cst_32 = arith.constant 0.000000e+00 : f32
    %34 = vector.broadcast %cst_32 : f32 to vector<28x448xf32>
    %35 = arith.maximumf %33, %34 : vector<28x448xf32>
    %c0_33 = arith.constant 0 : index
    %c0_34 = arith.constant 0 : index
    %c0_35 = arith.constant 0 : index
    %36 = vector.load %arg4[%c0_33, %c0_34, %c0_35] : memref<2x448x224xf32, #tpu.memory_space<vmem>>, vector<1x448x224xf32>
    %37 = vector.shape_cast %36 : vector<1x448x224xf32> to vector<448x224xf32>
    %cst_36 = arith.constant dense<0.000000e+00> : vector<28x224xf32>
    %38 = tpu.matmul %35, %37, %cst_36 {dimension_numbers = #tpu.dot_dimension_numbers<[1], [0], [0], [1], [0, 0, 1, 1], [], []>} : vector<28x448xf32>, vector<448x224xf32>, vector<28x224xf32> -> vector<28x224xf32>
    %c1_37 = arith.constant 1 : index
    %c0_38 = arith.constant 0 : index
    %c0_39 = arith.constant 0 : index
    %39 = vector.load %arg4[%c1_37, %c0_38, %c0_39] : memref<2x448x224xf32, #tpu.memory_space<vmem>>, vector<1x448x224xf32>
    %40 = vector.shape_cast %39 : vector<1x448x224xf32> to vector<448x224xf32>
    %cst_40 = arith.constant dense<0.000000e+00> : vector<28x224xf32>
    %41 = tpu.matmul %35, %40, %cst_40 {dimension_numbers = #tpu.dot_dimension_numbers<[1], [0], [0], [1], [0, 0, 1, 1], [], []>} : vector<28x448xf32>, vector<448x224xf32>, vector<28x224xf32> -> vector<28x224xf32>
    %42 = arith.maximumf %38, %41 : vector<28x224xf32>
    %c0_41 = arith.constant 0 : index
    %c0_42 = arith.constant 0 : index
    %c0_43 = arith.constant 0 : index
    %43 = vector.load %arg5[%c0_41, %c0_42, %c0_43] : memref<2x14x28xf32, #tpu.memory_space<vmem>>, vector<1x14x28xf32>
    %44 = vector.shape_cast %43 : vector<1x14x28xf32> to vector<14x28xf32>
    %cst_44 = arith.constant dense<0.000000e+00> : vector<14x224xf32>
    %45 = tpu.matmul %44, %42, %cst_44 {dimension_numbers = #tpu.dot_dimension_numbers<[1], [0], [0], [1], [0, 0, 1, 1], [], []>} : vector<14x28xf32>, vector<28x224xf32>, vector<14x224xf32> -> vector<14x224xf32>
    %c1_45 = arith.constant 1 : index
    %c0_46 = arith.constant 0 : index
    %c0_47 = arith.constant 0 : index
    %46 = vector.load %arg5[%c1_45, %c0_46, %c0_47] : memref<2x14x28xf32, #tpu.memory_space<vmem>>, vector<1x14x28xf32>
    %47 = vector.shape_cast %46 : vector<1x14x28xf32> to vector<14x28xf32>
    %cst_48 = arith.constant dense<0.000000e+00> : vector<14x224xf32>
    %48 = tpu.matmul %47, %42, %cst_48 {dimension_numbers = #tpu.dot_dimension_numbers<[1], [0], [0], [1], [0, 0, 1, 1], [], []>} : vector<14x28xf32>, vector<28x224xf32>, vector<14x224xf32> -> vector<14x224xf32>
    %49 = arith.maximumf %45, %48 : vector<14x224xf32>
    %c0_49 = arith.constant 0 : index
    %c0_50 = arith.constant 0 : index
    %50 = vector.load %arg17[%c0_49, %c0_50] : memref<14x224xf32, #tpu.memory_space<vmem>>, vector<14x224xf32>
    tpu.vector_store %arg17[%c0_49, %c0_50], %49 {strides = array<i32>} : memref<14x224xf32, #tpu.memory_space<vmem>>, vector<14x224xf32>,
    %cst_51 = arith.constant 0.000000e+00 : f32
    %51 = vector.broadcast %cst_51 : f32 to vector<10x320xf32>
    %c0_52 = arith.constant 0 : index
    %c0_53 = arith.constant 0 : index
    %52 = vector.load %arg17[%c0_52, %c0_53] : memref<14x224xf32, #tpu.memory_space<vmem>>, vector<10x224xf32>
    %53 = arith.truncf %52 : vector<10x224xf32> to vector<10x224xbf16>
    %c0_54 = arith.constant 0 : index
    %c0_55 = arith.constant 0 : index
    %c0_56 = arith.constant 0 : index
    %54 = vector.load %arg6[%c0_54, %c0_55, %c0_56] : memref<5x224x320xbf16, #tpu.memory_space<vmem>>, vector<1x224x320xbf16>
    %55 = vector.shape_cast %54 : vector<1x224x320xbf16> to vector<224x320xbf16>
    %cst_57 = arith.constant dense<0.000000e+00> : vector<10x320xf32>
    %56 = tpu.matmul %53, %55, %cst_57 {dimension_numbers = #tpu.dot_dimension_numbers<[1], [0], [0], [1], [0, 0, 1, 1], [], []>} : vector<10x224xbf16>, vector<224x320xbf16>, vector<10x320xf32> -> vector<10x320xf32>
    %57 = arith.addf %51, %56 : vector<10x320xf32>
    %c1_58 = arith.constant 1 : index
    %c0_59 = arith.constant 0 : index
    %58 = vector.load %arg17[%c1_58, %c0_59] : memref<14x224xf32, #tpu.memory_space<vmem>>, vector<10x224xf32>
    %59 = arith.truncf %58 : vector<10x224xf32> to vector<10x224xbf16>
    %c1_60 = arith.constant 1 : index
    %c0_61 = arith.constant 0 : index
    %c0_62 = arith.constant 0 : index
    %60 = vector.load %arg6[%c1_60, %c0_61, %c0_62] : memref<5x224x320xbf16, #tpu.memory_space<vmem>>, vector<1x224x320xbf16>
    %61 = vector.shape_cast %60 : vector<1x224x320xbf16> to vector<224x320xbf16>
    %cst_63 = arith.constant dense<0.000000e+00> : vector<10x320xf32>
    %62 = tpu.matmul %59, %61, %cst_63 {dimension_numbers = #tpu.dot_dimension_numbers<[1], [0], [0], [1], [0, 0, 1, 1], [], []>} : vector<10x224xbf16>, vector<224x320xbf16>, vector<10x320xf32> -> vector<10x320xf32>
    %63 = arith.addf %57, %62 : vector<10x320xf32>
    %c2_64 = arith.constant 2 : index
    %c0_65 = arith.constant 0 : index
    %64 = vector.load %arg17[%c2_64, %c0_65] : memref<14x224xf32, #tpu.memory_space<vmem>>, vector<10x224xf32>
    %65 = arith.truncf %64 : vector<10x224xf32> to vector<10x224xbf16>
    %c2_66 = arith.constant 2 : index
    %c0_67 = arith.constant 0 : index
    %c0_68 = arith.constant 0 : index
    %66 = vector.load %arg6[%c2_66, %c0_67, %c0_68] : memref<5x224x320xbf16, #tpu.memory_space<vmem>>, vector<1x224x320xbf16>
    %67 = vector.shape_cast %66 : vector<1x224x320xbf16> to vector<224x320xbf16>
    %cst_69 = arith.constant dense<0.000000e+00> : vector<10x320xf32>
    %68 = tpu.matmul %65, %67, %cst_69 {dimension_numbers = #tpu.dot_dimension_numbers<[1], [0], [0], [1], [0, 0, 1, 1], [], []>} : vector<10x224xbf16>, vector<224x320xbf16>, vector<10x320xf32> -> vector<10x320xf32>
    %69 = arith.addf %63, %68 : vector<10x320xf32>
    %c3_70 = arith.constant 3 : index
    %c0_71 = arith.constant 0 : index
    %70 = vector.load %arg17[%c3_70, %c0_71] : memref<14x224xf32, #tpu.memory_space<vmem>>, vector<10x224xf32>
    %71 = arith.truncf %70 : vector<10x224xf32> to vector<10x224xbf16>
    %c3_72 = arith.constant 3 : index
    %c0_73 = arith.constant 0 : index
    %c0_74 = arith.constant 0 : index
    %72 = vector.load %arg6[%c3_72, %c0_73, %c0_74] : memref<5x224x320xbf16, #tpu.memory_space<vmem>>, vector<1x224x320xbf16>
    %73 = vector.shape_cast %72 : vector<1x224x320xbf16> to vector<224x320xbf16>
    %cst_75 = arith.constant dense<0.000000e+00> : vector<10x320xf32>
    %74 = tpu.matmul %71, %73, %cst_75 {dimension_numbers = #tpu.dot_dimension_numbers<[1], [0], [0], [1], [0, 0, 1, 1], [], []>} : vector<10x224xbf16>, vector<224x320xbf16>, vector<10x320xf32> -> vector<10x320xf32>
    %75 = arith.addf %69, %74 : vector<10x320xf32>
    %c4_76 = arith.constant 4 : index
    %c0_77 = arith.constant 0 : index
    %76 = vector.load %arg17[%c4_76, %c0_77] : memref<14x224xf32, #tpu.memory_space<vmem>>, vector<10x224xf32>
    %77 = arith.truncf %76 : vector<10x224xf32> to vector<10x224xbf16>
    %c4_78 = arith.constant 4 : index
    %c0_79 = arith.constant 0 : index
    %c0_80 = arith.constant 0 : index
    %78 = vector.load %arg6[%c4_78, %c0_79, %c0_80] : memref<5x224x320xbf16, #tpu.memory_space<vmem>>, vector<1x224x320xbf16>
    %79 = vector.shape_cast %78 : vector<1x224x320xbf16> to vector<224x320xbf16>
    %cst_81 = arith.constant dense<0.000000e+00> : vector<10x320xf32>
    %80 = tpu.matmul %77, %79, %cst_81 {dimension_numbers = #tpu.dot_dimension_numbers<[1], [0], [0], [1], [0, 0, 1, 1], [], []>} : vector<10x224xbf16>, vector<224x320xbf16>, vector<10x320xf32> -> vector<10x320xf32>
    %81 = arith.addf %75, %80 : vector<10x320xf32>
    %c0_82 = arith.constant 0 : index
    %c0_83 = arith.constant 0 : index
    %82 = vector.load %arg7[%c0_82, %c0_83] : memref<1x320xf32, #tpu.memory_space<vmem>>, vector<1x320xf32>
    %83 = vector.broadcast %82 : vector<1x320xf32> to vector<10x320xf32>
    %84 = arith.addf %81, %83 : vector<10x320xf32>
    %cst_84 = arith.constant 0.000000e+00 : f32
    %85 = vector.broadcast %cst_84 : f32 to vector<10x320xf32>
    %86 = arith.maximumf %84, %85 : vector<10x320xf32>
    %c0_85 = arith.constant 0 : index
    %c0_86 = arith.constant 0 : index
    %c0_87 = arith.constant 0 : index
    %87 = vector.load %arg8[%c0_85, %c0_86, %c0_87] : memref<2x320x160xf32, #tpu.memory_space<vmem>>, vector<1x320x160xf32>
    %88 = vector.shape_cast %87 : vector<1x320x160xf32> to vector<320x160xf32>
    %cst_88 = arith.constant dense<0.000000e+00> : vector<10x160xf32>
    %89 = tpu.matmul %86, %88, %cst_88 {dimension_numbers = #tpu.dot_dimension_numbers<[1], [0], [0], [1], [0, 0, 1, 1], [], []>} : vector<10x320xf32>, vector<320x160xf32>, vector<10x160xf32> -> vector<10x160xf32>
    %c1_89 = arith.constant 1 : index
    %c0_90 = arith.constant 0 : index
    %c0_91 = arith.constant 0 : index
    %90 = vector.load %arg8[%c1_89, %c0_90, %c0_91] : memref<2x320x160xf32, #tpu.memory_space<vmem>>, vector<1x320x160xf32>
    %91 = vector.shape_cast %90 : vector<1x320x160xf32> to vector<320x160xf32>
    %cst_92 = arith.constant dense<0.000000e+00> : vector<10x160xf32>
    %92 = tpu.matmul %86, %91, %cst_92 {dimension_numbers = #tpu.dot_dimension_numbers<[1], [0], [0], [1], [0, 0, 1, 1], [], []>} : vector<10x320xf32>, vector<320x160xf32>, vector<10x160xf32> -> vector<10x160xf32>
    %93 = arith.maximumf %89, %92 : vector<10x160xf32>
    %c0_93 = arith.constant 0 : index
    %c0_94 = arith.constant 0 : index
    %c0_95 = arith.constant 0 : index
    %94 = vector.load %arg9[%c0_93, %c0_94, %c0_95] : memref<2x5x10xf32, #tpu.memory_space<vmem>>, vector<1x5x10xf32>
    %95 = vector.shape_cast %94 : vector<1x5x10xf32> to vector<5x10xf32>
    %cst_96 = arith.constant dense<0.000000e+00> : vector<5x160xf32>
    %96 = tpu.matmul %95, %93, %cst_96 {dimension_numbers = #tpu.dot_dimension_numbers<[1], [0], [0], [1], [0, 0, 1, 1], [], []>} : vector<5x10xf32>, vector<10x160xf32>, vector<5x160xf32> -> vector<5x160xf32>
    %c1_97 = arith.constant 1 : index
    %c0_98 = arith.constant 0 : index
    %c0_99 = arith.constant 0 : index
    %97 = vector.load %arg9[%c1_97, %c0_98, %c0_99] : memref<2x5x10xf32, #tpu.memory_space<vmem>>, vector<1x5x10xf32>
    %98 = vector.shape_cast %97 : vector<1x5x10xf32> to vector<5x10xf32>
    %cst_100 = arith.constant dense<0.000000e+00> : vector<5x160xf32>
    %99 = tpu.matmul %98, %93, %cst_100 {dimension_numbers = #tpu.dot_dimension_numbers<[1], [0], [0], [1], [0, 0, 1, 1], [], []>} : vector<5x10xf32>, vector<10x160xf32>, vector<5x160xf32> -> vector<5x160xf32>
    %100 = arith.maximumf %96, %99 : vector<5x160xf32>
    %c0_101 = arith.constant 0 : index
    %c0_102 = arith.constant 0 : index
    %101 = vector.load %arg18[%c0_101, %c0_102] : memref<5x160xf32, #tpu.memory_space<vmem>>, vector<5x160xf32>
    tpu.vector_store %arg18[%c0_101, %c0_102], %100 {strides = array<i32>} : memref<5x160xf32, #tpu.memory_space<vmem>>, vector<5x160xf32>,
    %cst_103 = arith.constant 0.000000e+00 : f32
    %102 = vector.broadcast %cst_103 : f32 to vector<1x128xf32>
    %c0_104 = arith.constant 0 : index
    %c0_105 = arith.constant 0 : index
    %103 = vector.load %arg18[%c0_104, %c0_105] : memref<5x160xf32, #tpu.memory_space<vmem>>, vector<1x160xf32>
    %104 = arith.truncf %103 : vector<1x160xf32> to vector<1x160xbf16>
    %c0_106 = arith.constant 0 : index
    %c0_107 = arith.constant 0 : index
    %c0_108 = arith.constant 0 : index
    %105 = vector.load %arg10[%c0_106, %c0_107, %c0_108] : memref<5x160x128xbf16, #tpu.memory_space<vmem>>, vector<1x160x128xbf16>
    %106 = vector.shape_cast %105 : vector<1x160x128xbf16> to vector<160x128xbf16>
    %cst_109 = arith.constant dense<0.000000e+00> : vector<1x128xf32>
    %107 = tpu.matmul %104, %106, %cst_109 {dimension_numbers = #tpu.dot_dimension_numbers<[1], [0], [0], [1], [0, 0, 1, 1], [], []>} : vector<1x160xbf16>, vector<160x128xbf16>, vector<1x128xf32> -> vector<1x128xf32>
    %108 = arith.addf %102, %107 : vector<1x128xf32>
    %c1_110 = arith.constant 1 : index
    %c0_111 = arith.constant 0 : index
    %109 = vector.load %arg18[%c1_110, %c0_111] : memref<5x160xf32, #tpu.memory_space<vmem>>, vector<1x160xf32>
    %110 = arith.truncf %109 : vector<1x160xf32> to vector<1x160xbf16>
    %c1_112 = arith.constant 1 : index
    %c0_113 = arith.constant 0 : index
    %c0_114 = arith.constant 0 : index
    %111 = vector.load %arg10[%c1_112, %c0_113, %c0_114] : memref<5x160x128xbf16, #tpu.memory_space<vmem>>, vector<1x160x128xbf16>
    %112 = vector.shape_cast %111 : vector<1x160x128xbf16> to vector<160x128xbf16>
    %cst_115 = arith.constant dense<0.000000e+00> : vector<1x128xf32>
    %113 = tpu.matmul %110, %112, %cst_115 {dimension_numbers = #tpu.dot_dimension_numbers<[1], [0], [0], [1], [0, 0, 1, 1], [], []>} : vector<1x160xbf16>, vector<160x128xbf16>, vector<1x128xf32> -> vector<1x128xf32>
    %114 = arith.addf %108, %113 : vector<1x128xf32>
    %c2_116 = arith.constant 2 : index
    %c0_117 = arith.constant 0 : index
    %115 = vector.load %arg18[%c2_116, %c0_117] : memref<5x160xf32, #tpu.memory_space<vmem>>, vector<1x160xf32>
    %116 = arith.truncf %115 : vector<1x160xf32> to vector<1x160xbf16>
    %c2_118 = arith.constant 2 : index
    %c0_119 = arith.constant 0 : index
    %c0_120 = arith.constant 0 : index
    %117 = vector.load %arg10[%c2_118, %c0_119, %c0_120] : memref<5x160x128xbf16, #tpu.memory_space<vmem>>, vector<1x160x128xbf16>
    %118 = vector.shape_cast %117 : vector<1x160x128xbf16> to vector<160x128xbf16>
    %cst_121 = arith.constant dense<0.000000e+00> : vector<1x128xf32>
    %119 = tpu.matmul %116, %118, %cst_121 {dimension_numbers = #tpu.dot_dimension_numbers<[1], [0], [0], [1], [0, 0, 1, 1], [], []>} : vector<1x160xbf16>, vector<160x128xbf16>, vector<1x128xf32> -> vector<1x128xf32>
    %120 = arith.addf %114, %119 : vector<1x128xf32>
    %c3_122 = arith.constant 3 : index
    %c0_123 = arith.constant 0 : index
    %121 = vector.load %arg18[%c3_122, %c0_123] : memref<5x160xf32, #tpu.memory_space<vmem>>, vector<1x160xf32>
    %122 = arith.truncf %121 : vector<1x160xf32> to vector<1x160xbf16>
    %c3_124 = arith.constant 3 : index
    %c0_125 = arith.constant 0 : index
    %c0_126 = arith.constant 0 : index
    %123 = vector.load %arg10[%c3_124, %c0_125, %c0_126] : memref<5x160x128xbf16, #tpu.memory_space<vmem>>, vector<1x160x128xbf16>
    %124 = vector.shape_cast %123 : vector<1x160x128xbf16> to vector<160x128xbf16>
    %cst_127 = arith.constant dense<0.000000e+00> : vector<1x128xf32>
    %125 = tpu.matmul %122, %124, %cst_127 {dimension_numbers = #tpu.dot_dimension_numbers<[1], [0], [0], [1], [0, 0, 1, 1], [], []>} : vector<1x160xbf16>, vector<160x128xbf16>, vector<1x128xf32> -> vector<1x128xf32>
    %126 = arith.addf %120, %125 : vector<1x128xf32>
    %c4_128 = arith.constant 4 : index
    %c0_129 = arith.constant 0 : index
    %127 = vector.load %arg18[%c4_128, %c0_129] : memref<5x160xf32, #tpu.memory_space<vmem>>, vector<1x160xf32>
    %128 = arith.truncf %127 : vector<1x160xf32> to vector<1x160xbf16>
    %c4_130 = arith.constant 4 : index
    %c0_131 = arith.constant 0 : index
    %c0_132 = arith.constant 0 : index
    %129 = vector.load %arg10[%c4_130, %c0_131, %c0_132] : memref<5x160x128xbf16, #tpu.memory_space<vmem>>, vector<1x160x128xbf16>
    %130 = vector.shape_cast %129 : vector<1x160x128xbf16> to vector<160x128xbf16>
    %cst_133 = arith.constant dense<0.000000e+00> : vector<1x128xf32>
    %131 = tpu.matmul %128, %130, %cst_133 {dimension_numbers = #tpu.dot_dimension_numbers<[1], [0], [0], [1], [0, 0, 1, 1], [], []>} : vector<1x160xbf16>, vector<160x128xbf16>, vector<1x128xf32> -> vector<1x128xf32>
    %132 = arith.addf %126, %131 : vector<1x128xf32>
    %c0_134 = arith.constant 0 : index
    %c0_135 = arith.constant 0 : index
    %133 = vector.load %arg11[%c0_134, %c0_135] : memref<1x128xf32, #tpu.memory_space<vmem>>, vector<1x128xf32>
    %134 = arith.addf %132, %133 : vector<1x128xf32>
    %cst_136 = arith.constant 0.000000e+00 : f32
    %135 = vector.broadcast %cst_136 : f32 to vector<1x128xf32>
    %136 = arith.maximumf %134, %135 : vector<1x128xf32>
    %137 = arith.truncf %136 : vector<1x128xf32> to vector<1x128xbf16>
    %c0_137 = arith.constant 0 : index
    %c0_138 = arith.constant 0 : index
    %138 = vector.load %arg12[%c0_137, %c0_138] : memref<128x128xbf16, #tpu.memory_space<vmem>>, vector<128x128xbf16>
    %cst_139 = arith.constant dense<0.000000e+00> : vector<1x128xf32>
    %139 = tpu.matmul %137, %138, %cst_139 {dimension_numbers = #tpu.dot_dimension_numbers<[1], [0], [0], [1], [0, 0, 1, 1], [], []>} : vector<1x128xbf16>, vector<128x128xbf16>, vector<1x128xf32> -> vector<1x128xf32>
    %c0_140 = arith.constant 0 : index
    %c0_141 = arith.constant 0 : index
    %140 = vector.load %arg13[%c0_140, %c0_141] : memref<1x128xf32, #tpu.memory_space<vmem>>, vector<1x128xf32>
    %141 = arith.addf %139, %140 : vector<1x128xf32>
    %cst_142 = arith.constant 0.000000e+00 : f32
    %142 = vector.broadcast %cst_142 : f32 to vector<1x128xf32>
    %143 = arith.maximumf %141, %142 : vector<1x128xf32>
    %144 = arith.truncf %143 : vector<1x128xf32> to vector<1x128xbf16>
    %c0_143 = arith.constant 0 : index
    %c0_144 = arith.constant 0 : index
    %145 = vector.load %arg14[%c0_143, %c0_144] : memref<128x128xbf16, #tpu.memory_space<vmem>>, vector<128x128xbf16>
    %cst_145 = arith.constant dense<0.000000e+00> : vector<1x128xf32>
    %146 = tpu.matmul %144, %145, %cst_145 {dimension_numbers = #tpu.dot_dimension_numbers<[1], [0], [0], [1], [0, 0, 1, 1], [], []>} : vector<1x128xbf16>, vector<128x128xbf16>, vector<1x128xf32> -> vector<1x128xf32>
    %c0_146 = arith.constant 0 : index
    %c0_147 = arith.constant 0 : index
    %147 = vector.load %arg15[%c0_146, %c0_147] : memref<1x128xf32, #tpu.memory_space<vmem>>, vector<1x128xf32>
    %148 = arith.addf %146, %147 : vector<1x128xf32>
    %149 = vector.shape_cast %148 : vector<1x128xf32> to vector<1x1x128xf32>
    %150 = vector.broadcast %149 : vector<1x1x128xf32> to vector<1x8x128xf32>
    %c0_148 = arith.constant 0 : index
    %c0_149 = arith.constant 0 : index
    %c0_150 = arith.constant 0 : index
    %151 = vector.load %arg16[%c0_148, %c0_149, %c0_150] : memref<1x8x128xf32, #tpu.memory_space<vmem>>, vector<1x8x128xf32>
    tpu.vector_store %arg16[%c0_148, %c0_149, %c0_150], %150 {strides = array<i32>} : memref<1x8x128xf32, #tpu.memory_space<vmem>>, vector<1x8x128xf32>,
    return
  }
  func.func @transform_0(%arg0: i32) -> (i32, i32, i32) {
    %c0_i32 = arith.constant 0 : i32
    %c0_i32_0 = arith.constant 0 : i32
    %c0_i32_1 = arith.constant 0 : i32
    return %arg0, %c0_i32, %c0_i32_0 : i32, i32, i32
  }
  func.func @transform_1(%arg0: i32) -> (i32, i32, i32) {
    %c0_i32 = arith.constant 0 : i32
    %c0_i32_0 = arith.constant 0 : i32
    %c0_i32_1 = arith.constant 0 : i32
    %c0_i32_2 = arith.constant 0 : i32
    return %c0_i32, %c0_i32_0, %c0_i32_1 : i32, i32, i32
  }
  func.func @transform_2(%arg0: i32) -> (i32, i32) {
    %c0_i32 = arith.constant 0 : i32
    %c0_i32_0 = arith.constant 0 : i32
    %c0_i32_1 = arith.constant 0 : i32
    return %c0_i32, %c0_i32_0 : i32, i32
  }
  func.func @transform_3(%arg0: i32) -> (i32, i32, i32) {
    %c0_i32 = arith.constant 0 : i32
    %c0_i32_0 = arith.constant 0 : i32
    %c0_i32_1 = arith.constant 0 : i32
    %c0_i32_2 = arith.constant 0 : i32
    return %c0_i32, %c0_i32_0, %c0_i32_1 : i32, i32, i32
  }
  func.func @transform_4(%arg0: i32) -> (i32, i32, i32) {
    %c0_i32 = arith.constant 0 : i32
    %c0_i32_0 = arith.constant 0 : i32
    %c0_i32_1 = arith.constant 0 : i32
    %c0_i32_2 = arith.constant 0 : i32
    return %c0_i32, %c0_i32_0, %c0_i32_1 : i32, i32, i32
  }
  func.func @transform_5(%arg0: i32) -> (i32, i32, i32) {
    %c0_i32 = arith.constant 0 : i32
    %c0_i32_0 = arith.constant 0 : i32
    %c0_i32_1 = arith.constant 0 : i32
    %c0_i32_2 = arith.constant 0 : i32
    return %c0_i32, %c0_i32_0, %c0_i32_1 : i32, i32, i32
  }
  func.func @transform_6(%arg0: i32) -> (i32, i32) {
    %c0_i32 = arith.constant 0 : i32
    %c0_i32_0 = arith.constant 0 : i32
    %c0_i32_1 = arith.constant 0 : i32
    return %c0_i32, %c0_i32_0 : i32, i32
  }
  func.func @transform_7(%arg0: i32) -> (i32, i32, i32) {
    %c0_i32 = arith.constant 0 : i32
    %c0_i32_0 = arith.constant 0 : i32
    %c0_i32_1 = arith.constant 0 : i32
    %c0_i32_2 = arith.constant 0 : i32
    return %c0_i32, %c0_i32_0, %c0_i32_1 : i32, i32, i32
  }
  func.func @transform_8(%arg0: i32) -> (i32, i32, i32) {
    %c0_i32 = arith.constant 0 : i32
    %c0_i32_0 = arith.constant 0 : i32
    %c0_i32_1 = arith.constant 0 : i32
    %c0_i32_2 = arith.constant 0 : i32
    return %c0_i32, %c0_i32_0, %c0_i32_1 : i32, i32, i32
  }
  func.func @transform_9(%arg0: i32) -> (i32, i32, i32) {
    %c0_i32 = arith.constant 0 : i32
    %c0_i32_0 = arith.constant 0 : i32
    %c0_i32_1 = arith.constant 0 : i32
    %c0_i32_2 = arith.constant 0 : i32
    return %c0_i32, %c0_i32_0, %c0_i32_1 : i32, i32, i32
  }
  func.func @transform_10(%arg0: i32) -> (i32, i32) {
    %c0_i32 = arith.constant 0 : i32
    %c0_i32_0 = arith.constant 0 : i32
    %c0_i32_1 = arith.constant 0 : i32
    return %c0_i32, %c0_i32_0 : i32, i32
  }
  func.func @transform_11(%arg0: i32) -> (i32, i32) {
    %c0_i32 = arith.constant 0 : i32
    %c0_i32_0 = arith.constant 0 : i32
    %c0_i32_1 = arith.constant 0 : i32
    return %c0_i32, %c0_i32_0 : i32, i32
  }
  func.func @transform_12(%arg0: i32) -> (i32, i32) {
    %c0_i32 = arith.constant 0 : i32
    %c0_i32_0 = arith.constant 0 : i32
    %c0_i32_1 = arith.constant 0 : i32
    return %c0_i32, %c0_i32_0 : i32, i32
  }
  func.func @transform_13(%arg0: i32) -> (i32, i32) {
    %c0_i32 = arith.constant 0 : i32
    %c0_i32_0 = arith.constant 0 : i32
    %c0_i32_1 = arith.constant 0 : i32
    return %c0_i32, %c0_i32_0 : i32, i32
  }
  func.func @transform_14(%arg0: i32) -> (i32, i32) {
    %c0_i32 = arith.constant 0 : i32
    %c0_i32_0 = arith.constant 0 : i32
    %c0_i32_1 = arith.constant 0 : i32
    return %c0_i32, %c0_i32_0 : i32, i32
  }
  func.func @transform_15(%arg0: i32) -> (i32, i32, i32) {
    %c0_i32 = arith.constant 0 : i32
    %c0_i32_0 = arith.constant 0 : i32
    %c0_i32_1 = arith.constant 0 : i32
    return %arg0, %c0_i32, %c0_i32_0 : i32, i32, i32
  }
}

</mosaic_0001>

<bundles_post_ra>
// kernel: lenet_forward.1
= control target key start
LH: loop header
LB: loop body
LE: loop exit
PB: predicated region body
PF: predicated region fallthrough
CT: control target
= control target key end

     0   :  { %s8409_s18 = smov 0   ;;  %s11530_s0 = inlined_call_operand.vmem [shape: bf16[2,32,128], index: 0, kind: input, shape index: {}]   ;;  %s11531_s1 = inlined_call_operand.vmem [shape: bf16[5,128,448], index: 1, kind: input, shape index: {}]   ;;  %s11532_s2 = inlined_call_operand.vmem [shape: f32[1,448], index: 2, kind: input, shape index: {}]   ;;  %s11533_s3 = inlined_call_operand.vmem [shape: f32[2,448,224], index: 3, kind: input, shape index: {}]   ;;  %s11534_s4 = inlined_call_operand.vmem [shape: f32[2,14,28], index: 4, kind: input, shape index: {}]   ;;  %s11535_s5 = inlined_call_operand.vmem [shape: bf16[5,224,320], index: 5, kind: input, shape index: {}]   ;;  %s11536_s6 = inlined_call_operand.vmem [shape: f32[1,320], index: 6, kind: input, shape index: {}]   ;;  %s11537_s7 = inlined_call_operand.vmem [shape: f32[2,320,160], index: 7, kind: input, shape index: {}]   ;;  %s11538_s8 = inlined_call_operand.vmem [shape: f32[2,5,10], index: 8, kind: input, shape index: {}]   ;;  %s11539_s9 = inlined_call_operand.vmem [shape: bf16[5,160,128], index: 9, kind: input, shape index: {}]   ;;  %s11540_s10 = inlined_call_operand.vmem [shape: f32[1,128], index: 10, kind: input, shape index: {}]   ;;  %s11541_s11 = inlined_call_operand.vmem [shape: bf16[128,128], index: 11, kind: input, shape index: {}]   ;;  %s11542_s12 = inlined_call_operand.vmem [shape: f32[1,128], index: 12, kind: input, shape index: {}]   ;;  %s11543_s13 = inlined_call_operand.vmem [shape: bf16[128,128], index: 13, kind: input, shape index: {}]   ;;  %s11544_s14 = inlined_call_operand.vmem [shape: f32[1,128], index: 14, kind: input, shape index: {}]   ;;  %s11545_s15 = inlined_call_operand.vmem [shape: f32[2,8,128], index: 15, kind: output, shape index: {}]  }
   0x1 LB: > { %s6535_s19 = sadd.s32 4294967295, %s8324_s18   ;;  %p6539_p0 = scmp.ge.s32.totalorder %s8324_s18, 1  ;;  %s8324_s18 = sphi %s8409_s18, %s25_s18  }
   0x2   : > { %p437_p1 = scmp.lt.s32.totalorder %s8324_s18, 3 }
   0x4   : > { %p438_p2 = pnand %p6539_p0, %p437_p1 }
   0x6   : > { %441 = sbr.rel (%p438_p2) target bundleno = 2477 (0x9ad), region = 80 }
   0xb   : > { %v7725_v0 = vld [vmem:[%s11531_s1 + $0x1e4] ss:$16 sps:$4 sm:$0xff]   ;;  %v7727_v1 = vld [vmem:[%s11531_s1 + $0x1ec] ss:$16 sps:$4 sm:$0xff]   ;;  %v11546_v2 = vmov 0   ;;  %p484_p3 = scmp.lt.s32.totalorder %s6535_s19, 1 }
   0xc   : > { %837 = vmatprep.mubr.bf16.mxu1 %v11546_v2  ;;  %784 = vmatprep.mubr.bf16.mxu0 %v11546_v2  ;;  %v7729_v3 = vld [vmem:[%s11531_s1 + $0x1e0] ss:$16 sps:$4 sm:$0xff]   ;;  %v7730_v4 = vld [vmem:[%s11531_s1 + $0x1e8] ss:$16 sps:$4 sm:$0xff]   ;;  %v7731_v5 = vld [vmem:[%s11531_s1 + $0x1c4] ss:$16 sps:$4 sm:$0xff]  }
   0xd   : > { %752 = vmatprep.subr.bf16.mxu0 %v7725_v0  ;;  %805 = vmatprep.subr.bf16.mxu1 %v7727_v1  ;;  %v7733_v6 = vld [vmem:[%s11531_s1 + $0x1cc] ss:$16 sps:$4 sm:$0xff]   ;;  %v7735_v7 = vld [vmem:[%s11531_s1 + $0x1c0] ss:$16 sps:$4 sm:$0xff]   ;;  %v7736_v8 = vld [vmem:[%s11531_s1 + $0x1c8] ss:$16 sps:$4 sm:$0xff]  }
   0xe   : > { %753 = vmatpush1.bf16.msra.mxu0 %v7729_v3  ;;  %806 = vmatpush1.bf16.msra.mxu1 %v7730_v4  ;;  %v7737_v9 = vld [vmem:[%s11531_s1 + $0x1a4] ss:$16 sps:$4 sm:$0xff]   ;;  %v7739_v10 = vld [vmem:[%s11531_s1 + $0x1ac] ss:$16 sps:$4 sm:$0xff]   ;;  %v7741_v11 = vld [vmem:[%s11531_s1 + $0x1a0] ss:$16 sps:$4 sm:$0xff]  }
   0xf   : > { %754 = vmatprep.subr.bf16.mxu0 %v7731_v5  ;;  %807 = vmatprep.subr.bf16.mxu1 %v7733_v6  ;;  %v7742_v12 = vld [vmem:[%s11531_s1 + $0x1a8] ss:$16 sps:$4 sm:$0xff]   ;;  %v7743_v13 = vld [vmem:[%s11531_s1 + $0x184] ss:$16 sps:$4 sm:$0xff]   ;;  %v7745_v14 = vld [vmem:[%s11531_s1 + $0x18c] ss:$16 sps:$4 sm:$0xff]  }
  0x10   : > { %v7747_v15 = vld [vmem:[%s11531_s1 + $0x180] ss:$16 sps:$4 sm:$0xff]   ;;  %s11586_s19 = smov (!%p484_p3, %s6535_s19), 1  ;;  %v7748_v16 = vld [vmem:[%s11531_s1 + $0x188] ss:$16 sps:$4 sm:$0xff]   ;;  %vm1166_vm1 = vcmask 1046528  }
  0x11   : > { %v7749_v17 = vld [vmem:[%s11531_s1 + $0x164] ss:$16 sps:$4 sm:$0xff]   ;;  %v7751_v18 = vld [vmem:[%s11531_s1 + $0x16c] ss:$16 sps:$4 sm:$0xff]   ;;  %v7753_v19 = vld [vmem:[%s11531_s1 + $0x160] ss:$16 sps:$4 sm:$0xff]  }
  0x12   : > { %755 = vmatpush1.bf16.msra.mxu0 %v7735_v7  ;;  %808 = vmatpush1.bf16.msra.mxu1 %v7736_v8  ;;  %v7754_v20 = vld [vmem:[%s11531_s1 + $0x168] ss:$16 sps:$4 sm:$0xff]   ;;  %s7655_s21 = sshll.u32 %s11586_s19, 4  ;;  %v7755_v21 = vld [vmem:[%s11531_s1 + $0x144] ss:$16 sps:$4 sm:$0xff]   ;;  %vm1830_vm3 = vcmask 1045504  }
  0x13   : > { %756 = vmatprep.subr.bf16.mxu0 %v7737_v9  ;;  %809 = vmatprep.subr.bf16.mxu1 %v7739_v10  ;;  %v7757_v22 = vld [vmem:[%s11531_s1 + $0x14c] ss:$16 sps:$4 sm:$0xff]   ;;  %s8495_s28 = scalar_lea.vmem %s11530_s0, %s7655_s21  ;;  %v7759_v23 = vld [vmem:[%s11531_s1 + $0x140] ss:$16 sps:$4 sm:$0xff]   ;;  %v7760_v24 = vld [vmem:[%s11531_s1 + $0x148] ss:$16 sps:$4 sm:$0xff]  }
  0x14   : > { %v7761_v25 = vld [vmem:[%s11531_s1 + $0x124] ss:$16 sps:$4 sm:$0xff]   ;;  %v7763_v26 = vld [vmem:[%s11531_s1 + $0x12c] ss:$16 sps:$4 sm:$0xff]   ;;  %v494_v27 = vld [vmem:[%s8495_s28] sm:$0xf] }
  0x15   : > { %v8511_v28 = vld [vmem:[%s8495_s28 + $0x4] sm:$0xf]  ;;  %v8514_v29 = vld [vmem:[%s8495_s28 + $0x8] sm:$0xf]  ;;  %v530_v30 = vld [vmem:[%s8495_s28 + $0xc] sm:$0x7] }
  0x16   : > { %757 = vmatpush1.bf16.msra.mxu0 %v7741_v11  ;;  %810 = vmatpush1.bf16.msra.mxu1 %v7742_v12  ;;  %v8518_v31 = vcombine.low %v494_v27, %v8511_v28  ;;  %v7765_v32 = vld [vmem:[%s11531_s1 + $0x120] ss:$16 sps:$4 sm:$0xff]   ;;  %v8524_v33 = vcombine.low %v8514_v29, %v530_v30  ;;  %v7766_v34 = vld [vmem:[%s11531_s1 + $0x128] ss:$16 sps:$4 sm:$0xff]   ;;  %v7767_v37 = vld [vmem:[%s11531_s1 + $0x104] ss:$16 sps:$4 sm:$0xff]  }
  0x17   : > { %758 = vmatprep.subr.bf16.mxu0 %v7743_v13  ;;  %811 = vmatprep.subr.bf16.mxu1 %v7745_v14  ;;  %v7769_v38 = vld [vmem:[%s11531_s1 + $0x10c] ss:$16 sps:$4 sm:$0xff]   ;;  %v7771_v41 = vld [vmem:[%s11531_s1 + $0x100] ss:$16 sps:$4 sm:$0xff]   ;;  %vm574_vm0 = vsmask.f32 7424 }
  0x18   : > { %v576_v35 = vshrl.u32 %v8518_v31, 16  ;;  %v578_v36 = vshll.u32 %v8518_v31, 16  ;;  %v583_v39 = vshll.u32 %v8524_v33, 16  ;;  %v7772_v42 = vld [vmem:[%s11531_s1 + $0x108] ss:$16 sps:$4 sm:$0xff]   ;;  %v587_v53 = vshrl.u32 %v8524_v33, 16 }
  0x19   : > { %v7778_v45 = vld [vmem:[%s11531_s1 + $0xe4] ss:$16 sps:$4 sm:$0xff]   ;;  %v7781_v46 = vld [vmem:[%s11531_s1 + $0xec] ss:$16 sps:$4 sm:$0xff]   ;;  %v7776_v47 = vld [vmem:[%s11531_s1 + $0xe0] ss:$16 sps:$4 sm:$0xff]  }
  0x1a   : > { %759 = vmatpush1.bf16.msra.mxu0 %v7747_v15  ;;  %812 = vmatpush1.bf16.msra.mxu1 %v7748_v16  ;;  %v580_v40 = vrot.slane %v578_v36, 1  ;;  %v585_v44 = vrot.slane %v583_v39, 1  ;;  %v7779_v49 = vld [vmem:[%s11531_s1 + $0xe8] ss:$16 sps:$4 sm:$0xff]   ;;  %v7784_v50 = vld [vmem:[%s11531_s1 + $0xc4] ss:$16 sps:$4 sm:$0xff]  }
  0x1b   : > { %760 = vmatprep.subr.bf16.mxu0 %v7749_v17  ;;  %813 = vmatprep.subr.bf16.mxu1 %v7751_v18  ;;  %v7787_v51 = vld [vmem:[%s11531_s1 + $0xcc] ss:$16 sps:$4 sm:$0xff]   ;;  %v7782_v52 = vld [vmem:[%s11531_s1 + $0xc0] ss:$16 sps:$4 sm:$0xff]   ;;  %v7785_v54 = vld [vmem:[%s11531_s1 + $0xc8] ss:$16 sps:$4 sm:$0xff]  }
  0x1c   : > { %v581_v43 = vor.u32 %v580_v40, %v576_v35  ;;  %v7790_v55 = vld [vmem:[%s11531_s1 + $0xa4] ss:$16 sps:$4 sm:$0xff]   ;;  %v7793_v56 = vld [vmem:[%s11531_s1 + $0xac] ss:$16 sps:$4 sm:$0xff]   ;;  %v7788_v57 = vld [vmem:[%s11531_s1 + $0xa0] ss:$16 sps:$4 sm:$0xff]   ;;  %v589_v58 = vor.u32 %v587_v53, %v585_v44 }
  0x1d   : > { %v7791_v59 = vld [vmem:[%s11531_s1 + $0xa8] ss:$16 sps:$4 sm:$0xff]   ;;  %v7796_v60 = vld [vmem:[%s11531_s1 + $0x84] ss:$16 sps:$4 sm:$0xff]   ;;  %v7799_v61 = vld [vmem:[%s11531_s1 + $0x8c] ss:$16 sps:$4 sm:$0xff]  }
  0x1e   : > { %761 = vmatpush1.bf16.msra.mxu0 %v7753_v19  ;;  %814 = vmatpush1.bf16.msra.mxu1 %v7754_v20  ;;  %v586_v48 = vsel %vm574_vm0, %v581_v43, %v585_v44  ;;  %v7794_v62 = vld [vmem:[%s11531_s1 + $0x80] ss:$16 sps:$4 sm:$0xff]   ;;  %v7797_v63 = vld [vmem:[%s11531_s1 + $0x88] ss:$16 sps:$4 sm:$0xff]   ;;  %v7802_v0 = vld [vmem:[%s11531_s1 + $0x64] ss:$16 sps:$4 sm:$0xff]  }
  0x1f   : > { %762 = vmatprep.subr.bf16.mxu0 %v7755_v21  ;;  %815 = vmatprep.subr.bf16.mxu1 %v7757_v22  ;;  %v7805_v1 = vld [vmem:[%s11531_s1 + $0x6c] ss:$16 sps:$4 sm:$0xff]   ;;  %v7800_v3 = vld [vmem:[%s11531_s1 + $0x60] ss:$16 sps:$4 sm:$0xff]   ;;  %v7803_v4 = vld [vmem:[%s11531_s1 + $0x68] ss:$16 sps:$4 sm:$0xff]  }
  0x20   : > { %v7808_v5 = vld [vmem:[%s11531_s1 + $0x44] ss:$16 sps:$4 sm:$0xff]   ;;  %v7811_v6 = vld [vmem:[%s11531_s1 + $0x4c] ss:$16 sps:$4 sm:$0xff]   ;;  %v7806_v7 = vld [vmem:[%s11531_s1 + $0x40] ss:$16 sps:$4 sm:$0xff]  }
  0x21   : > { %v7809_v8 = vld [vmem:[%s11531_s1 + $0x48] ss:$16 sps:$4 sm:$0xff]   ;;  %v7814_v9 = vld [vmem:[%s11531_s1 + $0x24] ss:$16 sps:$4 sm:$0xff]   ;;  %v7817_v10 = vld [vmem:[%s11531_s1 + $0x2c] ss:$16 sps:$4 sm:$0xff]  }
  0x22   : > { %763 = vmatpush1.bf16.msra.mxu0 %v7759_v23  ;;  %816 = vmatpush1.bf16.msra.mxu1 %v7760_v24  ;;  %v7812_v11 = vld [vmem:[%s11531_s1 + $0x20] ss:$16 sps:$4 sm:$0xff]   ;;  %v7815_v12 = vld [vmem:[%s11531_s1 + $0x28] ss:$16 sps:$4 sm:$0xff]   ;;  %v7820_v13 = vld [vmem:[%s11531_s1 + $0x4] ss:$16 sps:$4 sm:$0xff]  }
  0x23   : > { %764 = vmatprep.subr.bf16.mxu0 %v7761_v25  ;;  %817 = vmatprep.subr.bf16.mxu1 %v7763_v26  ;;  %v7823_v14 = vld [vmem:[%s11531_s1 + $0xc] ss:$16 sps:$4 sm:$0xff]   ;;  %v7818_v15 = vld [vmem:[%s11531_s1] ss:$16 sps:$4 sm:$0xff]   ;;  %v7821_v16 = vld [vmem:[%s11531_s1 + $0x8] ss:$16 sps:$4 sm:$0xff]  }
  0x24   : > { %v7826_v17 = vld [vmem:[%s11531_s1 + $0x2e4] ss:$16 sps:$4 sm:$0xff]   ;;  %v7829_v18 = vld [vmem:[%s11531_s1 + $0x2ec] ss:$16 sps:$4 sm:$0xff]   ;;  %v7824_v19 = vld [vmem:[%s11531_s1 + $0x2e0] ss:$16 sps:$4 sm:$0xff]  }
  0x25   : > { %v7827_v20 = vld [vmem:[%s11531_s1 + $0x2e8] ss:$16 sps:$4 sm:$0xff]   ;;  %v7832_v21 = vld [vmem:[%s11531_s1 + $0x2c4] ss:$16 sps:$4 sm:$0xff]   ;;  %v7835_v22 = vld [vmem:[%s11531_s1 + $0x2cc] ss:$16 sps:$4 sm:$0xff]  }
  0x26   : > { %765 = vmatpush1.bf16.msra.mxu0 %v7765_v32  ;;  %818 = vmatpush1.bf16.msra.mxu1 %v7766_v34  ;;  %v7830_v23 = vld [vmem:[%s11531_s1 + $0x2c0] ss:$16 sps:$4 sm:$0xff]   ;;  %v7833_v24 = vld [vmem:[%s11531_s1 + $0x2c8] ss:$16 sps:$4 sm:$0xff]   ;;  %v497_v25 = vld [vmem:[%s8495_s28 + $0xc] sm:$0x3] }
  0x27   : > { %766 = vmatprep.subr.bf16.mxu0 %v7767_v37  ;;  %819 = vmatprep.subr.bf16.mxu1 %v7769_v38  ;;  %v7839_v26 = vld [vmem:[%s11531_s1 + $0x2a4] ss:$16 sps:$4 sm:$0xff]   ;;  %v7842_v27 = vld [vmem:[%s11531_s1 + $0x2ac] ss:$16 sps:$4 sm:$0xff]   ;;  %v6609_v30 = vcombine.low %v8514_v29, %v497_v25  ;;  %v7840_v32 = vld [vmem:[%s11531_s1 + $0x2a8] ss:$16 sps:$4 sm:$0xff]  }
  0x28   : > { %v7845_v34 = vld [vmem:[%s11531_s1 + $0x284] ss:$16 sps:$4 sm:$0xff]   ;;  %v7848_v35 = vld [vmem:[%s11531_s1 + $0x28c] ss:$16 sps:$4 sm:$0xff]   ;;  %v7843_v36 = vld [vmem:[%s11531_s1 + $0x280] ss:$16 sps:$4 sm:$0xff]  }
  0x29   : > { %v7846_v37 = vld [vmem:[%s11531_s1 + $0x288] ss:$16 sps:$4 sm:$0xff]   ;;  %v7851_v38 = vld [vmem:[%s11531_s1 + $0x264] ss:$16 sps:$4 sm:$0xff]   ;;  %v7854_v39 = vld [vmem:[%s11531_s1 + $0x26c] ss:$16 sps:$4 sm:$0xff]  }
  0x2a   : > { %767 = vmatpush1.bf16.msra.mxu0 %v7771_v41  ;;  %820 = vmatpush1.bf16.msra.mxu1 %v7772_v42  ;;  %v7849_v40 = vld [vmem:[%s11531_s1 + $0x260] ss:$16 sps:$4 sm:$0xff]   ;;  %v7852_v41 = vld [vmem:[%s11531_s1 + $0x268] ss:$16 sps:$4 sm:$0xff]   ;;  %v7857_v42 = vld [vmem:[%s11531_s1 + $0x244] ss:$16 sps:$4 sm:$0xff]  }
  0x2b   : > { %1023 = vmatprep.subr.bf16.mxu0 %v7778_v45  ;;  %1076 = vmatprep.subr.bf16.mxu1 %v7781_v46  ;;  %v7860_v43 = vld [vmem:[%s11531_s1 + $0x24c] ss:$16 sps:$4 sm:$0xff]   ;;  %v7855_v44 = vld [vmem:[%s11531_s1 + $0x240] ss:$16 sps:$4 sm:$0xff]   ;;  %v7858_v45 = vld [vmem:[%s11531_s1 + $0x248] ss:$16 sps:$4 sm:$0xff]  }
  0x2c   : > { %v7863_v46 = vld [vmem:[%s11531_s1 + $0x224] ss:$16 sps:$4 sm:$0xff]   ;;  %v7872_v53 = vld [vmem:[%s11531_s1 + $0x20c] ss:$16 sps:$4 sm:$0xff]   ;;  %v7910_v25 = vld [vmem:[%s11531_s1 + $0x320] ss:$16 sps:$4 sm:$0xff]  }
  0x2d   : > { %838 = vmatmul.mubr.bf16.vlgmr.msra.gmra.mxu1 %v586_v48  ;;  %785 = vmatmul.mubr.bf16.vlgmr.msra.gmra.mxu0 %v586_v48  ;;  %v1129_v48 = vld [vmem:[%s8495_s28] sm:$0xe]  ;;  %vm1491_vm2 = vsmask.f32 6400  ;;  %vm2284_vm4 = vcmask 523264   ;;  %vm2783_vm5 = vcmask 1043456  }
  0x2e   : > { %1024 = vmatpush1.bf16.msra.mxu0 %v7776_v47  ;;  %1077 = vmatpush1.bf16.msra.mxu1 %v7779_v49  ;;  %v7866_v47 = vld [vmem:[%s11531_s1 + $0x22c] ss:$16 sps:$4 sm:$0xff]   ;;  %v7861_v49 = vld [vmem:[%s11531_s1 + $0x220] ss:$16 sps:$4 sm:$0xff]   ;;  %vm2776_vm6 = vcmask 228352   ;;  %vm2958_vm7 = vcmask 785408  }
  0x2f   : > { %1025 = vmatprep.subr.bf16.mxu0 %v7784_v50  ;;  %1078 = vmatprep.subr.bf16.mxu1 %v7787_v51  ;;  %v7864_v50 = vld [vmem:[%s11531_s1 + $0x228] ss:$16 sps:$4 sm:$0xff]   ;;  %v7869_v51 = vld [vmem:[%s11531_s1 + $0x204] ss:$16 sps:$4 sm:$0xff]   ;;  %vm2961_vm8 = vcmask 783360   ;;  %vm5405_vm9 = vcmask 1041408  }
  0x30   : > { %847 = vmatprep.mubr.bf16.mxu1 %v11546_v2  ;;  %794 = vmatprep.mubr.bf16.mxu0 %v11546_v2  ;;  %vm5401_vm10 = vcmask 80896   ;;  %vm5562_vm11 = vcmask 258048   ;;  %vm5694_vm12 = vcmask 261120   ;;  %vm8328_vm13 = vmmov 0   ;;  %s6542_s16 = sshll.u32 %s11586_s19, 3 }
  0x31   : > { %s492_s22 = scalar_lea.vmem %s11545_s15, %s6542_s16 }
  0x32   : > { %1026 = vmatpush1.bf16.msra.mxu0 %v7782_v52  ;;  %1079 = vmatpush1.bf16.msra.mxu1 %v7785_v54  ;;  %v8742_v52 = vcombine.low %v1129_v48, %v8511_v28  ;;  %v7867_v54 = vld [vmem:[%s11531_s1 + $0x200] ss:$16 sps:$4 sm:$0xff]   ;;  %v7931_v48 = vld [vmem:[%s11531_s1 + $0x4c8] ss:$16 sps:$4 sm:$0xff]  }
  0x33   : > { %1027 = vmatprep.subr.bf16.mxu0 %v7790_v55  ;;  %1080 = vmatprep.subr.bf16.mxu1 %v7793_v56  ;;  %v1168_v55 = vrot.slane %v8524_v33, 1  ;;  %v7870_v56 = vld [vmem:[%s11531_s1 + $0x208] ss:$16 sps:$4 sm:$0xff]   ;;  %v7874_v33 = vld [vmem:[%s11531_s1 + $0x3e0] ss:$16 sps:$4 sm:$0xff]  }
  0x34   : > { %v1167_v28 = vrot.slane %v8742_v52, 1 }
  0x35   : > { %848 = vmatmul.mubr.bf16.gmra.mxu1 %v589_v58  ;;  %795 = vmatmul.mubr.bf16.gmra.mxu0 %v589_v58  ;;  %v7879_v58 = vld [vmem:[%s11531_s1 + $0x3ec] ss:$16 sps:$4 sm:$0xff]  }
  0x36   : > { %1028 = vmatpush1.bf16.msra.mxu0 %v7788_v57  ;;  %1081 = vmatpush1.bf16.msra.mxu1 %v7791_v59  ;;  %v7876_v57 = vld [vmem:[%s11531_s1 + $0x3e4] ss:$16 sps:$4 sm:$0xff]   ;;  %v1169_v59 = vsel %vm1166_vm1, %v1167_v28, %v1168_v55 }
  0x37   : > { %1029 = vmatprep.subr.bf16.mxu0 %v7796_v60  ;;  %1082 = vmatprep.subr.bf16.mxu1 %v7799_v61  ;;  %v7877_v60 = vld [vmem:[%s11531_s1 + $0x3e8] ss:$16 sps:$4 sm:$0xff]   ;;  %v7882_v61 = vld [vmem:[%s11531_s1 + $0x3c4] ss:$16 sps:$4 sm:$0xff]  }
  0x38   : > { %1055 = vmatprep.mubr.bf16.mxu0 %v11546_v2  ;;  %1108 = vmatprep.mubr.bf16.mxu1 %v11546_v2  ;;  %v7948_v28 = vld [vmem:[%s11531_s1 + $0x464] ss:$16 sps:$4 sm:$0xff]  }
  0x3a   : > { %1030 = vmatpush1.bf16.msra.mxu0 %v7794_v62  ;;  %1083 = vmatpush1.bf16.msra.mxu1 %v7797_v63  ;;  %v7885_v62 = vld [vmem:[%s11531_s1 + $0x3cc] ss:$16 sps:$4 sm:$0xff]   ;;  %v7880_v63 = vld [vmem:[%s11531_s1 + $0x3c0] ss:$16 sps:$4 sm:$0xff]  }
  0x3b   : > { %1031 = vmatprep.subr.bf16.mxu0 %v7802_v0  ;;  %1084 = vmatprep.subr.bf16.mxu1 %v7805_v1  ;;  %v7883_v0 = vld [vmem:[%s11531_s1 + $0x3c8] ss:$16 sps:$4 sm:$0xff]   ;;  %v7888_v1 = vld [vmem:[%s11531_s1 + $0x3a4] ss:$16 sps:$4 sm:$0xff]  }
  0x3e   : > { %1032 = vmatpush1.bf16.msra.mxu0 %v7800_v3  ;;  %1085 = vmatpush1.bf16.msra.mxu1 %v7803_v4  ;;  %v7891_v3 = vld [vmem:[%s11531_s1 + $0x3ac] ss:$16 sps:$4 sm:$0xff]   ;;  %v7886_v4 = vld [vmem:[%s11531_s1 + $0x3a0] ss:$16 sps:$4 sm:$0xff]  }
  0x3f   : > { %1033 = vmatprep.subr.bf16.mxu0 %v7808_v5  ;;  %1086 = vmatprep.subr.bf16.mxu1 %v7811_v6  ;;  %v7889_v5 = vld [vmem:[%s11531_s1 + $0x3a8] ss:$16 sps:$4 sm:$0xff]   ;;  %v7894_v6 = vld [vmem:[%s11531_s1 + $0x384] ss:$16 sps:$4 sm:$0xff]  }
  0x42   : > { %1034 = vmatpush1.bf16.msra.mxu0 %v7806_v7  ;;  %1087 = vmatpush1.bf16.msra.mxu1 %v7809_v8  ;;  %v7897_v7 = vld [vmem:[%s11531_s1 + $0x38c] ss:$16 sps:$4 sm:$0xff]  }
  0x43   : > { %1035 = vmatprep.subr.bf16.mxu0 %v7814_v9  ;;  %1088 = vmatprep.subr.bf16.mxu1 %v7817_v10  ;;  %v1454_v8 = vld [vmem:[%s8495_s28 + $0xc] sm:$0xf]  ;;  %v7892_v9 = vld [vmem:[%s11531_s1 + $0x380] ss:$16 sps:$4 sm:$0xff]   ;;  %v7895_v10 = vld [vmem:[%s11531_s1 + $0x388] ss:$16 sps:$4 sm:$0xff]  }
  0x46   : > { %1036 = vmatpush1.bf16.msra.mxu0 %v7812_v11  ;;  %1089 = vmatpush1.bf16.msra.mxu1 %v7815_v12  ;;  %v7900_v11 = vld [vmem:[%s11531_s1 + $0x364] ss:$16 sps:$4 sm:$0xff]   ;;  %v7903_v12 = vld [vmem:[%s11531_s1 + $0x36c] ss:$16 sps:$4 sm:$0xff]  }
  0x47   : > { %1037 = vmatprep.subr.bf16.mxu0 %v7820_v13  ;;  %1090 = vmatprep.subr.bf16.mxu1 %v7823_v14  ;;  %v8813_v13 = vcombine.low %v8514_v29, %v1454_v8  ;;  %v7898_v14 = vld [vmem:[%s11531_s1 + $0x360] ss:$16 sps:$4 sm:$0xff]   ;;  %v7909_v29 = vld [vmem:[%s11531_s1 + $0x34c] ss:$16 sps:$4 sm:$0xff]  }
  0x4a   : > { %1038 = vmatpush1.bf16.msra.mxu0 %v7818_v15  ;;  %1091 = vmatpush1.bf16.msra.mxu1 %v7821_v16  ;;  %v7901_v15 = vld [vmem:[%s11531_s1 + $0x368] ss:$16 sps:$4 sm:$0xff]   ;;  %v7906_v16 = vld [vmem:[%s11531_s1 + $0x344] ss:$16 sps:$4 sm:$0xff]  }
  0x4b   : > { %1332 = vmatprep.subr.bf16.mxu0 %v7826_v17  ;;  %1385 = vmatprep.subr.bf16.mxu1 %v7829_v18  ;;  %v7904_v17 = vld [vmem:[%s11531_s1 + $0x340] ss:$16 sps:$4 sm:$0xff]   ;;  %v7907_v18 = vld [vmem:[%s11531_s1 + $0x348] ss:$16 sps:$4 sm:$0xff]  }
  0x4d   : > { %1056 = vmatmul.mubr.bf16.vlgmr.msra.gmra.mxu0 %v8518_v31  ;;  %1109 = vmatmul.mubr.bf16.vlgmr.msra.gmra.mxu1 %v8518_v31  ;;  %v7837_v31 = vld [vmem:[%s11531_s1 + $0x2a0] ss:$16 sps:$4 sm:$0xff]  }
  0x4e   : > { %1333 = vmatpush1.bf16.msra.mxu0 %v7824_v19  ;;  %1386 = vmatpush1.bf16.msra.mxu1 %v7827_v20  ;;  %v1501_v19 = vshrl.u32 %v8813_v13, 16  ;;  %v7912_v20 = vld [vmem:[%s11531_s1 + $0x324] ss:$16 sps:$4 sm:$0xff]  }
  0x4f   : > { %1334 = vmatprep.subr.bf16.mxu0 %v7832_v21  ;;  %1387 = vmatprep.subr.bf16.mxu1 %v7835_v22  ;;  %v7915_v21 = vld [vmem:[%s11531_s1 + $0x32c] ss:$16 sps:$4 sm:$0xff]   ;;  %v1504_v22 = vshll.u32 %v8813_v13, 16 }
  0x50   : > { %1065 = vmatprep.mubr.bf16.mxu0 %v11546_v2  ;;  %1118 = vmatprep.mubr.bf16.mxu1 %v11546_v2 }
  0x52   : > { %1335 = vmatpush1.bf16.msra.mxu0 %v7830_v23  ;;  %1388 = vmatpush1.bf16.msra.mxu1 %v7833_v24  ;;  %v1493_v23 = vshrl.u32 %v8742_v52, 16  ;;  %v1496_v24 = vshll.u32 %v8742_v52, 16  ;;  %v7937_v52 = vld [vmem:[%s11531_s1 + $0x4a8] ss:$16 sps:$4 sm:$0xff]  }
  0x53   : > { %1336 = vmatprep.subr.bf16.mxu0 %v7839_v26  ;;  %1389 = vmatprep.subr.bf16.mxu1 %v7842_v27  ;;  %v7913_v26 = vld [vmem:[%s11531_s1 + $0x328] ss:$16 sps:$4 sm:$0xff]   ;;  %v1503_v27 = vrot.slane %v1501_v19, 1 }
  0x54   : > { %v2197_v19 = vld [vmem:[%s11533_s3 + $0xc8] sm:$0xff] }
  0x55   : > { %1066 = vmatmul.mubr.bf16.gmra.mxu0 %v6609_v30  ;;  %1119 = vmatmul.mubr.bf16.gmra.mxu1 %v6609_v30  ;;  %v7918_v30 = vld [vmem:[%s11531_s1 + $0x304] ss:$16 sps:$4 sm:$0xff]  }
  0x56   : > { %1337 = vmatpush1.bf16.msra.mxu0 %v7837_v31  ;;  %1390 = vmatpush1.bf16.msra.mxu1 %v7840_v32  ;;  %v7921_v31 = vld [vmem:[%s11531_s1 + $0x30c] ss:$16 sps:$4 sm:$0xff]   ;;  %v1506_v32 = vrot.slane %v1504_v22, 2  ;;  %v2194_v22 = vld [vmem:[%s11533_s3 + $0xb0] sm:$0xff] }
  0x57   : > { %1338 = vmatprep.subr.bf16.mxu0 %v7845_v34  ;;  %1391 = vmatprep.subr.bf16.mxu1 %v7848_v35  ;;  %v1495_v34 = vrot.slane %v1493_v23, 1  ;;  %v1498_v35 = vrot.slane %v1496_v24, 2  ;;  %v2193_v23 = vld [vmem:[%s11533_s3 + $0xa8] sm:$0xff]  ;;  %v2192_v24 = vld [vmem:[%s11533_s3 + $0xa0] sm:$0xff] }
  0x58   : > { %1364 = vmatprep.mubr.bf16.mxu0 %v11546_v2  ;;  %1417 = vmatprep.mubr.bf16.mxu1 %v11546_v2 }
  0x5a   : > { %1339 = vmatpush1.bf16.msra.mxu0 %v7843_v36  ;;  %1392 = vmatpush1.bf16.msra.mxu1 %v7846_v37  ;;  %v7916_v36 = vld [vmem:[%s11531_s1 + $0x300] ss:$16 sps:$4 sm:$0xff]   ;;  %v7919_v37 = vld [vmem:[%s11531_s1 + $0x308] ss:$16 sps:$4 sm:$0xff]  }
  0x5b   : > { %1340 = vmatprep.subr.bf16.mxu0 %v7851_v38  ;;  %1393 = vmatprep.subr.bf16.mxu1 %v7854_v39  ;;  %v7924_v38 = vld [vmem:[%s11531_s1 + $0x4e4] ss:$16 sps:$4 sm:$0xff]   ;;  %v7927_v39 = vld [vmem:[%s11531_s1 + $0x4ec] ss:$16 sps:$4 sm:$0xff]  }
  0x5e   : > { %1341 = vmatpush1.bf16.msra.mxu0 %v7849_v40  ;;  %1394 = vmatpush1.bf16.msra.mxu1 %v7852_v41  ;;  %v1499_v40 = vor.u32 %v1498_v35, %v1495_v34  ;;  %v1507_v41 = vor.u32 %v1506_v32, %v1503_v27  ;;  %v2267_v27 = vld [vmem:[%s11533_s3 + $0x2f8] sm:$0xff]  ;;  %v2265_v32 = vld [vmem:[%s11533_s3 + $0x2e8] sm:$0xff]  ;;  %v2188_v34 = vld [vmem:[%s11533_s3 + $0x80] sm:$0xff] }
  0x5f   : > { %1342 = vmatprep.subr.bf16.mxu0 %v7857_v42  ;;  %1395 = vmatprep.subr.bf16.mxu1 %v7860_v43  ;;  %v7922_v42 = vld [vmem:[%s11531_s1 + $0x4e0] ss:$16 sps:$4 sm:$0xff]   ;;  %v7925_v43 = vld [vmem:[%s11531_s1 + $0x4e8] ss:$16 sps:$4 sm:$0xff]  }
  0x60   : > { %v2187_v35 = vld [vmem:[%s11533_s3 + $0x78] sm:$0xff] }
  0x62   : > { %1343 = vmatpush1.bf16.msra.mxu0 %v7855_v44  ;;  %1396 = vmatpush1.bf16.msra.mxu1 %v7858_v45  ;;  %v7930_v44 = vld [vmem:[%s11531_s1 + $0x4c4] ss:$16 sps:$4 sm:$0xff]   ;;  %v7933_v45 = vld [vmem:[%s11531_s1 + $0x4cc] ss:$16 sps:$4 sm:$0xff]  }
  0x63   : > { %1344 = vmatprep.subr.bf16.mxu0 %v7863_v46  ;;  %1397 = vmatprep.subr.bf16.mxu1 %v7866_v47  ;;  %v1508_v46 = vsel %vm1491_vm2, %v1499_v40, %v1507_v41  ;;  %v7928_v47 = vld [vmem:[%s11531_s1 + $0x4c0] ss:$16 sps:$4 sm:$0xff]   ;;  %v2185_v40 = vld [vmem:[%s11533_s3 + $0x68] sm:$0xff] }
  0x66   : > { %1345 = vmatpush1.bf16.msra.mxu0 %v7861_v49  ;;  %1398 = vmatpush1.bf16.msra.mxu1 %v7864_v50  ;;  %v7936_v49 = vld [vmem:[%s11531_s1 + $0x4a4] ss:$16 sps:$4 sm:$0xff]   ;;  %v7939_v50 = vld [vmem:[%s11531_s1 + $0x4ac] ss:$16 sps:$4 sm:$0xff]  }
  0x67   : > { %1346 = vmatprep.subr.bf16.mxu0 %v7869_v51  ;;  %1399 = vmatprep.subr.bf16.mxu1 %v7872_v53  ;;  %v7934_v51 = vld [vmem:[%s11531_s1 + $0x4a0] ss:$16 sps:$4 sm:$0xff]   ;;  %v7942_v53 = vld [vmem:[%s11531_s1 + $0x484] ss:$16 sps:$4 sm:$0xff]  }
  0x6a   : > { %1347 = vmatpush1.bf16.msra.mxu0 %v7867_v54  ;;  %1400 = vmatpush1.bf16.msra.mxu1 %v7870_v56  ;;  %v7945_v54 = vld [vmem:[%s11531_s1 + $0x48c] ss:$16 sps:$4 sm:$0xff]   ;;  %v7943_v56 = vld [vmem:[%s11531_s1 + $0x488] ss:$16 sps:$4 sm:$0xff]  }
  0x6b   : > { %1671 = vmatprep.subr.bf16.mxu0 %v7876_v57  ;;  %1724 = vmatprep.subr.bf16.mxu1 %v7879_v58  ;;  %v7951_v57 = vld [vmem:[%s11531_s1 + $0x46c] ss:$16 sps:$4 sm:$0xff]   ;;  %v7946_v58 = vld [vmem:[%s11531_s1 + $0x460] ss:$16 sps:$4 sm:$0xff]  }
  0x6d   : > { %1365 = vmatmul.mubr.bf16.vlgmr.msra.gmra.mxu0 %v1169_v59  ;;  %1418 = vmatmul.mubr.bf16.vlgmr.msra.gmra.mxu1 %v1169_v59  ;;  %v7954_v59 = vld [vmem:[%s11531_s1 + $0x444] ss:$16 sps:$4 sm:$0xff]  }
  0x6e   : > { %1672 = vmatpush1.bf16.msra.mxu0 %v7874_v33  ;;  %1725 = vmatpush1.bf16.msra.mxu1 %v7877_v60  ;;  %v7949_v33 = vld [vmem:[%s11531_s1 + $0x468] ss:$16 sps:$4 sm:$0xff]   ;;  %v7957_v60 = vld [vmem:[%s11531_s1 + $0x44c] ss:$16 sps:$4 sm:$0xff]  }
  0x6f   : > { %1673 = vmatprep.subr.bf16.mxu0 %v7882_v61  ;;  %1726 = vmatprep.subr.bf16.mxu1 %v7885_v62  ;;  %v7952_v61 = vld [vmem:[%s11531_s1 + $0x440] ss:$16 sps:$4 sm:$0xff]   ;;  %v7955_v62 = vld [vmem:[%s11531_s1 + $0x448] ss:$16 sps:$4 sm:$0xff]  }
  0x70   : > { %1374 = vmatprep.mubr.bf16.mxu0 %v11546_v2  ;;  %1427 = vmatprep.mubr.bf16.mxu1 %v11546_v2 }
  0x72   : > { %1674 = vmatpush1.bf16.msra.mxu0 %v7880_v63  ;;  %1727 = vmatpush1.bf16.msra.mxu1 %v7883_v0  ;;  %v7960_v63 = vld [vmem:[%s11531_s1 + $0x424] ss:$16 sps:$4 sm:$0xff]   ;;  %v7963_v0 = vld [vmem:[%s11531_s1 + $0x42c] ss:$16 sps:$4 sm:$0xff]  }
  0x73   : > { %1675 = vmatprep.subr.bf16.mxu0 %v7888_v1  ;;  %1728 = vmatprep.subr.bf16.mxu1 %v7891_v3  ;;  %v1793_v1 = vld [vmem:[%s8495_s28] sm:$0xc] }
  0x74   : > { %v7958_v3 = vld [vmem:[%s11531_s1 + $0x420] ss:$16 sps:$4 sm:$0xff]  }
  0x75   : > { %1375 = vmatmul.mubr.bf16.gmra.mxu0 %v1168_v55  ;;  %1428 = vmatmul.mubr.bf16.gmra.mxu1 %v1168_v55  ;;  %v7940_v55 = vld [vmem:[%s11531_s1 + $0x480] ss:$16 sps:$4 sm:$0xff]  }
  0x76   : > { %1676 = vmatpush1.bf16.msra.mxu0 %v7886_v4  ;;  %1729 = vmatpush1.bf16.msra.mxu1 %v7889_v5  ;;  %v7961_v4 = vld [vmem:[%s11531_s1 + $0x428] ss:$16 sps:$4 sm:$0xff]   ;;  %v7966_v5 = vld [vmem:[%s11531_s1 + $0x404] ss:$16 sps:$4 sm:$0xff]  }
  0x77   : > { %1677 = vmatprep.subr.bf16.mxu0 %v7894_v6  ;;  %1730 = vmatprep.subr.bf16.mxu1 %v7897_v7  ;;  %v7969_v6 = vld [vmem:[%s11531_s1 + $0x40c] ss:$16 sps:$4 sm:$0xff]   ;;  %v8317_v7 = vld [vmem:[%s8495_s28 + $0x4] sm:$0xf] }
  0x78   : > { %1703 = vmatprep.mubr.bf16.mxu0 %v11546_v2  ;;  %1756 = vmatprep.mubr.bf16.mxu1 %v11546_v2  ;;  %v6804_v8 = vcombine.low %v1793_v1, %v8317_v7  ;;  %v2250_v1 = vld [vmem:[%s11533_s3 + $0x270] sm:$0xff]  ;;  %v2231_v7 = vld [vmem:[%s11533_s3 + $0x1d8] sm:$0xff] }
  0x7a   : > { %1678 = vmatpush1.bf16.msra.mxu0 %v7892_v9  ;;  %1731 = vmatpush1.bf16.msra.mxu1 %v7895_v10  ;;  %v7964_v9 = vld [vmem:[%s11531_s1 + $0x400] ss:$16 sps:$4 sm:$0xff]   ;;  %v7967_v10 = vld [vmem:[%s11531_s1 + $0x408] ss:$16 sps:$4 sm:$0xff]  }
  0x7b   : > { %1679 = vmatprep.subr.bf16.mxu0 %v7900_v11  ;;  %1732 = vmatprep.subr.bf16.mxu1 %v7903_v12  ;;  %v1831_v11 = vrot.slane %v6804_v8, 2  ;;  %v1832_v12 = vrot.slane %v8813_v13, 2  ;;  %v2202_v13 = vld [vmem:[%s11533_s3 + $0xf0] sm:$0xff]  ;;  %v2247_v8 = vld [vmem:[%s11533_s3 + $0x258] sm:$0xff] }
  0x7e   : > { %1680 = vmatpush1.bf16.msra.mxu0 %v7898_v14  ;;  %1733 = vmatpush1.bf16.msra.mxu1 %v7901_v15  ;;  %v1833_v14 = vsel %vm1830_vm3, %v1831_v11, %v1832_v12  ;;  %v2203_v15 = vld [vmem:[%s11533_s3 + $0xf8] sm:$0xff]  ;;  %v2229_v11 = vld [vmem:[%s11533_s3 + $0x1c8] sm:$0xff] }
  0x7f   : > { %1681 = vmatprep.subr.bf16.mxu0 %v7906_v16  ;;  %1734 = vmatprep.subr.bf16.mxu1 %v7909_v29  ;;  %v2201_v16 = vld [vmem:[%s11533_s3 + $0xe8] sm:$0xff]  ;;  %v2200_v29 = vld [vmem:[%s11533_s3 + $0xe0] sm:$0xff] }
  0x82   : > { %1682 = vmatpush1.bf16.msra.mxu0 %v7904_v17  ;;  %1735 = vmatpush1.bf16.msra.mxu1 %v7907_v18  ;;  %v2199_v17 = vld [vmem:[%s11533_s3 + $0xd8] sm:$0xff]  ;;  %v2198_v18 = vld [vmem:[%s11533_s3 + $0xd0] sm:$0xff] }
  0x83   : > { %1683 = vmatprep.subr.bf16.mxu0 %v7912_v20  ;;  %1736 = vmatprep.subr.bf16.mxu1 %v7915_v21  ;;  %v2196_v20 = vld [vmem:[%s11533_s3 + $0xc0] sm:$0xff]  ;;  %v2195_v21 = vld [vmem:[%s11533_s3 + $0xb8] sm:$0xff] }
  0x86   : > { %1684 = vmatpush1.bf16.msra.mxu0 %v7910_v25  ;;  %1737 = vmatpush1.bf16.msra.mxu1 %v7913_v26  ;;  %v2191_v25 = vld [vmem:[%s11533_s3 + $0x98] sm:$0xff]  ;;  %v2190_v26 = vld [vmem:[%s11533_s3 + $0x90] sm:$0xff] }
  0x87   : > { %1685 = vmatprep.subr.bf16.mxu0 %v7918_v30  ;;  %1738 = vmatprep.subr.bf16.mxu1 %v7921_v31  ;;  %v2189_v30 = vld [vmem:[%s11533_s3 + $0x88] sm:$0xff]  ;;  %v2266_v31 = vld [vmem:[%s11533_s3 + $0x2f0] sm:$0xff] }
  0x8a   : > { %1686 = vmatpush1.bf16.msra.mxu0 %v7916_v36  ;;  %1739 = vmatpush1.bf16.msra.mxu1 %v7919_v37  ;;  %v2264_v36 = vld [vmem:[%s11533_s3 + $0x2e0] sm:$0xff]  ;;  %v2186_v37 = vld [vmem:[%s11533_s3 + $0x70] sm:$0xff] }
  0x8b   : > { %1996 = vmatprep.subr.bf16.mxu0 %v7924_v38  ;;  %2049 = vmatprep.subr.bf16.mxu1 %v7927_v39  ;;  %v2263_v38 = vld [vmem:[%s11533_s3 + $0x2d8] sm:$0xff]  ;;  %v2262_v39 = vld [vmem:[%s11533_s3 + $0x2d0] sm:$0xff] }
  0x8d   : > { %1704 = vmatmul.mubr.bf16.vlgmr.msra.gmra.mxu0 %v1508_v46  ;;  %1757 = vmatmul.mubr.bf16.vlgmr.msra.gmra.mxu1 %v1508_v46  ;;  %v2180_v46 = vld [vmem:[%s11533_s3 + $0x40] sm:$0xff] }
  0x8e   : > { %1997 = vmatpush1.bf16.msra.mxu0 %v7922_v42  ;;  %2050 = vmatpush1.bf16.msra.mxu1 %v7925_v43  ;;  %v2184_v42 = vld [vmem:[%s11533_s3 + $0x60] sm:$0xff]  ;;  %v2183_v43 = vld [vmem:[%s11533_s3 + $0x58] sm:$0xff] }
  0x8f   : > { %1998 = vmatprep.subr.bf16.mxu0 %v7930_v44  ;;  %2051 = vmatprep.subr.bf16.mxu1 %v7933_v45  ;;  %v2182_v44 = vld [vmem:[%s11533_s3 + $0x50] sm:$0xff]  ;;  %v2181_v45 = vld [vmem:[%s11533_s3 + $0x48] sm:$0xff] }
  0x90   : > { %1713 = vmatprep.mubr.bf16.mxu0 %v11546_v2  ;;  %1766 = vmatprep.mubr.bf16.mxu1 %v11546_v2 }
  0x92   : > { %1999 = vmatpush1.bf16.msra.mxu0 %v7928_v47  ;;  %2052 = vmatpush1.bf16.msra.mxu1 %v7931_v48  ;;  %v2260_v47 = vld [vmem:[%s11533_s3 + $0x2c0] sm:$0xff]  ;;  %v2179_v48 = vld [vmem:[%s11533_s3 + $0x38] sm:$0xff] }
  0x93   : > { %2000 = vmatprep.subr.bf16.mxu0 %v7936_v49  ;;  %2053 = vmatprep.subr.bf16.mxu1 %v7939_v50  ;;  %v2259_v49 = vld [vmem:[%s11533_s3 + $0x2b8] sm:$0xff]  ;;  %v2178_v50 = vld [vmem:[%s11533_s3 + $0x30] sm:$0xff] }
  0x95   : > { %1714 = vmatmul.mubr.bf16.gmra.mxu0 %v1507_v41  ;;  %1767 = vmatmul.mubr.bf16.gmra.mxu1 %v1507_v41  ;;  %v2261_v41 = vld [vmem:[%s11533_s3 + $0x2c8] sm:$0xff] }
  0x96   : > { %2001 = vmatpush1.bf16.msra.mxu0 %v7934_v51  ;;  %2054 = vmatpush1.bf16.msra.mxu1 %v7937_v52  ;;  %v2258_v51 = vld [vmem:[%s11533_s3 + $0x2b0] sm:$0xff]  ;;  %v2177_v52 = vld [vmem:[%s11533_s3 + $0x28] sm:$0xff] }
  0x97   : > { %2002 = vmatprep.subr.bf16.mxu0 %v7942_v53  ;;  %2055 = vmatprep.subr.bf16.mxu1 %v7945_v54  ;;  %v2257_v53 = vld [vmem:[%s11533_s3 + $0x2a8] sm:$0xff]  ;;  %v2176_v54 = vld [vmem:[%s11533_s3 + $0x20] sm:$0xff] }
  0x98   : > { %2028 = vmatprep.mubr.bf16.mxu0 %v11546_v2  ;;  %2081 = vmatprep.mubr.bf16.mxu1 %v11546_v2 }
  0x9a   : > { %2003 = vmatpush1.bf16.msra.mxu0 %v7940_v55  ;;  %2056 = vmatpush1.bf16.msra.mxu1 %v7943_v56  ;;  %v2256_v55 = vld [vmem:[%s11533_s3 + $0x2a0] sm:$0xff]  ;;  %v2175_v56 = vld [vmem:[%s11533_s3 + $0x18] sm:$0xff] }
  0x9b   : > { %2004 = vmatprep.subr.bf16.mxu0 %v7948_v28  ;;  %2057 = vmatprep.subr.bf16.mxu1 %v7951_v57  ;;  %v2255_v28 = vld [vmem:[%s11533_s3 + $0x298] sm:$0xff]  ;;  %v2174_v57 = vld [vmem:[%s11533_s3 + $0x10] sm:$0xff] }
  0x9e   : > { %2005 = vmatpush1.bf16.msra.mxu0 %v7946_v58  ;;  %2058 = vmatpush1.bf16.msra.mxu1 %v7949_v33  ;;  %v2254_v58 = vld [vmem:[%s11533_s3 + $0x290] sm:$0xff]  ;;  %v2173_v33 = vld [vmem:[%s11533_s3 + $0x8] sm:$0xff] }
  0x9f   : > { %2006 = vmatprep.subr.bf16.mxu0 %v7954_v59  ;;  %2059 = vmatprep.subr.bf16.mxu1 %v7957_v60  ;;  %v2253_v59 = vld [vmem:[%s11533_s3 + $0x288] sm:$0xff]  ;;  %v2172_v60 = vld [vmem:[%s11533_s3] sm:$0xff] }
  0xa2   : > { %2007 = vmatpush1.bf16.msra.mxu0 %v7952_v61  ;;  %2060 = vmatpush1.bf16.msra.mxu1 %v7955_v62  ;;  %v2252_v61 = vld [vmem:[%s11533_s3 + $0x280] sm:$0xff]  ;;  %v2235_v62 = vld [vmem:[%s11533_s3 + $0x1f8] sm:$0xff] }
  0xa3   : > { %2008 = vmatprep.subr.bf16.mxu0 %v7960_v63  ;;  %2061 = vmatprep.subr.bf16.mxu1 %v7963_v0  ;;  %v2251_v63 = vld [vmem:[%s11533_s3 + $0x278] sm:$0xff]  ;;  %v2234_v0 = vld [vmem:[%s11533_s3 + $0x1f0] sm:$0xff] }
  0xa6   : > { %2009 = vmatpush1.bf16.msra.mxu0 %v7958_v3  ;;  %2062 = vmatpush1.bf16.msra.mxu1 %v7961_v4  ;;  %v2233_v3 = vld [vmem:[%s11533_s3 + $0x1e8] sm:$0xff] }
  0xa7   : > { %2010 = vmatprep.subr.bf16.mxu0 %v7966_v5  ;;  %2063 = vmatprep.subr.bf16.mxu1 %v7969_v6  ;;  %v2249_v4 = vld [vmem:[%s11533_s3 + $0x268] sm:$0xff]  ;;  %v2232_v5 = vld [vmem:[%s11533_s3 + $0x1e0] sm:$0xff] }
  0xa8   : > { %v2248_v6 = vld [vmem:[%s11533_s3 + $0x260] sm:$0xff] }
  0xaa   : > { %2011 = vmatpush1.bf16.msra.mxu0 %v7964_v9  ;;  %2064 = vmatpush1.bf16.msra.mxu1 %v7967_v10  ;;  %v2230_v9 = vld [vmem:[%s11533_s3 + $0x1d0] sm:$0xff] }
  0xab   : > { %2297 = vmatprep.subr.mxu0 %v2203_v15  ;;  %2386 = vmatprep.subr.mxu1 %v2267_v27  ;;  %v2246_v10 = vld [vmem:[%s11533_s3 + $0x250] sm:$0xff]  ;;  %v2244_v15 = vld [vmem:[%s11533_s3 + $0x240] sm:$0xff]  ;;  %v2237_v27 = vld [vmem:[%s11533_s3 + $0x208] sm:$0xff] }
  0xad   : > { %2029 = vmatmul.mubr.bf16.vlgmr.msra.gmra.mxu0 %v1833_v14  ;;  %2082 = vmatmul.mubr.bf16.vlgmr.msra.gmra.mxu1 %v1833_v14  ;;  %v2228_v14 = vld [vmem:[%s11533_s3 + $0x1c0] sm:$0xff] }
  0xae   : > { %2038 = vmatprep.mubr.bf16.mxu0 %v11546_v2  ;;  %2091 = vmatprep.mubr.bf16.mxu1 %v11546_v2  ;;  %v2118_v2 = vld [vmem:[%s11532_s2] sm:$0xf] }
  0xaf   : > { %2298 = vmatpush1.msra.mxu0 %v2202_v13  ;;  %2387 = vmatpush1.msra.mxu1 %v2266_v31  ;;  %v2227_v13 = vld [vmem:[%s11533_s3 + $0x1b8] sm:$0xff]  ;;  %v2236_v31 = vld [vmem:[%s11533_s3 + $0x200] sm:$0xff] }
  0xb0   : > { %2299 = vmatprep.subr.mxu0 %v2201_v16  ;;  %2388 = vmatprep.subr.mxu1 %v2265_v32  ;;  %v2243_v16 = vld [vmem:[%s11533_s3 + $0x238] sm:$0xff] }
  0xb1   : > { %2300 = vmatpush1.msra.mxu0 %v2200_v29  ;;  %2389 = vmatpush1.msra.mxu1 %v2264_v36  ;;  %v2226_v29 = vld [vmem:[%s11533_s3 + $0x1b0] sm:$0xff]  ;;  %v2219_v32 = vld [vmem:[%s11533_s3 + $0x178] sm:$0xff] }
  0xb2   : > { %2301 = vmatprep.subr.mxu0 %v2199_v17  ;;  %2390 = vmatprep.subr.mxu1 %v2263_v38  ;;  %v2242_v17 = vld [vmem:[%s11533_s3 + $0x230] sm:$0xff]  ;;  %v2281_v38 = vld [vmem:[%s11533_s3 + $0x368] sm:$0xff] }
  0xb3   : > { %2302 = vmatpush1.msra.mxu0 %v2198_v18  ;;  %2391 = vmatpush1.msra.mxu1 %v2262_v39  ;;  %v2225_v18 = vld [vmem:[%s11533_s3 + $0x1a8] sm:$0xff]  ;;  %v2282_v36 = vld [vmem:[%s11533_s3 + $0x370] sm:$0xff]  ;;  %v2216_v39 = vld [vmem:[%s11533_s3 + $0x160] sm:$0xff] }
  0xb4   : > { %2303 = vmatprep.subr.mxu0 %v2197_v19  ;;  %2392 = vmatprep.subr.mxu1 %v2261_v41  ;;  %v2241_v19 = vld [vmem:[%s11533_s3 + $0x228] sm:$0xff]  ;;  %v2215_v41 = vld [vmem:[%s11533_s3 + $0x158] sm:$0xff] }
  0xb5   : > { %2039 = vmatmul.mubr.bf16.gmra.mxu0 %v1832_v12  ;;  %2092 = vmatmul.mubr.bf16.gmra.mxu1 %v1832_v12  ;;  %v2245_v12 = vld [vmem:[%s11533_s3 + $0x248] sm:$0xff] }
  0xb6   : > { %2304 = vmatpush1.msra.mxu0 %v2196_v20  ;;  %2393 = vmatpush1.msra.mxu1 %v2260_v47  ;;  %v2224_v20 = vld [vmem:[%s11533_s3 + $0x1a0] sm:$0xff] }
  0xb7   : > { %2305 = vmatprep.subr.mxu0 %v2195_v21  ;;  %2394 = vmatprep.subr.mxu1 %v2259_v49  ;;  %v2240_v21 = vld [vmem:[%s11533_s3 + $0x220] sm:$0xff]  ;;  %v2211_v49 = vld [vmem:[%s11533_s3 + $0x138] sm:$0xff] }
  0xb8   : > { %2306 = vmatpush1.msra.mxu0 %v2194_v22  ;;  %2395 = vmatpush1.msra.mxu1 %v2258_v51  ;;  %v2223_v22 = vld [vmem:[%s11533_s3 + $0x198] sm:$0xff]  ;;  %v2212_v47 = vld [vmem:[%s11533_s3 + $0x140] sm:$0xff]  ;;  %v2210_v51 = vld [vmem:[%s11533_s3 + $0x130] sm:$0xff] }
  0xb9   : > { %2307 = vmatprep.subr.mxu0 %v2193_v23  ;;  %2396 = vmatprep.subr.mxu1 %v2257_v53  ;;  %v2239_v23 = vld [vmem:[%s11533_s3 + $0x218] sm:$0xff]  ;;  %v2209_v53 = vld [vmem:[%s11533_s3 + $0x128] sm:$0xff] }
  0xba   : > { %2308 = vmatpush1.msra.mxu0 %v2192_v24  ;;  %2397 = vmatpush1.msra.mxu1 %v2256_v55  ;;  %v2222_v24 = vld [vmem:[%s11533_s3 + $0x190] sm:$0xff]  ;;  %v2208_v55 = vld [vmem:[%s11533_s3 + $0x120] sm:$0xff] }
  0xbb   : > { %2309 = vmatprep.subr.mxu0 %v2191_v25  ;;  %2398 = vmatprep.subr.mxu1 %v2255_v28  ;;  %v2238_v25 = vld [vmem:[%s11533_s3 + $0x210] sm:$0xff]  ;;  %v2207_v28 = vld [vmem:[%s11533_s3 + $0x118] sm:$0xff] }
  0xbc   : > { %2310 = vmatpush1.msra.mxu0 %v2190_v26  ;;  %2399 = vmatpush1.msra.mxu1 %v2254_v58  ;;  %v2221_v26 = vld [vmem:[%s11533_s3 + $0x188] sm:$0xff]  ;;  %v2206_v58 = vld [vmem:[%s11533_s3 + $0x110] sm:$0xff] }
  0xbd   : > { %2311 = vmatprep.subr.mxu0 %v2189_v30  ;;  %2400 = vmatprep.subr.mxu1 %v2253_v59  ;;  %v2220_v30 = vld [vmem:[%s11533_s3 + $0x180] sm:$0xff]  ;;  %v2205_v59 = vld [vmem:[%s11533_s3 + $0x108] sm:$0xff] }
  0xbe   : > { %2312 = vmatpush1.msra.mxu0 %v2188_v34  ;;  %2401 = vmatpush1.msra.mxu1 %v2252_v61  ;;  %v2283_v34 = vld [vmem:[%s11533_s3 + $0x378] sm:$0xff] }
  0xbf   : > { %2313 = vmatprep.subr.mxu0 %v2187_v35  ;;  %2402 = vmatprep.subr.mxu1 %v2251_v63  ;;  %v2218_v35 = vld [vmem:[%s11533_s3 + $0x170] sm:$0xff]  ;;  %v2268_v63 = vld [vmem:[%s11533_s3 + $0x300] sm:$0xff] }
  0xc0   : > { %2314 = vmatpush1.msra.mxu0 %v2186_v37  ;;  %2403 = vmatpush1.msra.mxu1 %v2250_v1  ;;  %v2217_v37 = vld [vmem:[%s11533_s3 + $0x168] sm:$0xff]  ;;  %v6936_v1 = vld [vmem:[%s11533_s3 + $0x678] sm:$0xff] }
  0xc1   : > { %2315 = vmatprep.subr.mxu0 %v2185_v40  ;;  %2404 = vmatprep.subr.mxu1 %v2249_v4  ;;  %v2280_v40 = vld [vmem:[%s11533_s3 + $0x360] sm:$0xff] }
  0xc2   : > { %2316 = vmatpush1.msra.mxu0 %v2184_v42  ;;  %2405 = vmatpush1.msra.mxu1 %v2248_v6  ;;  %v2279_v42 = vld [vmem:[%s11533_s3 + $0x358] sm:$0xff] }
  0xc3   : > { %2317 = vmatprep.subr.mxu0 %v2183_v43  ;;  %2406 = vmatprep.subr.mxu1 %v2247_v8  ;;  %v2214_v43 = vld [vmem:[%s11533_s3 + $0x150] sm:$0xff] }
  0xc4   : > { %2318 = vmatpush1.msra.mxu0 %v2182_v44  ;;  %2407 = vmatpush1.msra.mxu1 %v2246_v10  ;;  %v2278_v44 = vld [vmem:[%s11533_s3 + $0x350] sm:$0xff] }
  0xc5   : > { %2319 = vmatprep.subr.mxu0 %v2181_v45  ;;  %2408 = vmatprep.subr.mxu1 %v2245_v12  ;;  %v2213_v45 = vld [vmem:[%s11533_s3 + $0x148] sm:$0xff] }
  0xc6   : > { %2320 = vmatpush1.msra.mxu0 %v2180_v46  ;;  %2409 = vmatpush1.msra.mxu1 %v2244_v15  ;;  %v2277_v46 = vld [vmem:[%s11533_s3 + $0x348] sm:$0xff] }
  0xc7   : > { %2321 = vmatprep.subr.mxu0 %v2179_v48  ;;  %2410 = vmatprep.subr.mxu1 %v2243_v16  ;;  %v2276_v48 = vld [vmem:[%s11533_s3 + $0x340] sm:$0xff] }
  0xc8   : > { %2322 = vmatpush1.msra.mxu0 %v2178_v50  ;;  %2411 = vmatpush1.msra.mxu1 %v2242_v17  ;;  %v2275_v50 = vld [vmem:[%s11533_s3 + $0x338] sm:$0xff] }
  0xc9   : > { %2323 = vmatprep.subr.mxu0 %v2177_v52  ;;  %2412 = vmatprep.subr.mxu1 %v2241_v19  ;;  %v2274_v52 = vld [vmem:[%s11533_s3 + $0x330] sm:$0xff] }
  0xca   : > { %2324 = vmatpush1.msra.mxu0 %v2176_v54  ;;  %2413 = vmatpush1.msra.mxu1 %v2240_v21  ;;  %v2273_v54 = vld [vmem:[%s11533_s3 + $0x328] sm:$0xff] }
  0xcb   : > { %2325 = vmatprep.subr.mxu0 %v2175_v56  ;;  %2414 = vmatprep.subr.mxu1 %v2239_v23  ;;  %v2272_v56 = vld [vmem:[%s11533_s3 + $0x320] sm:$0xff] }
  0xcc   : > { %2326 = vmatpush1.msra.mxu0 %v2174_v57  ;;  %2415 = vmatpush1.msra.mxu1 %v2238_v25  ;;  %v2271_v57 = vld [vmem:[%s11533_s3 + $0x318] sm:$0xff] }
  0xcd   : > { %2327 = vmatprep.subr.mxu0 %v2173_v33  ;;  %2416 = vmatprep.subr.mxu1 %v2237_v27  ;;  %v2270_v33 = vld [vmem:[%s11533_s3 + $0x310] sm:$0xff] }
  0xce   : > { %2328 = vmatpush1.msra.mxu0 %v2172_v60  ;;  %2417 = vmatpush1.msra.mxu1 %v2236_v31  ;;  %v2269_v60 = vld [vmem:[%s11533_s3 + $0x308] sm:$0xff] }
  0xcf   : > { %2329 = vmatprep.subr.mxu0 %v2235_v62  ;;  %2434 = vmatprep.subr.mxu1 %v2283_v34  ;;  %v2204_v62 = vld [vmem:[%s11533_s3 + $0x100] sm:$0xff] }
  0xd0   : > { %2330 = vmatpush2.msra.mxu0 %v2234_v0  ;;  %2435 = vmatpush2.msra.mxu1 %v2282_v36  ;;  %v6872_v0 = vld [vmem:[%s11533_s3 + $0x478] sm:$0xff] }
  0xd1   : > { %2331 = vmatprep.subr.mxu0 %v2233_v3  ;;  %2436 = vmatprep.subr.mxu1 %v2281_v38 }
  0xd2   : > { %2332 = vmatpush2.msra.mxu0 %v2232_v5  ;;  %2437 = vmatpush2.msra.mxu1 %v2280_v40 }
  0xd3   : > { %2333 = vmatprep.subr.mxu0 %v2231_v7  ;;  %2438 = vmatprep.subr.mxu1 %v2279_v42 }
  0xd4   : > { %2334 = vmatpush2.msra.mxu0 %v2230_v9  ;;  %2439 = vmatpush2.msra.mxu1 %v2278_v44 }
  0xd5   : > { %2335 = vmatprep.subr.mxu0 %v2229_v11  ;;  %2440 = vmatprep.subr.mxu1 %v2277_v46 }
  0xd6   : > { %2336 = vmatpush2.msra.mxu0 %v2228_v14  ;;  %2441 = vmatpush2.msra.mxu1 %v2276_v48 }
  0xd7   : > { %2337 = vmatprep.subr.mxu0 %v2227_v13  ;;  %2442 = vmatprep.subr.mxu1 %v2275_v50 }
  0xd8   : > { %2338 = vmatpush2.msra.mxu0 %v2226_v29  ;;  %2443 = vmatpush2.msra.mxu1 %v2274_v52 }
  0xd9   : > { %2339 = vmatprep.subr.mxu0 %v2225_v18  ;;  %2444 = vmatprep.subr.mxu1 %v2273_v54 }
  0xda   : > { %2340 = vmatpush2.msra.mxu0 %v2224_v20  ;;  %2445 = vmatpush2.msra.mxu1 %v2272_v56 }
  0xdb   : > { %2341 = vmatprep.subr.mxu0 %v2223_v22  ;;  %2446 = vmatprep.subr.mxu1 %v2271_v57 }
  0xdc   : > { %2342 = vmatpush2.msra.mxu0 %v2222_v24  ;;  %2447 = vmatpush2.msra.mxu1 %v2270_v33  ;;  %v2120_v33 = vlaneseq }
  0xdd   : > { %2343 = vmatprep.subr.mxu0 %v2221_v26  ;;  %2448 = vmatprep.subr.mxu1 %v2269_v60 }
  0xde   : > { %2344 = vmatpush2.msra.mxu0 %v2220_v30  ;;  %2449 = vmatpush2.msra.mxu1 %v2268_v63 }
  0xdf   : > { %2345 = vmatprep.subr.mxu0 %v2219_v32  ;;  %2588 = vmatprep.subr.mxu1 %v6872_v0 }
  0xe0   : > { %2346 = vmatpush2.msra.mxu0 %v2218_v35 }
  0xe1   : > { %2347 = vmatprep.subr.mxu0 %v2217_v37 }
  0xe2   : > { %2348 = vmatpush2.msra.mxu0 %v2216_v39 }
  0xe3   : > { %2349 = vmatprep.subr.mxu0 %v2215_v41 }
  0xe4   : > { %2350 = vmatpush2.msra.mxu0 %v2214_v43 }
  0xe5   : > { %2351 = vmatprep.subr.mxu0 %v2213_v45 }
  0xe6   : > { %2352 = vmatpush2.msra.mxu0 %v2212_v47 }
  0xe7   : > { %2353 = vmatprep.subr.mxu0 %v2211_v49 }
  0xe8   : > { %2354 = vmatpush2.msra.mxu0 %v2210_v51 }
  0xe9   : > { %2355 = vmatprep.subr.mxu0 %v2209_v53 }
  0xea   : > { %2356 = vmatpush2.msra.mxu0 %v2208_v55 }
  0xeb   : > { %2357 = vmatprep.subr.mxu0 %v2207_v28 }
  0xec   : > { %2358 = vmatpush2.msra.mxu0 %v2206_v58 }
  0xed   : > { %v9298_v61 = vpop.f32.mrf.mxu0  ;;  %2359 = vmatprep.subr.mxu0 %v2205_v59  ;;  %v9312_v3 = vpop.f32.mrf.mxu1 }
  0xee   : > { %2360 = vmatpush2.msra.mxu0 %v2204_v62  ;;  %v9382_v62 = vshrl.u32 %v2120_v33, 7 }
  0xef   : > { %2677 = vmatprep.subr.mxu0 %v6936_v1  ;;  %v9314_v4 = vpop.f32.mrf.mxu0  ;;  %v9316_v5 = vpop.f32.mrf.mxu1 }
  0xf0   : > { %v9389_v1 = vsub.s32 0, %v9382_v62 }
  0xf1   : > { %v9318_v6 = vpop.f32.mrf.mxu0  ;;  %v9320_v7 = vpop.f32.mrf.mxu1 }
  0xf2   : > { %11564 = vst [vmem:[#allocation15_spill] sm:$0xff] %v9389_v1 }
  0xf3   : > { %v9322_v8 = vpop.f32.mrf.mxu0  ;;  %v9324_v9 = vpop.f32.mrf.mxu1 }
  0xf5   : > { %v9326_v10 = vpop.f32.mrf.mxu0  ;;  %v9328_v11 = vpop.f32.mrf.mxu1 }
  0xf7   : > { %v9330_v12 = vpop.f32.mrf.mxu0  ;;  %v9332_v14 = vpop.f32.mrf.mxu1 }
  0xf9   : > { %v9334_v15 = vpop.f32.mrf.mxu0  ;;  %v9336_v13 = vpop.f32.mrf.mxu1 }
  0xfb   : > { %v9338_v16 = vpop.f32.mrf.mxu0  ;;  %v9340_v29 = vpop.f32.mrf.mxu1 }
 0x10d   : > { %v1057_v17 = vpop.f32.mrf.mxu0  ;;  %v1110_v18 = vpop.f32.mrf.mxu1 }
 0x10f   : > { %v1059_v19 = vpop.f32.mrf.mxu0  ;;  %v1112_v20 = vpop.f32.mrf.mxu1 }
 0x111   : > { %v1061_v21 = vpop.f32.mrf.mxu0  ;;  %v1114_v22 = vpop.f32.mrf.mxu1 }
 0x113   : > { %v1063_v23 = vpop.f32.mrf.mxu0  ;;  %v1116_v24 = vpop.f32.mrf.mxu1 }
 0x115   : > { %v1067_v25 = vpop.f32.mrf.mxu0  ;;  %v1120_v26 = vpop.f32.mrf.mxu1 }
 0x117   : > { %v1069_v27 = vpop.f32.mrf.mxu0  ;;  %v9342_v30 = vpop.f32.mrf.mxu1 }
 0x119   : > { %v9344_v31 = vpop.f32.mrf.mxu0  ;;  %v9346_v32 = vpop.f32.mrf.mxu1 }
 0x11b   : > { %v9348_v34 = vpop.f32.mrf.mxu0  ;;  %v9350_v35 = vpop.f32.mrf.mxu1 }
 0x12d   : > { %v1366_v36 = vpop.f32.mrf.mxu0  ;;  %v1419_v37 = vpop.f32.mrf.mxu1 }
 0x12f   : > { %v1368_v38 = vpop.f32.mrf.mxu0  ;;  %v1421_v39 = vpop.f32.mrf.mxu1 }
 0x131   : > { %v9352_v40 = vpop.f32.mrf.mxu0  ;;  %v9354_v41 = vpop.f32.mrf.mxu1 }
 0x133   : > { %v9356_v42 = vpop.f32.mrf.mxu0  ;;  %v9358_v43 = vpop.f32.mrf.mxu1 }
 0x135   : > { %v9360_v44 = vpop.f32.mrf.mxu0  ;;  %v9362_v45 = vpop.f32.mrf.mxu1 }
 0x136   : > { %11553 = vst [vmem:[#allocation4_spill] sm:$0xff] %v9362_v45 }
 0x137   : > { %v9364_v46 = vpop.f32.mrf.mxu0  ;;  %v9366_v47 = vpop.f32.mrf.mxu1 }
 0x138   : > { %11554 = vst [vmem:[#allocation5_spill] sm:$0xff] %v9364_v46  ;;  %11555 = vst [vmem:[#allocation6_spill] sm:$0xff] %v9366_v47  ;;  %v1060_v46 = vadd.f32 %v1059_v19, %v9314_v4  ;;  %v1070_v4 = vadd.f32 %v1069_v27, %v9330_v12 }
 0x139   : > { %v9368_v48 = vpop.f32.mrf.mxu0  ;;  %v9370_v49 = vpop.f32.mrf.mxu1 }
 0x13a   : > { %11556 = vst [vmem:[#allocation7_spill] sm:$0xff] %v9368_v48  ;;  %11557 = vst [vmem:[#allocation8_spill] sm:$0xff] %v9370_v49  ;;  %v11550_v49 = vsub.s32 2, %v9382_v62  ;;  %v9396_v48 = vsub.s32 1, %v9382_v62 }
 0x13b   : > { %v9372_v50 = vpop.f32.mrf.mxu0  ;;  %v9374_v51 = vpop.f32.mrf.mxu1 }
 0x13c   : > { %11558 = vst [vmem:[#allocation9_spill] sm:$0xff] %v9372_v50  ;;  %11559 = vst [vmem:[#allocation10_spill] sm:$0xff] %v9374_v51  ;;  %v1111_v51 = vadd.f32 %v1110_v18, %v9312_v3  ;;  %v9410_v50 = vrot.slane %v2118_v2, %v11550_v49  ;;  %v9413_v47 = vrot.slane %v2118_v2, %v9396_v48 }
 0x13d   : > { %11565 = vst [vmem:[#allocation16_spill] sm:$0xff] %v9396_v48  ;;  %v1117_v18 = vadd.f32 %v1116_v24, %v9324_v9  ;;  %v1068_v49 = vadd.f32 %v1067_v25, %v9326_v10  ;;  %v1121_v48 = vadd.f32 %v1120_v26, %v9328_v11  ;;  %v9434_v9 = vadd.f32 %v9344_v31, %v9334_v15 }
 0x13e   : > { %v9438_v10 = vadd.f32 %v9346_v32, %v9336_v13  ;;  %v1074_v11 = vadd.f32 %v9348_v34, %v9338_v16 }
 0x13f   : > { %v1445_v31 = vadd.f32 %v9358_v43, %v1117_v18  ;;  %v1446_v16 = vadd.f32 %v9360_v44, %v1068_v49  ;;  %v11568_v44 = vld [vmem:[#allocation4_spill] sm:$0xff]  ;;  %v11569_v49 = vld [vmem:[#allocation5_spill] sm:$0xff] }
 0x140   : > { %v6935_v18 = vld [vmem:[%s11533_s3 + $0x670] sm:$0xff] }
 0x14d   : > { %v1705_v52 = vpop.f32.mrf.mxu0  ;;  %v1758_v53 = vpop.f32.mrf.mxu1 }
 0x14f   : > { %v1707_v54 = vpop.f32.mrf.mxu0  ;;  %v1760_v55 = vpop.f32.mrf.mxu1 }
 0x151   : > { %v1709_v56 = vpop.f32.mrf.mxu0  ;;  %v1762_v28 = vpop.f32.mrf.mxu1 }
 0x153   : > { %v1711_v57 = vpop.f32.mrf.mxu0  ;;  %v9376_v58 = vpop.f32.mrf.mxu1 }
 0x155   : > { %v9378_v59 = vpop.f32.mrf.mxu0  ;;  %v9380_v60 = vpop.f32.mrf.mxu1 }
 0x156   : > { %11560 = vst [vmem:[#allocation11_spill] sm:$0xff] %v9378_v59  ;;  %11561 = vst [vmem:[#allocation12_spill] sm:$0xff] %v9380_v60  ;;  %v2134_v60 = vsub.s32 3, %v9382_v62 }
 0x157   : > { %v9384_v63 = vpop.f32.mrf.mxu0  ;;  %v9386_v0 = vpop.f32.mrf.mxu1 }
 0x158   : > { %11562 = vst [vmem:[#allocation13_spill] sm:$0xff] %v9384_v63  ;;  %11563 = vst [vmem:[#allocation14_spill] sm:$0xff] %v9386_v0  ;;  %v9404_v0 = vrot.slane %v2118_v2, %v9389_v1  ;;  %v1058_v63 = vadd.f32 %v1057_v17, %v9298_v61  ;;  %v9418_v45 = vrot.slane %v2118_v2, %v2134_v60 }
 0x159   : > { %v9399_v33 = vpop.f32.mrf.mxu0  ;;  %v9401_v59 = vpop.f32.mrf.mxu1  ;;  %v1115_v1 = vadd.f32 %v1114_v22, %v9320_v7  ;;  %v1064_v61 = vadd.f32 %v1063_v23, %v9322_v8  ;;  %v1440_v17 = vadd.f32 %v1419_v37, %v1111_v51  ;;  %v1439_v2 = vadd.f32 %v1368_v38, %v1060_v46 }
 0x15a   : > { %11566 = vst [vmem:[#allocation17_spill] sm:$0xff] %v9399_v33  ;;  %11567 = vst [vmem:[#allocation18_spill] sm:$0xff] %v9401_v59  ;;  %v1113_v33 = vadd.f32 %v1112_v20, %v9316_v5  ;;  %v1062_v59 = vadd.f32 %v1061_v21, %v9318_v6  ;;  %v1438_v3 = vadd.f32 %v1366_v36, %v1058_v63  ;;  %v11571_v63 = vld [vmem:[#allocation9_spill] sm:$0xff] }
 0x15b   : > { %v9426_v19 = vpop.f32.mrf.mxu0  ;;  %v9428_v5 = vpop.f32.mrf.mxu1  ;;  %v1779_v7 = vadd.f32 %v1758_v53, %v1440_v17  ;;  %v1123_v8 = vadd.f32 %v9342_v30, %v9332_v14  ;;  %v1778_v22 = vadd.f32 %v1707_v54, %v1439_v2  ;;  %v1127_v14 = vadd.f32 %v9350_v35, %v9340_v29 }
 0x15c   : > { %v1441_v6 = vadd.f32 %v1421_v39, %v1113_v33  ;;  %v1777_v20 = vadd.f32 %v1705_v52, %v1438_v3  ;;  %v1442_v26 = vadd.f32 %v9352_v40, %v1062_v59  ;;  %v1444_v15 = vadd.f32 %v9354_v41, %v1115_v1  ;;  %v11570_v59 = vld [vmem:[#allocation6_spill] sm:$0xff] }
 0x15d   : > { %v1443_v27 = vadd.f32 %v9356_v42, %v1064_v61  ;;  %v1784_v40 = vadd.f32 %v9376_v58, %v1445_v31  ;;  %v1448_v46 = vadd.f32 %v11568_v44, %v1121_v48  ;;  %v1447_v51 = vadd.f32 %v11569_v49, %v1070_v4  ;;  %v11572_v33 = vld [vmem:[#allocation10_spill] sm:$0xff]  ;;  %v11573_v4 = vld [vmem:[#allocation11_spill] sm:$0xff] }
 0x15e   : > { %v1780_v23 = vadd.f32 %v1760_v55, %v1441_v6  ;;  %v1781_v36 = vadd.f32 %v1709_v56, %v1442_v26  ;;  %v1783_v37 = vadd.f32 %v1762_v28, %v1444_v15  ;;  %v1449_v60 = vadd.f32 %v11570_v59, %v1123_v8  ;;  %v6871_v8 = vld [vmem:[%s11533_s3 + $0x470] sm:$0xff]  ;;  %v6870_v26 = vld [vmem:[%s11533_s3 + $0x468] sm:$0xff]  ;;  %v6933_v15 = vld [vmem:[%s11533_s3 + $0x660] sm:$0xff] }
 0x15f   : > { %v1782_v38 = vadd.f32 %v1711_v57, %v1443_v27  ;;  %v1451_v1 = vadd.f32 %v11571_v63, %v1074_v11  ;;  %v1453_v61 = vadd.f32 %v11572_v33, %v1127_v14  ;;  %v1785_v2 = vadd.f32 %v11573_v4, %v1446_v16  ;;  %v6934_v11 = vld [vmem:[%s11533_s3 + $0x668] sm:$0xff]  ;;  %v11576_v27 = vld [vmem:[#allocation12_spill] sm:$0xff]  ;;  %v6929_v4 = vld [vmem:[%s11533_s3 + $0x640] sm:$0xff] }
 0x160   : > { %v6867_v63 = vld [vmem:[%s11533_s3 + $0x450] sm:$0xff] }
 0x161   : > { %v11579_v33 = vld [vmem:[#allocation17_spill] sm:$0xff] }
 0x16d   : > { %v2030_v12 = vpop.f32.mrf.mxu0  ;;  %v2083_v21 = vpop.f32.mrf.mxu1 }
 0x16e   : > { %v2102_v24 = vadd.f32 %v2030_v12, %v1777_v20  ;;  %v2104_v25 = vadd.f32 %v2083_v21, %v1779_v7  ;;  %v11574_v12 = vld [vmem:[#allocation13_spill] sm:$0xff] }
 0x16f   : > { %v2032_v13 = vpop.f32.mrf.mxu0  ;;  %v2085_v30 = vpop.f32.mrf.mxu1  ;;  %v1786_v21 = vadd.f32 %v11574_v12, %v1447_v51  ;;  %v6932_v51 = vld [vmem:[%s11533_s3 + $0x658] sm:$0xff] }
 0x170   : > { %v2103_v32 = vadd.f32 %v2032_v13, %v1778_v22  ;;  %v2105_v34 = vadd.f32 %v2085_v30, %v1780_v23  ;;  %v9450_v39 = vadd.f32 %v9404_v0, %v2102_v24  ;;  %v9454_v41 = vadd.f32 %v9410_v50, %v2104_v25  ;;  %v11575_v22 = vld [vmem:[#allocation14_spill] sm:$0xff] }
 0x171   : > { %v2034_v29 = vpop.f32.mrf.mxu0  ;;  %v2087_v35 = vpop.f32.mrf.mxu1  ;;  %v1788_v23 = vadd.f32 %v11575_v22, %v1449_v60  ;;  %v1787_v13 = vadd.f32 %v11576_v27, %v1448_v46  ;;  %v1790_v46 = vadd.f32 %v9426_v19, %v1451_v1  ;;  %v6930_v1 = vld [vmem:[%s11533_s3 + $0x648] sm:$0xff] }
 0x172   : > { %v9457_v42 = vadd.f32 %v9413_v47, %v2103_v32  ;;  %v9460_v43 = vadd.f32 %v9418_v45, %v2105_v34  ;;  %v2106_v52 = vadd.f32 %v2034_v29, %v1781_v36  ;;  %v2108_v53 = vadd.f32 %v2087_v35, %v1783_v37  ;;  %v6869_v32 = vld [vmem:[%s11533_s3 + $0x460] sm:$0xff]  ;;  %v6868_v35 = vld [vmem:[%s11533_s3 + $0x458] sm:$0xff] }
 0x173   : > { %v2036_v54 = vpop.f32.mrf.mxu0  ;;  %v2089_v55 = vpop.f32.mrf.mxu1  ;;  %v2156_v48 = vmax.f32 %v9450_v39, 0.0  ;;  %v2158_v6 = vmax.f32 %v9454_v41, 0.0  ;;  %v6882_v41 = vld [vmem:[%s11533_s3 + $0x4c8] sm:$0xff]  ;;  %v8327_v39 = vmov 0.0  }
 0x174   : > { %v2157_v56 = vmax.f32 %v9457_v42, 0.0  ;;  %v2159_v28 = vmax.f32 %v9460_v43, 0.0  ;;  %v2107_v57 = vadd.f32 %v2036_v54, %v1782_v38  ;;  %v2109_v58 = vadd.f32 %v2089_v55, %v1784_v40  ;;  %v11577_v40 = vld [vmem:[#allocation7_spill] sm:$0xff]  ;;  %v6919_v42 = vld [vmem:[%s11533_s3 + $0x5f0] sm:$0xff]  ;;  %v6853_v43 = vld [vmem:[%s11533_s3 + $0x3e0] sm:$0xff] }
 0x175   : > { %v2040_v3 = vpop.f32.mrf.mxu0  ;;  %v2093_v17 = vpop.f32.mrf.mxu1  ;;  %v9492_v24 = vadd.f32 %v9404_v0, %v2106_v52  ;;  %v9507_v30 = vadd.f32 %v9410_v50, %v2108_v53  ;;  %v1450_v44 = vadd.f32 %v11577_v40, %v9434_v9  ;;  %v1792_v52 = vadd.f32 %v9428_v5, %v1453_v61  ;;  %v11578_v5 = vld [vmem:[#allocation8_spill] sm:$0xff]  ;;  %v6860_v40 = vld [vmem:[%s11533_s3 + $0x418] sm:$0xff] }
 0x176   : > { %v9476_v20 = vadd.f32 %v9413_v47, %v2107_v57  ;;  %v9479_v7 = vadd.f32 %v9418_v45, %v2109_v58  ;;  %2361 = vmatprep.mubr.f32.mxu0 %v2157_v56  ;;  %6837 = vmatprep.mubr.msk.f32.mxu1 %vm2284_vm4, %v2159_v28  ;;  %v2110_v34 = vadd.f32 %v2040_v3, %v1785_v2  ;;  %v6931_v57 = vld [vmem:[%s11533_s3 + $0x650] sm:$0xff]  ;;  %v11580_v2 = vld [vmem:[#allocation18_spill] sm:$0xff] }
 0x177   : > { %v2042_v25 = vpop.f32.mrf.mxu0  ;;  %v2095_v14 = vpop.f32.mrf.mxu1  ;;  %2362 = vmatmul.mubr.f32.vlgmr.msra.gmra.mxu0 %v2156_v48  ;;  %2451 = vmatmul.mubr.f32.vlgmr.msra.gmra.mxu1 %v2158_v6  ;;  %v2112_v49 = vadd.f32 %v2093_v17, %v1787_v13  ;;  %v2160_v53 = vmax.f32 %v9492_v24, 0.0  ;;  %v1452_v58 = vadd.f32 %v11578_v5, %v9438_v10  ;;  %v2162_v59 = vmax.f32 %v9507_v30, 0.0  ;;  %v6856_v5 = vld [vmem:[%s11533_s3 + $0x3f8] sm:$0xff]  ;;  %v6878_v30 = vld [vmem:[%s11533_s3 + $0x4a8] sm:$0xff] }
 0x178   : > { %v2161_v31 = vmax.f32 %v9476_v20, 0.0  ;;  %v2163_v16 = vmax.f32 %v9479_v7, 0.0  ;;  %2678 = vmatpush1.msra.mxu0 %v6935_v18  ;;  %v2111_v36 = vadd.f32 %v2042_v25, %v1786_v21  ;;  %v2113_v37 = vadd.f32 %v2095_v14, %v1788_v23  ;;  %2589 = vmatpush1.msra.mxu1 %v6871_v8  ;;  %v6866_v18 = vld [vmem:[%s11533_s3 + $0x448] sm:$0xff]  ;;  %v6865_v21 = vld [vmem:[%s11533_s3 + $0x440] sm:$0xff]  ;;  %v6864_v25 = vld [vmem:[%s11533_s3 + $0x438] sm:$0xff] }
 0x179   : > { %2679 = vmatprep.subr.mxu0 %v6934_v11  ;;  %v2044_v38 = vpop.f32.mrf.mxu0  ;;  %v2097_v29 = vpop.f32.mrf.mxu1  ;;  %2590 = vmatprep.subr.mxu1 %v6870_v26  ;;  %v1789_v61 = vadd.f32 %v11579_v33, %v1450_v44  ;;  %v9552_v10 = vadd.f32 %v9404_v0, %v2110_v34  ;;  %v1791_v8 = vadd.f32 %v11580_v2, %v1452_v58  ;;  %v6920_v58 = vld [vmem:[%s11533_s3 + $0x5f8] sm:$0xff]  ;;  %v6849_v2 = vld [vmem:[%s11533_s3 + $0x3c0] sm:$0xff]  ;;  %v7978_v20 = vld [vmem:[%s11535_s5 + $0x1e8] ss:$12 sps:$4 sm:$0xff]  }
 0x17a   : > { %2680 = vmatpush1.msra.mxu0 %v6933_v15  ;;  %v9528_v54 = vadd.f32 %v9413_v47, %v2111_v36  ;;  %v9531_v55 = vadd.f32 %v9418_v45, %v2113_v37  ;;  %2591 = vmatpush1.msra.mxu1 %v6869_v32  ;;  %v9565_v11 = vadd.f32 %v9410_v50, %v2112_v49  ;;  %v6928_v15 = vld [vmem:[%s11533_s3 + $0x638] sm:$0xff]  ;;  %v6926_v32 = vld [vmem:[%s11533_s3 + $0x628] sm:$0xff] }
 0x17b   : > { %2367 = vmatprep.mubr.f32.mxu0 %v2161_v31  ;;  %v2046_v19 = vpop.f32.mrf.mxu0  ;;  %v2099_v9 = vpop.f32.mrf.mxu1  ;;  %6838 = vmatprep.mubr.msk.f32.mxu1 %vm2284_vm4, %v2163_v16  ;;  %v2114_v22 = vadd.f32 %v2044_v38, %v1789_v61  ;;  %v2116_v14 = vadd.f32 %v2097_v29, %v1791_v8  ;;  %v2164_v27 = vmax.f32 %v9552_v10, 0.0  ;;  %v6862_v37 = vld [vmem:[%s11533_s3 + $0x428] sm:$0xff]  ;;  %v6925_v38 = vld [vmem:[%s11533_s3 + $0x620] sm:$0xff]  ;;  %v6916_v33 = vld [vmem:[%s11533_s3 + $0x5d8] sm:$0xff] }
 0x17c   : > { %2592 = vmatprep.subr.mxu1 %v6868_v35  ;;  %v2115_v60 = vadd.f32 %v2046_v19, %v1790_v46  ;;  %v2165_v3 = vmax.f32 %v9528_v54, 0.0  ;;  %2681 = vmatprep.subr.mxu0 %v6932_v51  ;;  %v2117_v17 = vadd.f32 %v2099_v9, %v1792_v52  ;;  %v2167_v12 = vmax.f32 %v9531_v55, 0.0  ;;  %v6861_v35 = vld [vmem:[%s11533_s3 + $0x420] sm:$0xff]  ;;  %v6923_v46 = vld [vmem:[%s11533_s3 + $0x610] sm:$0xff]  ;;  %v6858_v52 = vld [vmem:[%s11533_s3 + $0x408] sm:$0xff] }
 0x17d   : > { %2368 = vmatmul.mubr.f32.gmra.mxu0 %v2160_v53  ;;  %2457 = vmatmul.mubr.f32.gmra.mxu1 %v2162_v59  ;;  %v2166_v13 = vmax.f32 %v9565_v11, 0.0  ;;  %v9602_v34 = vadd.f32 %v9404_v0, %v2114_v22  ;;  %v9614_v29 = vadd.f32 %v9410_v50, %v2116_v14  ;;  %v6924_v50 = vld [vmem:[%s11533_s3 + $0x618] sm:$0xff]  ;;  %v6859_v51 = vld [vmem:[%s11533_s3 + $0x410] sm:$0xff]  ;;  %v6922_v19 = vld [vmem:[%s11533_s3 + $0x608] sm:$0xff] }
 0x17e   : > { %2682 = vmatpush1.msra.mxu0 %v6931_v57  ;;  %v9574_v23 = vadd.f32 %v9413_v47, %v2115_v60  ;;  %2593 = vmatpush1.msra.mxu1 %v6867_v63  ;;  %v9580_v26 = vadd.f32 %v9418_v45, %v2117_v17  ;;  %v6927_v47 = vld [vmem:[%s11533_s3 + $0x630] sm:$0xff]  ;;  %v6857_v9 = vld [vmem:[%s11533_s3 + $0x400] sm:$0xff]  ;;  %v6918_v63 = vld [vmem:[%s11533_s3 + $0x5e8] sm:$0xff] }
 0x17f   : > { %2683 = vmatprep.subr.mxu0 %v6930_v1  ;;  %2594 = vmatprep.subr.mxu1 %v6866_v18  ;;  %v6863_v45 = vld [vmem:[%s11533_s3 + $0x430] sm:$0xff]  ;;  %v2168_v44 = vmax.f32 %v9602_v34, 0.0  ;;  %v2170_v49 = vmax.f32 %v9614_v29, 0.0  ;;  %v6921_v57 = vld [vmem:[%s11533_s3 + $0x600] sm:$0xff]  ;;  %v6852_v1 = vld [vmem:[%s11533_s3 + $0x3d8] sm:$0xff] }
 0x180   : > { %2684 = vmatpush1.msra.mxu0 %v6929_v4  ;;  %2595 = vmatpush1.msra.mxu1 %v6865_v21  ;;  %v2169_v36 = vmax.f32 %v9574_v23, 0.0  ;;  %v2171_v0 = vmax.f32 %v9580_v26, 0.0  ;;  %v6855_v60 = vld [vmem:[%s11533_s3 + $0x3f0] sm:$0xff]  ;;  %v6850_v18 = vld [vmem:[%s11533_s3 + $0x3c8] sm:$0xff]  ;;  %v6913_v8 = vld [vmem:[%s11533_s3 + $0x5c0] sm:$0xff]  ;;  %v11581_v26 = vmov 0  }
 0x181   : > { %2373 = vmatprep.mubr.f32.mxu0 %v2165_v3  ;;  %6839 = vmatprep.mubr.msk.f32.mxu1 %vm2284_vm4, %v2167_v12  ;;  %v6851_v61 = vld [vmem:[%s11533_s3 + $0x3d0] sm:$0xff]  ;;  %v6914_v4 = vld [vmem:[%s11533_s3 + $0x5c8] sm:$0xff]  ;;  %v6848_v21 = vld [vmem:[%s11533_s3 + $0x3b8] sm:$0xff] }
 0x182   : > { %2596 = vmatprep.subr.mxu1 %v6864_v25  ;;  %2685 = vmatprep.subr.mxu0 %v6928_v15  ;;  %v6915_v17 = vld [vmem:[%s11533_s3 + $0x5d0] sm:$0xff]  ;;  %v6912_v22 = vld [vmem:[%s11533_s3 + $0x5b8] sm:$0xff]  ;;  %v6846_v15 = vld [vmem:[%s11533_s3 + $0x3a8] sm:$0xff] }
 0x183   : > { %2374 = vmatmul.mubr.f32.gmra.mxu0 %v2164_v27  ;;  %2463 = vmatmul.mubr.f32.gmra.mxu1 %v2166_v13  ;;  %v6847_v25 = vld [vmem:[%s11533_s3 + $0x3b0] sm:$0xff]  ;;  %v6880_v7 = vld [vmem:[%s11533_s3 + $0x4b8] sm:$0xff]  ;;  %v6874_v11 = vld [vmem:[%s11533_s3 + $0x488] sm:$0xff] }
 0x184   : > { %2686 = vmatpush1.msra.mxu0 %v6927_v47  ;;  %2597 = vmatpush1.msra.mxu1 %v6863_v45  ;;  %v6911_v14 = vld [vmem:[%s11533_s3 + $0x5b0] sm:$0xff]  ;;  %v6910_v47 = vld [vmem:[%s11533_s3 + $0x5a8] sm:$0xff]  ;;  %v6845_v45 = vld [vmem:[%s11533_s3 + $0x3a0] sm:$0xff] }
 0x185   : > { %2687 = vmatprep.subr.mxu0 %v6926_v32  ;;  %2598 = vmatprep.subr.mxu1 %v6862_v37  ;;  %v6909_v32 = vld [vmem:[%s11533_s3 + $0x5a0] sm:$0xff]  ;;  %v6844_v37 = vld [vmem:[%s11533_s3 + $0x398] sm:$0xff]  ;;  %v7994_v54 = vld [vmem:[%s11535_s5 + $0x188] ss:$12 sps:$4 sm:$0xff]  }
 0x186   : > { %2688 = vmatpush1.msra.mxu0 %v6925_v38  ;;  %2599 = vmatpush1.msra.mxu1 %v6861_v35  ;;  %v6908_v38 = vld [vmem:[%s11533_s3 + $0x598] sm:$0xff]  ;;  %v6843_v35 = vld [vmem:[%s11533_s3 + $0x390] sm:$0xff] }
 0x187   : > { %2379 = vmatprep.mubr.f32.mxu0 %v2169_v36  ;;  %6840 = vmatprep.mubr.msk.f32.mxu1 %vm2284_vm4, %v2171_v0  ;;  %v6876_v55 = vld [vmem:[%s11533_s3 + $0x498] sm:$0xff] }
 0x188   : > { %2600 = vmatprep.subr.mxu1 %v6860_v40  ;;  %2689 = vmatprep.subr.mxu0 %v6924_v50  ;;  %v6907_v40 = vld [vmem:[%s11533_s3 + $0x590] sm:$0xff]  ;;  %v6842_v50 = vld [vmem:[%s11533_s3 + $0x388] sm:$0xff] }
 0x189   : > { %2380 = vmatmul.mubr.f32.gmra.mxu0 %v2168_v44  ;;  %2469 = vmatmul.mubr.f32.gmra.mxu1 %v2170_v49  ;;  %v7982_v24 = vld [vmem:[%s11535_s5 + $0x1d0] ss:$12 sps:$4 sm:$0xff]  }
 0x18a   : > { %2690 = vmatpush1.msra.mxu0 %v6923_v46  ;;  %2601 = vmatpush1.msra.mxu1 %v6859_v51  ;;  %v6906_v46 = vld [vmem:[%s11533_s3 + $0x588] sm:$0xff]  ;;  %v6841_v51 = vld [vmem:[%s11533_s3 + $0x380] sm:$0xff] }
 0x18b   : > { %2652 = vmatprep.mubr.f32.mxu1 %v2157_v56  ;;  %2602 = vmatprep.subr.mxu1 %v6858_v52  ;;  %v6854_v56 = vld [vmem:[%s11533_s3 + $0x3e8] sm:$0xff]  ;;  %v6905_v52 = vld [vmem:[%s11533_s3 + $0x580] sm:$0xff] }
 0x18c   : > { %2691 = vmatprep.subr.mxu0 %v6922_v19  ;;  %6953 = vmatprep.mubr.msk.f32.mxu0 %vm2284_vm4, %v2159_v28  ;;  %v6917_v28 = vld [vmem:[%s11533_s3 + $0x5e0] sm:$0xff]  ;;  %v6904_v19 = vld [vmem:[%s11533_s3 + $0x578] sm:$0xff] }
 0x18d   : > { %2603 = vmatpush1.msra.mxu1 %v6857_v9  ;;  %2692 = vmatpush1.msra.mxu0 %v6921_v57  ;;  %v6952_v9 = vld [vmem:[%s11533_s3 + $0x6f8] sm:$0xff]  ;;  %v6903_v57 = vld [vmem:[%s11533_s3 + $0x570] sm:$0xff] }
 0x18e   : > { %2604 = vmatprep.subr.mxu1 %v6856_v5  ;;  %2693 = vmatprep.subr.mxu0 %v6920_v58  ;;  %v6951_v5 = vld [vmem:[%s11533_s3 + $0x6f0] sm:$0xff]  ;;  %v6902_v58 = vld [vmem:[%s11533_s3 + $0x568] sm:$0xff] }
 0x18f   : > { %2605 = vmatpush1.msra.mxu1 %v6855_v60  ;;  %2694 = vmatpush1.msra.mxu0 %v6919_v42  ;;  %v6950_v60 = vld [vmem:[%s11533_s3 + $0x6e8] sm:$0xff]  ;;  %v6901_v42 = vld [vmem:[%s11533_s3 + $0x560] sm:$0xff] }
 0x190   : > { %2606 = vmatprep.subr.mxu1 %v6854_v56  ;;  %2695 = vmatprep.subr.mxu0 %v6918_v63  ;;  %v6949_v56 = vld [vmem:[%s11533_s3 + $0x6e0] sm:$0xff]  ;;  %v6900_v63 = vld [vmem:[%s11533_s3 + $0x558] sm:$0xff] }
 0x191   : > { %2607 = vmatpush1.msra.mxu1 %v6853_v43  ;;  %2696 = vmatpush1.msra.mxu0 %v6917_v28  ;;  %v6948_v43 = vld [vmem:[%s11533_s3 + $0x6d8] sm:$0xff]  ;;  %v6899_v28 = vld [vmem:[%s11533_s3 + $0x550] sm:$0xff] }
 0x192   : > { %2608 = vmatprep.subr.mxu1 %v6852_v1  ;;  %2697 = vmatprep.subr.mxu0 %v6916_v33  ;;  %v6947_v1 = vld [vmem:[%s11533_s3 + $0x6d0] sm:$0xff]  ;;  %v6898_v33 = vld [vmem:[%s11533_s3 + $0x548] sm:$0xff] }
 0x193   : > { %2609 = vmatpush1.msra.mxu1 %v6851_v61  ;;  %2698 = vmatpush1.msra.mxu0 %v6915_v17  ;;  %v6946_v61 = vld [vmem:[%s11533_s3 + $0x6c8] sm:$0xff]  ;;  %v6897_v17 = vld [vmem:[%s11533_s3 + $0x540] sm:$0xff] }
 0x194   : > { %2610 = vmatprep.subr.mxu1 %v6850_v18  ;;  %2699 = vmatprep.subr.mxu0 %v6914_v4  ;;  %v6945_v18 = vld [vmem:[%s11533_s3 + $0x6c0] sm:$0xff]  ;;  %v6896_v4 = vld [vmem:[%s11533_s3 + $0x538] sm:$0xff] }
 0x195   : > { %2611 = vmatpush1.msra.mxu1 %v6849_v2  ;;  %2700 = vmatpush1.msra.mxu0 %v6913_v8  ;;  %v6944_v2 = vld [vmem:[%s11533_s3 + $0x6b8] sm:$0xff]  ;;  %v6895_v8 = vld [vmem:[%s11533_s3 + $0x530] sm:$0xff] }
 0x196   : > { %2612 = vmatprep.subr.mxu1 %v6848_v21  ;;  %2701 = vmatprep.subr.mxu0 %v6912_v22  ;;  %v6943_v21 = vld [vmem:[%s11533_s3 + $0x6b0] sm:$0xff]  ;;  %v6894_v22 = vld [vmem:[%s11533_s3 + $0x528] sm:$0xff] }
 0x197   : > { %2613 = vmatpush1.msra.mxu1 %v6847_v25  ;;  %2702 = vmatpush1.msra.mxu0 %v6911_v14  ;;  %v6942_v25 = vld [vmem:[%s11533_s3 + $0x6a8] sm:$0xff]  ;;  %v6893_v14 = vld [vmem:[%s11533_s3 + $0x520] sm:$0xff] }
 0x198   : > { %2614 = vmatprep.subr.mxu1 %v6846_v15  ;;  %2703 = vmatprep.subr.mxu0 %v6910_v47  ;;  %v6941_v15 = vld [vmem:[%s11533_s3 + $0x6a0] sm:$0xff]  ;;  %v6892_v47 = vld [vmem:[%s11533_s3 + $0x518] sm:$0xff] }
 0x199   : > { %2615 = vmatpush1.msra.mxu1 %v6845_v45  ;;  %2704 = vmatpush1.msra.mxu0 %v6909_v32  ;;  %v6940_v45 = vld [vmem:[%s11533_s3 + $0x698] sm:$0xff]  ;;  %v6891_v32 = vld [vmem:[%s11533_s3 + $0x510] sm:$0xff] }
 0x19a   : > { %2616 = vmatprep.subr.mxu1 %v6844_v37  ;;  %2705 = vmatprep.subr.mxu0 %v6908_v38  ;;  %v6939_v37 = vld [vmem:[%s11533_s3 + $0x690] sm:$0xff]  ;;  %v6890_v38 = vld [vmem:[%s11533_s3 + $0x508] sm:$0xff] }
 0x19b   : > { %2617 = vmatpush1.msra.mxu1 %v6843_v35  ;;  %2706 = vmatpush1.msra.mxu0 %v6907_v40  ;;  %v6938_v35 = vld [vmem:[%s11533_s3 + $0x688] sm:$0xff]  ;;  %v6889_v40 = vld [vmem:[%s11533_s3 + $0x500] sm:$0xff] }
 0x19c   : > { %2618 = vmatprep.subr.mxu1 %v6842_v50  ;;  %2707 = vmatprep.subr.mxu0 %v6906_v46  ;;  %v6937_v50 = vld [vmem:[%s11533_s3 + $0x680] sm:$0xff]  ;;  %v6888_v46 = vld [vmem:[%s11533_s3 + $0x4f8] sm:$0xff] }
 0x19d   : > { %2619 = vmatpush1.msra.mxu1 %v6841_v51  ;;  %2708 = vmatpush1.msra.mxu0 %v6905_v52  ;;  %v6887_v51 = vld [vmem:[%s11533_s3 + $0x4f0] sm:$0xff]  ;;  %v6886_v52 = vld [vmem:[%s11533_s3 + $0x4e8] sm:$0xff] }
 0x19e   : > { %2620 = vmatprep.subr.mxu1 %v6904_v19  ;;  %2725 = vmatprep.subr.mxu0 %v6952_v9  ;;  %v6885_v19 = vld [vmem:[%s11533_s3 + $0x4e0] sm:$0xff]  ;;  %v6884_v9 = vld [vmem:[%s11533_s3 + $0x4d8] sm:$0xff] }
 0x19f   : > { %2621 = vmatpush2.msra.mxu1 %v6903_v57  ;;  %2726 = vmatpush2.msra.mxu0 %v6951_v5  ;;  %v6883_v57 = vld [vmem:[%s11533_s3 + $0x4d0] sm:$0xff] }
 0x1a0   : > { %2622 = vmatprep.subr.mxu1 %v6902_v58  ;;  %2727 = vmatprep.subr.mxu0 %v6950_v60 }
 0x1a1   : > { %2623 = vmatpush2.msra.mxu1 %v6901_v42  ;;  %2728 = vmatpush2.msra.mxu0 %v6949_v56 }
 0x1a2   : > { %2624 = vmatprep.subr.mxu1 %v6900_v63  ;;  %2729 = vmatprep.subr.mxu0 %v6948_v43 }
 0x1a3   : > { %2625 = vmatpush2.msra.mxu1 %v6899_v28  ;;  %2730 = vmatpush2.msra.mxu0 %v6947_v1 }
 0x1a4   : > { %2626 = vmatprep.subr.mxu1 %v6898_v33  ;;  %2731 = vmatprep.subr.mxu0 %v6946_v61 }
 0x1a5   : > { %2627 = vmatpush2.msra.mxu1 %v6897_v17  ;;  %2732 = vmatpush2.msra.mxu0 %v6945_v18 }
 0x1a6   : > { %2628 = vmatprep.subr.mxu1 %v6896_v4  ;;  %2733 = vmatprep.subr.mxu0 %v6944_v2 }
 0x1a7   : > { %2629 = vmatpush2.msra.mxu1 %v6895_v8  ;;  %2734 = vmatpush2.msra.mxu0 %v6943_v21 }
 0x1a8   : > { %2630 = vmatprep.subr.mxu1 %v6894_v22  ;;  %2735 = vmatprep.subr.mxu0 %v6942_v25 }
 0x1a9   : > { %2631 = vmatpush2.msra.mxu1 %v6893_v14  ;;  %2736 = vmatpush2.msra.mxu0 %v6941_v15 }
 0x1aa   : > { %2632 = vmatprep.subr.mxu1 %v6892_v47  ;;  %2737 = vmatprep.subr.mxu0 %v6940_v45 }
 0x1ab   : > { %2633 = vmatpush2.msra.mxu1 %v6891_v32  ;;  %2738 = vmatpush2.msra.mxu0 %v6939_v37 }
 0x1ac   : > { %2634 = vmatprep.subr.mxu1 %v6890_v38  ;;  %2739 = vmatprep.subr.mxu0 %v6938_v35 }
 0x1ad   : > { %2635 = vmatpush2.msra.mxu1 %v6889_v40  ;;  %2740 = vmatpush2.msra.mxu0 %v6937_v50 }
 0x1ae   : > { %2636 = vmatprep.subr.mxu1 %v6888_v46  ;;  %2742 = vmatmul.mubr.f32.vlgmr.msra.gmra.mxu0 %v2158_v6  ;;  %v6881_v6 = vld [vmem:[%s11533_s3 + $0x4c0] sm:$0xff] }
 0x1af   : > { %2637 = vmatpush2.msra.mxu1 %v6887_v51  ;;  %6954 = vmatprep.mubr.msk.f32.mxu0 %vm2284_vm4, %v2163_v16  ;;  %v6879_v16 = vld [vmem:[%s11533_s3 + $0x4b0] sm:$0xff] }
 0x1b0   : > { %2638 = vmatprep.subr.mxu1 %v6886_v52 }
 0x1b1   : > { %2639 = vmatpush2.msra.mxu1 %v6885_v19 }
 0x1b2   : > { %2640 = vmatprep.subr.mxu1 %v6884_v9  ;;  %2748 = vmatmul.mubr.f32.gmra.mxu0 %v2162_v59  ;;  %v6877_v59 = vld [vmem:[%s11533_s3 + $0x4a0] sm:$0xff] }
 0x1b3   : > { %2641 = vmatpush2.msra.mxu1 %v6883_v57  ;;  %6955 = vmatprep.mubr.msk.f32.mxu0 %vm2284_vm4, %v2167_v12  ;;  %v6875_v12 = vld [vmem:[%s11533_s3 + $0x490] sm:$0xff] }
 0x1b4   : > { %2642 = vmatprep.subr.mxu1 %v6882_v41 }
 0x1b5   : > { %2643 = vmatpush2.msra.mxu1 %v6881_v6 }
 0x1b6   : > { %2644 = vmatprep.subr.mxu1 %v6880_v7  ;;  %2754 = vmatmul.mubr.f32.gmra.mxu0 %v2166_v13  ;;  %v6873_v13 = vld [vmem:[%s11533_s3 + $0x480] sm:$0xff] }
 0x1b7   : > { %2645 = vmatpush2.msra.mxu1 %v6879_v16  ;;  %6956 = vmatprep.mubr.msk.f32.mxu0 %vm2284_vm4, %v2171_v0 }
 0x1b8   : > { %2646 = vmatprep.subr.mxu1 %v6878_v30 }
 0x1b9   : > { %2647 = vmatpush2.msra.mxu1 %v6877_v59 }
 0x1ba   : > { %2648 = vmatprep.subr.mxu1 %v6876_v55  ;;  %2760 = vmatmul.mubr.f32.gmra.mxu0 %v2170_v49 }
 0x1bb   : > { %2649 = vmatpush2.msra.mxu1 %v6875_v12  ;;  %2854 = vmatprep.mubr.f32.mxu0 %v8327_v39 }
 0x1bc   : > { %2650 = vmatprep.subr.mxu1 %v6874_v11 }
 0x1bd   : > { %2651 = vmatpush2.msra.mxu1 %v6873_v13 }
 0x1be   : > { %2653 = vmatmul.mubr.f32.vlgmr.msra.gmra.mxu1 %v2156_v48  ;;  %3373 = vmatprep.subr.bf16.mxu1 %v11581_v26  ;;  %v7974_v48 = vld [vmem:[%s11535_s5 + $0x200] ss:$12 sps:$4 sm:$0xff]  }
 0x1bf   : > { %2658 = vmatprep.mubr.f32.mxu1 %v2161_v31  ;;  %3374 = vmatpush1.bf16.msra.mxu1 %v7974_v48  ;;  %v7986_v31 = vld [vmem:[%s11535_s5 + $0x1b8] ss:$12 sps:$4 sm:$0xff]  }
 0x1c0   : > { %3375 = vmatprep.subr.bf16.mxu1 %v11581_v26 }
 0x1c2   : > { %2659 = vmatmul.mubr.f32.gmra.mxu1 %v2160_v53  ;;  %v7990_v53 = vld [vmem:[%s11535_s5 + $0x1a0] ss:$12 sps:$4 sm:$0xff]  }
 0x1c3   : > { %2664 = vmatprep.mubr.f32.mxu1 %v2165_v3  ;;  %3376 = vmatpush1.bf16.msra.mxu1 %v7978_v20  ;;  %v2774_v20 = vld [vmem:[%s11534_s4] sm:$0xff] }
 0x1c4   : > { %3377 = vmatprep.subr.bf16.mxu1 %v11581_v26 }
 0x1c6   : > { %2665 = vmatmul.mubr.f32.gmra.mxu1 %v2164_v27 }
 0x1c7   : > { %2670 = vmatprep.mubr.f32.mxu1 %v2169_v36  ;;  %3378 = vmatpush1.bf16.msra.mxu1 %v7982_v24  ;;  %v2775_v24 = vld [vmem:[%s11534_s4 + $0x8] sm:$0x3f] }
 0x1c8   : > { %3379 = vmatprep.subr.bf16.mxu1 %v11581_v26 }
 0x1ca   : > { %2671 = vmatmul.mubr.f32.gmra.mxu1 %v2168_v44 }
 0x1cb   : > { %3380 = vmatpush1.bf16.msra.mxu1 %v7986_v31  ;;  %v7973_v31 = vld [vmem:[%s11535_s5 + $0x1fc] ss:$12 sps:$4 sm:$0xff]  }
 0x1cc   : > { %3381 = vmatprep.subr.bf16.mxu1 %v11581_v26 }
 0x1cf   : > { %3382 = vmatpush1.bf16.msra.mxu1 %v7990_v53  ;;  %v6961_v53 = vld [vmem:[%s11534_s4 + $0x10] sm:$0xff] }
 0x1d0   : > { %3383 = vmatprep.subr.bf16.mxu1 %v11581_v26 }
 0x1d3   : > { %3384 = vmatpush1.bf16.msra.mxu1 %v7994_v54  ;;  %v7971_v54 = vld [vmem:[%s11535_s5 + $0x1f8] ss:$12 sps:$4 sm:$0xff]  }
 0x1d4   : > { %3385 = vmatprep.subr.bf16.mxu1 %v11581_v26 }
 0x237   : > { %v2363_v10 = vpop.f32.mrf.mxu0  ;;  %v2452_v34 = vpop.f32.mrf.mxu1 }
 0x238   : > { %v2453_v12 = vadd.f32 %v2452_v34, %v2363_v10  ;;  %v7977_v10 = vld [vmem:[%s11535_s5 + $0x1e4] ss:$12 sps:$4 sm:$0xff]   ;;  %v7979_v34 = vld [vmem:[%s11535_s5 + $0x1c8] ss:$12 sps:$4 sm:$0xff]  }
 0x239   : > { %v2365_v3 = vpop.f32.mrf.mxu0  ;;  %v2454_v29 = vpop.f32.mrf.mxu1 }
 0x23a   : > { %v2455_v59 = vadd.f32 %v2454_v29, %v2365_v3  ;;  %v6962_v3 = vld [vmem:[%s11534_s4 + $0x18] sm:$0x3f] }
 0x23b   : > { %v7983_v29 = vld [vmem:[%s11535_s5 + $0x1b0] ss:$12 sps:$4 sm:$0xff]  }
 0x23d   : > { %v2369_v23 = vpop.f32.mrf.mxu0  ;;  %v2458_v44 = vpop.f32.mrf.mxu1 }
 0x23e   : > { %v2459_v7 = vadd.f32 %v2458_v44, %v2369_v23  ;;  %v7975_v23 = vld [vmem:[%s11535_s5 + $0x1e0] ss:$12 sps:$4 sm:$0xff]   ;;  %v7987_v44 = vld [vmem:[%s11535_s5 + $0x198] ss:$12 sps:$4 sm:$0xff]  }
 0x23f   : > { %v2371_v27 = vpop.f32.mrf.mxu0  ;;  %v2460_v5 = vpop.f32.mrf.mxu1 }
 0x240   : > { %v2461_v57 = vadd.f32 %v2460_v5, %v2371_v27  ;;  %v7981_v27 = vld [vmem:[%s11535_s5 + $0x1cc] ss:$12 sps:$4 sm:$0xff]  }
 0x241   : > { %v7991_v5 = vld [vmem:[%s11535_s5 + $0x180] ss:$12 sps:$4 sm:$0xff]  }
 0x243   : > { %v2375_v36 = vpop.f32.mrf.mxu0  ;;  %v2464_v60 = vpop.f32.mrf.mxu1 }
 0x244   : > { %v2465_v52 = vadd.f32 %v2464_v60, %v2375_v36  ;;  %v7985_v36 = vld [vmem:[%s11535_s5 + $0x1b4] ss:$12 sps:$4 sm:$0xff]   ;;  %v7997_v60 = vld [vmem:[%s11535_s5 + $0x16c] ss:$12 sps:$4 sm:$0xff]  }
 0x245   : > { %v2377_v0 = vpop.f32.mrf.mxu0  ;;  %v2466_v56 = vpop.f32.mrf.mxu1 }
 0x246   : > { %v2467_v50 = vadd.f32 %v2466_v56, %v2377_v0  ;;  %v7989_v0 = vld [vmem:[%s11535_s5 + $0x19c] ss:$12 sps:$4 sm:$0xff]  }
 0x247   : > { %v7999_v56 = vld [vmem:[%s11535_s5 + $0x150] ss:$12 sps:$4 sm:$0xff]  }
 0x249   : > { %v2381_v49 = vpop.f32.mrf.mxu0  ;;  %v2470_v43 = vpop.f32.mrf.mxu1 }
 0x24a   : > { %v2471_v35 = vadd.f32 %v2470_v43, %v2381_v49  ;;  %v7993_v49 = vld [vmem:[%s11535_s5 + $0x184] ss:$12 sps:$4 sm:$0xff]  }
 0x24b   : > { %v2383_v58 = vpop.f32.mrf.mxu0  ;;  %v2472_v1 = vpop.f32.mrf.mxu1  ;;  %v8002_v43 = vld [vmem:[%s11535_s5 + $0x158] ss:$12 sps:$4 sm:$0xff]  }
 0x24c   : > { %v2473_v32 = vadd.f32 %v2472_v1, %v2383_v58  ;;  %v7995_v58 = vld [vmem:[%s11535_s5 + $0x168] ss:$12 sps:$4 sm:$0xff]  }
 0x24d   : > { %v8003_v1 = vld [vmem:[%s11535_s5 + $0x288] ss:$12 sps:$4 sm:$0xff]  }
 0x26e   : > { %v2743_v42 = vpop.f32.mrf.mxu0 }
 0x270   : > { %v2745_v63 = vpop.f32.mrf.mxu0 }
 0x272   : > { %v2749_v28 = vpop.f32.mrf.mxu0 }
 0x274   : > { %v2751_v33 = vpop.f32.mrf.mxu0 }
 0x276   : > { %v2755_v17 = vpop.f32.mrf.mxu0 }
 0x278   : > { %v2757_v2 = vpop.f32.mrf.mxu0 }
 0x27a   : > { %v2761_v22 = vpop.f32.mrf.mxu0 }
 0x27c   : > { %v2763_v15 = vpop.f32.mrf.mxu0 }
 0x27e   : > { %v2654_v61 = vpop.f32.mrf.mxu1 }
 0x27f   : > { %v2744_v16 = vadd.f32 %v2743_v42, %v2654_v61  ;;  %v7998_v42 = vld [vmem:[%s11535_s5 + $0x170] ss:$12 sps:$4 sm:$0xff]   ;;  %v8009_v61 = vld [vmem:[%s11535_s5 + $0x274] ss:$12 sps:$4 sm:$0xff]  }
 0x280   : > { %v2656_v18 = vpop.f32.mrf.mxu1  ;;  %3386 = vmatpush1.bf16.msra.mxu1 %v7998_v42  ;;  %v8039_v42 = vld [vmem:[%s11535_s5 + $0x60] ss:$12 sps:$4 sm:$0xff]  }
 0x281   : > { %v2746_v41 = vadd.f32 %v2745_v63, %v2656_v18  ;;  %v2766_v48 = vmax.f32 %v2453_v12, %v2744_v16  ;;  %v8001_v63 = vld [vmem:[%s11535_s5 + $0x154] ss:$12 sps:$4 sm:$0xff]   ;;  %3387 = vmatprep.subr.bf16.mxu1 %v11581_v26  ;;  %v8010_v18 = vld [vmem:[%s11535_s5 + $0x278] ss:$12 sps:$4 sm:$0xff]  }
 0x282   : > { %v2660_v4 = vpop.f32.mrf.mxu1 }
 0x283   : > { %v2750_v19 = vadd.f32 %v2749_v28, %v2660_v4  ;;  %v2767_v13 = vmax.f32 %v2455_v59, %v2746_v41  ;;  %v8005_v28 = vld [vmem:[%s11535_s5 + $0x28c] ss:$12 sps:$4 sm:$0xff]   ;;  %v8013_v4 = vld [vmem:[%s11535_s5 + $0x25c] ss:$12 sps:$4 sm:$0xff]  }
 0x284   : > { %v2662_v8 = vpop.f32.mrf.mxu1  ;;  %3388 = vmatpush1.bf16.msra.mxu1 %v8002_v43  ;;  %v8043_v43 = vld [vmem:[%s11535_s5 + $0x48] ss:$12 sps:$4 sm:$0xff]  }
 0x285   : > { %v2752_v46 = vadd.f32 %v2751_v33, %v2662_v8  ;;  %v2768_v11 = vmax.f32 %v2459_v7, %v2750_v19  ;;  %3393 = vmatprep.subr.bf16.mxu1 %v11581_v26  ;;  %v8006_v33 = vld [vmem:[%s11535_s5 + $0x290] ss:$12 sps:$4 sm:$0xff]   ;;  %v8014_v8 = vld [vmem:[%s11535_s5 + $0x260] ss:$12 sps:$4 sm:$0xff]  }
 0x286   : > { %v2666_v21 = vpop.f32.mrf.mxu1 }
 0x287   : > { %v2756_v40 = vadd.f32 %v2755_v17, %v2666_v21  ;;  %v2769_v55 = vmax.f32 %v2461_v57, %v2752_v46  ;;  %v8007_v17 = vld [vmem:[%s11535_s5 + $0x270] ss:$12 sps:$4 sm:$0xff]  }
 0x288   : > { %v2668_v25 = vpop.f32.mrf.mxu1  ;;  %3394 = vmatpush2.bf16.msra.mxu1 %v8006_v33  ;;  %v8017_v21 = vld [vmem:[%s11535_s5 + $0x244] ss:$12 sps:$4 sm:$0xff]  }
 0x289   : > { %v2758_v37 = vadd.f32 %v2757_v2, %v2668_v25  ;;  %v2770_v30 = vmax.f32 %v2465_v52, %v2756_v40  ;;  %3395 = vmatprep.subr.bf16.mxu1 %v11581_v26  ;;  %v8011_v2 = vld [vmem:[%s11535_s5 + $0x258] ss:$12 sps:$4 sm:$0xff]   ;;  %v8018_v25 = vld [vmem:[%s11535_s5 + $0x248] ss:$12 sps:$4 sm:$0xff]   ;;  %v8047_v33 = vld [vmem:[%s11535_s5 + $0x30] ss:$12 sps:$4 sm:$0xff]  }
 0x28a   : > { %v2672_v14 = vpop.f32.mrf.mxu1 }
 0x28b   : > { %v2762_v47 = vadd.f32 %v2761_v22, %v2672_v14  ;;  %v2771_v6 = vmax.f32 %v2467_v50, %v2758_v37  ;;  %v8015_v22 = vld [vmem:[%s11535_s5 + $0x240] ss:$12 sps:$4 sm:$0xff]   ;;  %v8026_v37 = vld [vmem:[%s11535_s5 + $0x218] ss:$12 sps:$4 sm:$0xff]  }
 0x28c   : > { %v2674_v45 = vpop.f32.mrf.mxu1  ;;  %3396 = vmatpush2.bf16.msra.mxu1 %v8010_v18  ;;  %v8021_v14 = vld [vmem:[%s11535_s5 + $0x22c] ss:$12 sps:$4 sm:$0xff]  }
 0x28d   : > { %v2764_v38 = vadd.f32 %v2763_v15, %v2674_v45  ;;  %v2772_v9 = vmax.f32 %v2471_v35, %v2762_v47  ;;  %3397 = vmatprep.subr.bf16.mxu1 %v11581_v26  ;;  %v8019_v15 = vld [vmem:[%s11535_s5 + $0x228] ss:$12 sps:$4 sm:$0xff]   ;;  %v8022_v47 = vld [vmem:[%s11535_s5 + $0x230] ss:$12 sps:$4 sm:$0xff]   ;;  %v8051_v18 = vld [vmem:[%s11535_s5 + $0x18] ss:$12 sps:$4 sm:$0xff]  }
 0x28e   : > { %v8025_v45 = vld [vmem:[%s11535_s5 + $0x214] ss:$12 sps:$4 sm:$0xff]  }
 0x28f   : > { %v2773_v51 = vmax.f32 %v2473_v32, %v2764_v38  ;;  %v8023_v32 = vld [vmem:[%s11535_s5 + $0x210] ss:$12 sps:$4 sm:$0xff]   ;;  %v8029_v38 = vld [vmem:[%s11535_s5 + $0xac] ss:$12 sps:$4 sm:$0xff]  }
 0x290   : > { %3398 = vmatpush2.bf16.msra.mxu1 %v8014_v8  ;;  %v8055_v8 = vld [vmem:[%s11535_s5] ss:$12 sps:$4 sm:$0xff]  }
 0x291   : > { %6957 = vmatprep.subr.msk.mxu0 %vm2783_vm5, %v2773_v51  ;;  %3399 = vmatprep.subr.bf16.mxu1 %v11581_v26 }
 0x292   : > { %6958 = vmatpush1.msk.msra.mxu0 %vm2783_vm5, %v2772_v9 }
 0x293   : > { %2816 = vmatprep.subr.mxu0 %v2771_v6 }
 0x294   : > { %2817 = vmatpush1.msra.mxu0 %v2770_v30  ;;  %3400 = vmatpush2.bf16.msra.mxu1 %v8018_v25  ;;  %v8059_v25 = vld [vmem:[%s11535_s5 + $0x138] ss:$12 sps:$4 sm:$0xff]  }
 0x295   : > { %2818 = vmatprep.subr.mxu0 %v2769_v55  ;;  %3401 = vmatprep.subr.bf16.mxu1 %v11581_v26 }
 0x296   : > { %2819 = vmatpush1.msra.mxu0 %v2768_v11 }
 0x297   : > { %2820 = vmatprep.subr.mxu0 %v2767_v13 }
 0x298   : > { %2821 = vmatpush1.msra.mxu0 %v2766_v48  ;;  %3402 = vmatpush2.bf16.msra.mxu1 %v8022_v47  ;;  %v8063_v47 = vld [vmem:[%s11535_s5 + $0x120] ss:$12 sps:$4 sm:$0xff]  }
 0x299   : > { %6959 = vmatmul.mubr.msk.f32.vlgmr.msra.gmra.mxu0 %vm2776_vm6, %v2774_v20  ;;  %6963 = vmatprep.subr.msk.mxu0 %vm2783_vm5, %v2773_v51 }
 0x29a   : > { %6964 = vmatpush1.msk.msra.mxu0 %vm2783_vm5, %v2772_v9  ;;  %2860 = vmatprep.mubr.f32.mxu0 %v8327_v39 }
 0x29b   : > { %2902 = vmatprep.subr.mxu0 %v2771_v6  ;;  %3403 = vmatprep.subr.bf16.mxu1 %v11581_v26 }
 0x29c   : > { %2903 = vmatpush1.msra.mxu0 %v2770_v30  ;;  %3404 = vmatpush2.bf16.msra.mxu1 %v8026_v37  ;;  %v8067_v37 = vld [vmem:[%s11535_s5 + $0x108] ss:$12 sps:$4 sm:$0xff]  }
 0x29d   : > { %6960 = vmatmul.mubr.msk.f32.gmra.mxu0 %vm2776_vm6, %v2775_v24  ;;  %2904 = vmatprep.subr.mxu0 %v2769_v55 }
 0x29e   : > { %2905 = vmatpush1.msra.mxu0 %v2768_v11  ;;  %2940 = vmatprep.mubr.f32.mxu0 %v8327_v39 }
 0x29f   : > { %2906 = vmatprep.subr.mxu0 %v2767_v13  ;;  %3684 = vmatprep.subr.bf16.mxu1 %v11581_v26 }
 0x2a0   : > { %2907 = vmatpush1.msra.mxu0 %v2766_v48 }
 0x2a1   : > { %6965 = vmatmul.mubr.msk.f32.vlgmr.msra.gmra.mxu0 %vm2776_vm6, %v6961_v53  ;;  %3330 = vmatprep.subr.bf16.mxu0 %v7973_v31 }
 0x2a2   : > { %2946 = vmatprep.mubr.f32.mxu0 %v8327_v39  ;;  %3331 = vmatpush1.bf16.msra.mxu0 %v7971_v54 }
 0x2a3   : > { %3332 = vmatprep.subr.bf16.mxu0 %v7977_v10  ;;  %v8027_v10 = vld [vmem:[%s11535_s5 + $0xa8] ss:$12 sps:$4 sm:$0xff]  }
 0x2a5   : > { %6966 = vmatmul.mubr.msk.f32.gmra.mxu0 %vm2776_vm6, %v6962_v3  ;;  %v8030_v3 = vld [vmem:[%s11535_s5 + $0xb0] ss:$12 sps:$4 sm:$0xff]  }
 0x2a6   : > { %3333 = vmatpush1.bf16.msra.mxu0 %v7975_v23 }
 0x2a7   : > { %3334 = vmatprep.subr.bf16.mxu0 %v7981_v27 }
 0x2aa   : > { %3335 = vmatpush1.bf16.msra.mxu0 %v7979_v34 }
 0x2ab   : > { %3336 = vmatprep.subr.bf16.mxu0 %v7985_v36  ;;  %v8033_v36 = vld [vmem:[%s11535_s5 + $0x94] ss:$12 sps:$4 sm:$0xff]  }
 0x2ae   : > { %3337 = vmatpush1.bf16.msra.mxu0 %v7983_v29 }
 0x2af   : > { %3338 = vmatprep.subr.bf16.mxu0 %v7989_v0  ;;  %v8031_v0 = vld [vmem:[%s11535_s5 + $0x90] ss:$12 sps:$4 sm:$0xff]  }
 0x2b2   : > { %3339 = vmatpush1.bf16.msra.mxu0 %v7987_v44  ;;  %v8034_v44 = vld [vmem:[%s11535_s5 + $0x98] ss:$12 sps:$4 sm:$0xff]  }
 0x2b3   : > { %3340 = vmatprep.subr.bf16.mxu0 %v7993_v49  ;;  %v8037_v49 = vld [vmem:[%s11535_s5 + $0x7c] ss:$12 sps:$4 sm:$0xff]  }
 0x2b6   : > { %3341 = vmatpush1.bf16.msra.mxu0 %v7991_v5  ;;  %v8035_v5 = vld [vmem:[%s11535_s5 + $0x78] ss:$12 sps:$4 sm:$0xff]  }
 0x2b7   : > { %3342 = vmatprep.subr.bf16.mxu0 %v7997_v60  ;;  %v8041_v60 = vld [vmem:[%s11535_s5 + $0x64] ss:$12 sps:$4 sm:$0xff]  }
 0x2ba   : > { %3343 = vmatpush1.bf16.msra.mxu0 %v7995_v58  ;;  %v8038_v58 = vld [vmem:[%s11535_s5 + $0x80] ss:$12 sps:$4 sm:$0xff]  }
 0x2bb   : > { %3344 = vmatprep.subr.bf16.mxu0 %v8001_v63  ;;  %v8045_v63 = vld [vmem:[%s11535_s5 + $0x4c] ss:$12 sps:$4 sm:$0xff]  }
 0x2be   : > { %3345 = vmatpush1.bf16.msra.mxu0 %v7999_v56  ;;  %v8042_v56 = vld [vmem:[%s11535_s5 + $0x68] ss:$12 sps:$4 sm:$0xff]  }
 0x2bf   : > { %3350 = vmatprep.subr.bf16.mxu0 %v8005_v28  ;;  %v8046_v28 = vld [vmem:[%s11535_s5 + $0x50] ss:$12 sps:$4 sm:$0xff]  }
 0x2c2   : > { %3351 = vmatpush2.bf16.msra.mxu0 %v8003_v1  ;;  %v8049_v1 = vld [vmem:[%s11535_s5 + $0x34] ss:$12 sps:$4 sm:$0xff]  }
 0x2c3   : > { %3352 = vmatprep.subr.bf16.mxu0 %v8009_v61  ;;  %v8050_v61 = vld [vmem:[%s11535_s5 + $0x38] ss:$12 sps:$4 sm:$0xff]  }
 0x2c6   : > { %3353 = vmatpush2.bf16.msra.mxu0 %v8007_v17  ;;  %v8053_v17 = vld [vmem:[%s11535_s5 + $0x1c] ss:$12 sps:$4 sm:$0xff]  }
 0x2c7   : > { %3354 = vmatprep.subr.bf16.mxu0 %v8013_v4  ;;  %v8054_v4 = vld [vmem:[%s11535_s5 + $0x20] ss:$12 sps:$4 sm:$0xff]  }
 0x2ca   : > { %3355 = vmatpush2.bf16.msra.mxu0 %v8011_v2  ;;  %v8057_v2 = vld [vmem:[%s11535_s5 + $0x4] ss:$12 sps:$4 sm:$0xff]  }
 0x2cb   : > { %3356 = vmatprep.subr.bf16.mxu0 %v8017_v21  ;;  %v8058_v21 = vld [vmem:[%s11535_s5 + $0x8] ss:$12 sps:$4 sm:$0xff]  }
 0x2ce   : > { %3357 = vmatpush2.bf16.msra.mxu0 %v8015_v22  ;;  %v8061_v22 = vld [vmem:[%s11535_s5 + $0x13c] ss:$12 sps:$4 sm:$0xff]  }
 0x2cf   : > { %3358 = vmatprep.subr.bf16.mxu0 %v8021_v14  ;;  %v8062_v14 = vld [vmem:[%s11535_s5 + $0x140] ss:$12 sps:$4 sm:$0xff]  }
 0x2d2   : > { %3359 = vmatpush2.bf16.msra.mxu0 %v8019_v15  ;;  %v8065_v15 = vld [vmem:[%s11535_s5 + $0x124] ss:$12 sps:$4 sm:$0xff]  }
 0x2d3   : > { %3360 = vmatprep.subr.bf16.mxu0 %v8025_v45  ;;  %v8066_v45 = vld [vmem:[%s11535_s5 + $0x128] ss:$12 sps:$4 sm:$0xff]  }
 0x2d6   : > { %3361 = vmatpush2.bf16.msra.mxu0 %v8023_v32  ;;  %v8069_v32 = vld [vmem:[%s11535_s5 + $0x10c] ss:$12 sps:$4 sm:$0xff]  }
 0x2d7   : > { %3641 = vmatprep.subr.bf16.mxu0 %v8029_v38  ;;  %v8070_v38 = vld [vmem:[%s11535_s5 + $0x110] ss:$12 sps:$4 sm:$0xff]  }
 0x359   : > { %v2856_v35 = vpop.f32.mrf.mxu0 }
 0x35b   : > { %v2858_v40 = vpop.f32.mrf.mxu0 }
 0x35d   : > { %v2862_v50 = vpop.f32.mrf.mxu0 }
 0x35f   : > { %v2864_v46 = vpop.f32.mrf.mxu0 }
 0x361   : > { %v2942_v51 = vpop.f32.mrf.mxu0 }
 0x362   : > { %v10101_v52 = vmax.f32 %v2856_v35, %v2942_v51  ;;  %v8073_v35 = vld [vmem:[%s11535_s5 + $0xf4] ss:$12 sps:$4 sm:$0xff]   ;;  %v8075_v51 = vld [vmem:[%s11535_s5 + $0xd8] ss:$12 sps:$4 sm:$0xff]  }
 0x363   : > { %v2944_v19 = vpop.f32.mrf.mxu0 }
 0x364   : > { %2957 = vst [vmem:[#allocation2] sm:$0xff] %v10101_v52  ;;  %v2954_v9 = vmax.f32 %v2858_v40, %v2944_v19  ;;  %v8071_v40 = vld [vmem:[%s11535_s5 + $0xf0] ss:$12 sps:$4 sm:$0xff]   ;;  %v8078_v19 = vld [vmem:[%s11535_s5 + $0xe0] ss:$12 sps:$4 sm:$0xff]  }
 0x365   : > { %v2948_v57 = vpop.f32.mrf.mxu0 }
 0x366   : > { %2959 = vst.msk [vmem:[#allocation2 + $0x8] sm:$0xff] %vm2958_vm7, %v2954_v9  ;;  %v2955_v41 = vmax.f32 %v2862_v50, %v2948_v57  ;;  %v8074_v50 = vld [vmem:[%s11535_s5 + $0xf8] ss:$12 sps:$4 sm:$0xff]  }
 0x367   : > { %v2950_v6 = vpop.f32.mrf.mxu0  ;;  %v8081_v9 = vld [vmem:[%s11535_s5 + $0xc4] ss:$12 sps:$4 sm:$0xff]  }
 0x368   : > { %2960 = vst [vmem:[#allocation2 + $0x10] sm:$0x3f] %v2955_v41  ;;  %v2956_v7 = vmax.f32 %v2864_v46, %v2950_v6  ;;  %v8077_v46 = vld [vmem:[%s11535_s5 + $0xdc] ss:$12 sps:$4 sm:$0xff]   ;;  %v8079_v41 = vld [vmem:[%s11535_s5 + $0xc0] ss:$12 sps:$4 sm:$0xff]  }
 0x369   : > { %v8082_v6 = vld [vmem:[%s11535_s5 + $0xc8] ss:$12 sps:$4 sm:$0xff]  }
 0x36a   : > { %2962 = vst.msk [vmem:[#allocation2 + $0x18] sm:$0x3f] %vm2961_vm8, %v2956_v7  ;;  %v8085_v7 = vld [vmem:[%s11535_s5 + $0x34c] ss:$12 sps:$4 sm:$0xff]  }
 0x36b   : > { %v3025_v16 = vld [vmem:[#allocation2] sm:$0xfe] }
 0x36d   : > { %v3026_v55 = vld [vmem:[#allocation2 + $0x8] sm:$0xfe] }
 0x36e   : > { %v2964_v34 = vld [vmem:[#allocation2 + $0x8] sm:$0xff] }
 0x36f   : > { %v3027_v30 = vld [vmem:[#allocation2 + $0x10] sm:$0x7] }
 0x370   : > { %v3029_v59 = vpack.c.bf16 %v3027_v30, %v3025_v16  ;;  %v3726_v16 = vld [vmem:[#allocation2 + $0x8] sm:$0xfc]  ;;  %v2965_v30 = vld [vmem:[#allocation2 + $0x10] sm:$0x3] }
 0x371   : > { %v3028_v12 = vld [vmem:[#allocation2 + $0x18] sm:$0x7] }
 0x372   : > { %v3030_v11 = vpack.c.bf16 %v3028_v12, %v3026_v55  ;;  %v3091_v13 = vshll.u32 %v3029_v59, 16  ;;  %v3089_v53 = vshrl.u32 %v3029_v59, 16  ;;  %v2966_v23 = vld [vmem:[#allocation2 + $0x18] sm:$0x3]  ;;  %v8083_v55 = vld [vmem:[%s11535_s5 + $0x348] ss:$12 sps:$4 sm:$0xff]   ;;  %v2967_v12 = vpack.c.bf16 %v2965_v30, %v10101_v52 }
 0x373   : > { %v2968_v29 = vpack.c.bf16 %v2966_v23, %v2964_v34  ;;  %v3728_v57 = vld [vmem:[#allocation2 + $0x18] sm:$0xf]  ;;  %v8087_v52 = vld [vmem:[%s11535_s5 + $0x330] ss:$12 sps:$4 sm:$0xff]   ;;  %v8143_v30 = vld [vmem:[%s11535_s5 + $0x480] ss:$12 sps:$4 sm:$0xff]  }
 0x374   : > { %v3098_v48 = vshll.u32 %v3030_v11, 16  ;;  %v3093_v20 = vrot.slane %v3091_v13, 1  ;;  %v3096_v24 = vshrl.u32 %v3030_v11, 16  ;;  %v3730_v59 = vpack.c.bf16 %v3728_v57, %v3726_v16  ;;  %v8086_v11 = vld [vmem:[%s11535_s5 + $0x350] ss:$12 sps:$4 sm:$0xff]  }
 0x375   : > { %v8101_v23 = vld [vmem:[%s11535_s5 + $0x2ec] ss:$12 sps:$4 sm:$0xff]   ;;  %v8102_v34 = vld [vmem:[%s11535_s5 + $0x2f0] ss:$12 sps:$4 sm:$0xff]  }
 0x376   : > { %v3100_v31 = vrot.slane %v3098_v48, 1  ;;  %v3094_v27 = vor.u32 %v3093_v20, %v3089_v53  ;;  %v3791_v13 = vrot.slane %v3730_v59, 1  ;;  %v8089_v48 = vld [vmem:[%s11535_s5 + $0x334] ss:$12 sps:$4 sm:$0xff]   ;;  %v8090_v20 = vld [vmem:[%s11535_s5 + $0x338] ss:$12 sps:$4 sm:$0xff]  }
 0x377   : > { %v8094_v53 = vld [vmem:[%s11535_s5 + $0x320] ss:$12 sps:$4 sm:$0xff]   ;;  %v8139_v57 = vld [vmem:[%s11535_s5 + $0x498] ss:$12 sps:$4 sm:$0xff]   ;;  %v8146_v59 = vld [vmem:[%s11535_s5 + $0x488] ss:$12 sps:$4 sm:$0xff]  }
 0x378   : > { %v3101_v54 = vor.u32 %v3100_v31, %v3096_v24  ;;  %v8093_v24 = vld [vmem:[%s11535_s5 + $0x31c] ss:$12 sps:$4 sm:$0xff]   ;;  %v8091_v31 = vld [vmem:[%s11535_s5 + $0x318] ss:$12 sps:$4 sm:$0xff]  }
 0x37a   : > { %7065 = vmatprep.mubr.msk.bf16.mxu0 %vm2958_vm7, %v3101_v54  ;;  %7066 = vmatprep.mubr.msk.bf16.mxu1 %vm2958_vm7, %v3101_v54  ;;  %v8097_v54 = vld [vmem:[%s11535_s5 + $0x304] ss:$12 sps:$4 sm:$0xff]  }
 0x37b   : > { %3363 = vmatmul.mubr.bf16.vlgmr.msra.gmra.mxu0 %v3094_v27  ;;  %3406 = vmatmul.mubr.bf16.vlgmr.msra.gmra.mxu1 %v3094_v27  ;;  %v8099_v27 = vld [vmem:[%s11535_s5 + $0x2e8] ss:$12 sps:$4 sm:$0xff]  }
 0x37c   : > { %3642 = vmatpush1.bf16.msra.mxu0 %v8027_v10  ;;  %3685 = vmatpush1.bf16.msra.mxu1 %v8030_v3  ;;  %v8095_v10 = vld [vmem:[%s11535_s5 + $0x300] ss:$12 sps:$4 sm:$0xff]   ;;  %v8098_v3 = vld [vmem:[%s11535_s5 + $0x308] ss:$12 sps:$4 sm:$0xff]  }
 0x37d   : > { %7109 = vmatprep.mubr.msk.bf16.mxu0 %vm2958_vm7, %v2968_v29  ;;  %7110 = vmatprep.mubr.msk.bf16.mxu1 %vm2958_vm7, %v2968_v29  ;;  %v8103_v29 = vld [vmem:[%s11535_s5 + $0x2d0] ss:$12 sps:$4 sm:$0xff]  }
 0x37e   : > { %3643 = vmatprep.subr.bf16.mxu0 %v8033_v36  ;;  %3686 = vmatprep.subr.bf16.mxu1 %v11581_v26  ;;  %v8105_v36 = vld [vmem:[%s11535_s5 + $0x2d4] ss:$12 sps:$4 sm:$0xff]  }
 0x380   : > { %3644 = vmatpush1.bf16.msra.mxu0 %v8031_v0  ;;  %3687 = vmatpush1.bf16.msra.mxu1 %v8034_v44  ;;  %v8106_v0 = vld [vmem:[%s11535_s5 + $0x2d8] ss:$12 sps:$4 sm:$0xff]   ;;  %v8109_v44 = vld [vmem:[%s11535_s5 + $0x2bc] ss:$12 sps:$4 sm:$0xff]  }
 0x381   : > { %3645 = vmatprep.subr.bf16.mxu0 %v8037_v49  ;;  %3688 = vmatprep.subr.bf16.mxu1 %v11581_v26  ;;  %v8107_v49 = vld [vmem:[%s11535_s5 + $0x2b8] ss:$12 sps:$4 sm:$0xff]  }
 0x384   : > { %3646 = vmatpush1.bf16.msra.mxu0 %v8035_v5  ;;  %3689 = vmatpush1.bf16.msra.mxu1 %v8038_v58  ;;  %v8110_v5 = vld [vmem:[%s11535_s5 + $0x2c0] ss:$12 sps:$4 sm:$0xff]   ;;  %v8113_v58 = vld [vmem:[%s11535_s5 + $0x2a4] ss:$12 sps:$4 sm:$0xff]  }
 0x385   : > { %3647 = vmatprep.subr.bf16.mxu0 %v8041_v60  ;;  %3690 = vmatprep.subr.bf16.mxu1 %v11581_v26  ;;  %v8111_v60 = vld [vmem:[%s11535_s5 + $0x2a0] ss:$12 sps:$4 sm:$0xff]  }
 0x388   : > { %3648 = vmatpush1.bf16.msra.mxu0 %v8039_v42  ;;  %3691 = vmatpush1.bf16.msra.mxu1 %v8042_v56  ;;  %v8114_v42 = vld [vmem:[%s11535_s5 + $0x2a8] ss:$12 sps:$4 sm:$0xff]  }
 0x389   : > { %3649 = vmatprep.subr.bf16.mxu0 %v8045_v63  ;;  %3692 = vmatprep.subr.bf16.mxu1 %v11581_v26  ;;  %v8117_v56 = vld [vmem:[%s11535_s5 + $0x3dc] ss:$12 sps:$4 sm:$0xff]   ;;  %v8115_v63 = vld [vmem:[%s11535_s5 + $0x3d8] ss:$12 sps:$4 sm:$0xff]  }
 0x38c   : > { %3650 = vmatpush1.bf16.msra.mxu0 %v8043_v43  ;;  %3693 = vmatpush1.bf16.msra.mxu1 %v8046_v28  ;;  %v8118_v43 = vld [vmem:[%s11535_s5 + $0x3e0] ss:$12 sps:$4 sm:$0xff]   ;;  %v8121_v28 = vld [vmem:[%s11535_s5 + $0x3c4] ss:$12 sps:$4 sm:$0xff]  }
 0x38d   : > { %3651 = vmatprep.subr.bf16.mxu0 %v8049_v1  ;;  %3694 = vmatprep.subr.bf16.mxu1 %v11581_v26  ;;  %v8119_v1 = vld [vmem:[%s11535_s5 + $0x3c0] ss:$12 sps:$4 sm:$0xff]  }
 0x390   : > { %3652 = vmatpush1.bf16.msra.mxu0 %v8047_v33  ;;  %3695 = vmatpush1.bf16.msra.mxu1 %v8050_v61  ;;  %v8122_v33 = vld [vmem:[%s11535_s5 + $0x3c8] ss:$12 sps:$4 sm:$0xff]   ;;  %v8125_v61 = vld [vmem:[%s11535_s5 + $0x3ac] ss:$12 sps:$4 sm:$0xff]  }
 0x391   : > { %3653 = vmatprep.subr.bf16.mxu0 %v8053_v17  ;;  %3696 = vmatprep.subr.bf16.mxu1 %v11581_v26  ;;  %v8123_v17 = vld [vmem:[%s11535_s5 + $0x3a8] ss:$12 sps:$4 sm:$0xff]  }
 0x394   : > { %3654 = vmatpush1.bf16.msra.mxu0 %v8051_v18  ;;  %3697 = vmatpush1.bf16.msra.mxu1 %v8054_v4  ;;  %v8126_v18 = vld [vmem:[%s11535_s5 + $0x3b0] ss:$12 sps:$4 sm:$0xff]   ;;  %v8129_v4 = vld [vmem:[%s11535_s5 + $0x394] ss:$12 sps:$4 sm:$0xff]  }
 0x395   : > { %3655 = vmatprep.subr.bf16.mxu0 %v8057_v2  ;;  %3698 = vmatprep.subr.bf16.mxu1 %v11581_v26  ;;  %v8127_v2 = vld [vmem:[%s11535_s5 + $0x390] ss:$12 sps:$4 sm:$0xff]  }
 0x398   : > { %3656 = vmatpush1.bf16.msra.mxu0 %v8055_v8  ;;  %3699 = vmatpush1.bf16.msra.mxu1 %v8058_v21  ;;  %v4113_v8 = vld [vmem:[#allocation2 + $0x18] sm:$0x1f] }
 0x399   : > { %3661 = vmatprep.subr.bf16.mxu0 %v8061_v22  ;;  %3704 = vmatprep.subr.bf16.mxu1 %v11581_v26  ;;  %v8130_v21 = vld [vmem:[%s11535_s5 + $0x398] ss:$12 sps:$4 sm:$0xff]   ;;  %v8133_v22 = vld [vmem:[%s11535_s5 + $0x37c] ss:$12 sps:$4 sm:$0xff]  }
 0x39c   : > { %3662 = vmatpush2.bf16.msra.mxu0 %v8059_v25  ;;  %3705 = vmatpush2.bf16.msra.mxu1 %v8062_v14  ;;  %v4111_v25 = vld [vmem:[#allocation2 + $0x8] sm:$0xf8] }
 0x39d   : > { %3663 = vmatprep.subr.bf16.mxu0 %v8065_v15  ;;  %3706 = vmatprep.subr.bf16.mxu1 %v11581_v26  ;;  %v4115_v14 = vpack.c.bf16 %v4113_v8, %v4111_v25  ;;  %v8131_v15 = vld [vmem:[%s11535_s5 + $0x378] ss:$12 sps:$4 sm:$0xff]   ;;  %v8193_v8 = vld [vmem:[%s11535_s5 + $0x4b4] ss:$12 sps:$4 sm:$0xff]   ;;  %v8191_v25 = vld [vmem:[%s11535_s5 + $0x4b0] ss:$12 sps:$4 sm:$0xff]  }
 0x3a0   : > { %3664 = vmatpush2.bf16.msra.mxu0 %v8063_v47  ;;  %3707 = vmatpush2.bf16.msra.mxu1 %v8066_v45  ;;  %v8134_v47 = vld [vmem:[%s11535_s5 + $0x380] ss:$12 sps:$4 sm:$0xff]   ;;  %v8137_v45 = vld [vmem:[%s11535_s5 + $0x364] ss:$12 sps:$4 sm:$0xff]  }
 0x3a1   : > { %3665 = vmatprep.subr.bf16.mxu0 %v8069_v32  ;;  %3708 = vmatprep.subr.bf16.mxu1 %v11581_v26  ;;  %v3727_v32 = vld [vmem:[#allocation2 + $0x10] sm:$0xf] }
 0x3a4   : > { %3666 = vmatpush2.bf16.msra.mxu0 %v8067_v37  ;;  %3709 = vmatpush2.bf16.msra.mxu1 %v8070_v38  ;;  %v4182_v37 = vshrl.u32 %v4115_v14, 16  ;;  %v4185_v38 = vshll.u32 %v4115_v14, 16  ;;  %v4510_v14 = vld [vmem:[#allocation2 + $0x18] sm:$0x3f] }
 0x3a5   : > { %3667 = vmatprep.subr.bf16.mxu0 %v8073_v35  ;;  %3710 = vmatprep.subr.bf16.mxu1 %v11581_v26  ;;  %v8135_v35 = vld [vmem:[%s11535_s5 + $0x360] ss:$12 sps:$4 sm:$0xff]  }
 0x3a8   : > { %3668 = vmatpush2.bf16.msra.mxu0 %v8071_v40  ;;  %3711 = vmatpush2.bf16.msra.mxu1 %v8074_v50  ;;  %v3725_v40 = vld [vmem:[#allocation2] sm:$0xfc]  ;;  %v8138_v50 = vld [vmem:[%s11535_s5 + $0x368] ss:$12 sps:$4 sm:$0xff]  }
 0x3a9   : > { %3669 = vmatprep.subr.bf16.mxu0 %v8077_v46  ;;  %3712 = vmatprep.subr.bf16.mxu1 %v11581_v26  ;;  %v3729_v46 = vpack.c.bf16 %v3727_v32, %v3725_v40  ;;  %v8197_v32 = vld [vmem:[%s11535_s5 + $0x5ec] ss:$12 sps:$4 sm:$0xff]  }
 0x3ac   : > { %3670 = vmatpush2.bf16.msra.mxu0 %v8075_v51  ;;  %3713 = vmatpush2.bf16.msra.mxu1 %v8078_v19  ;;  %v8141_v51 = vld [vmem:[%s11535_s5 + $0x49c] ss:$12 sps:$4 sm:$0xff]   ;;  %v4184_v19 = vrot.slane %v4182_v37, 1  ;;  %v4508_v37 = vld [vmem:[#allocation2 + $0x8] sm:$0xf0] }
 0x3ad   : > { %3671 = vmatprep.subr.bf16.mxu0 %v8081_v9  ;;  %3714 = vmatprep.subr.bf16.mxu1 %v11581_v26  ;;  %v4187_v9 = vrot.slane %v4185_v38, 2  ;;  %v4512_v38 = vpack.c.bf16 %v4510_v14, %v4508_v37  ;;  %v4949_v14 = vld [vmem:[%s11537_s7 + $0xe0] sm:$0xff]  ;;  %v4944_v37 = vld [vmem:[%s11537_s7 + $0xb8] sm:$0xff] }
 0x3af   : > { %v4188_v16 = vor.u32 %v4187_v9, %v4184_v19  ;;  %v8199_v19 = vld [vmem:[%s11535_s5 + $0x5d0] ss:$12 sps:$4 sm:$0xff]   ;;  %v8202_v9 = vld [vmem:[%s11535_s5 + $0x5d8] ss:$12 sps:$4 sm:$0xff]  }
 0x3b0   : > { %3672 = vmatpush2.bf16.msra.mxu0 %v8079_v41  ;;  %3715 = vmatpush2.bf16.msra.mxu1 %v8082_v6  ;;  %v3790_v41 = vrot.slane %v3729_v46, 1  ;;  %v8142_v6 = vld [vmem:[%s11535_s5 + $0x4a0] ss:$12 sps:$4 sm:$0xff]  }
 0x3b1   : > { %4020 = vmatprep.subr.bf16.mxu0 %v8085_v7  ;;  %4063 = vmatprep.subr.bf16.mxu1 %v11581_v26  ;;  %v8145_v7 = vld [vmem:[%s11535_s5 + $0x484] ss:$12 sps:$4 sm:$0xff]   ;;  %v8201_v46 = vld [vmem:[%s11535_s5 + $0x5d4] ss:$12 sps:$4 sm:$0xff]  }
 0x3b3   : > { %3674 = vmatmul.mubr.bf16.vlgmr.msra.gmra.mxu0 %v2967_v12  ;;  %3717 = vmatmul.mubr.bf16.vlgmr.msra.gmra.mxu1 %v2967_v12  ;;  %v8147_v12 = vld [vmem:[%s11535_s5 + $0x468] ss:$12 sps:$4 sm:$0xff]  }
 0x3b4   : > { %4021 = vmatpush1.bf16.msra.mxu0 %v8083_v55  ;;  %7209 = vmatprep.mubr.msk.bf16.mxu0 %vm2958_vm7, %v3791_v13  ;;  %v8149_v55 = vld [vmem:[%s11535_s5 + $0x46c] ss:$12 sps:$4 sm:$0xff]  }
 0x3b5   : > { %4064 = vmatpush1.bf16.msra.mxu1 %v8086_v11  ;;  %7210 = vmatprep.mubr.msk.bf16.mxu1 %vm2958_vm7, %v3791_v13  ;;  %v8150_v11 = vld [vmem:[%s11535_s5 + $0x470] ss:$12 sps:$4 sm:$0xff]   ;;  %v8153_v13 = vld [vmem:[%s11535_s5 + $0x454] ss:$12 sps:$4 sm:$0xff]  }
 0x3b6   : > { %4022 = vmatprep.subr.bf16.mxu0 %v8089_v48  ;;  %4065 = vmatprep.subr.bf16.mxu1 %v11581_v26  ;;  %v8151_v48 = vld [vmem:[%s11535_s5 + $0x450] ss:$12 sps:$4 sm:$0xff]  }
 0x3b8   : > { %4023 = vmatpush1.bf16.msra.mxu0 %v8087_v52  ;;  %v8154_v52 = vld [vmem:[%s11535_s5 + $0x458] ss:$12 sps:$4 sm:$0xff]  }
 0x3b9   : > { %4066 = vmatpush1.bf16.msra.mxu1 %v8090_v20  ;;  %4024 = vmatprep.subr.bf16.mxu0 %v8093_v24  ;;  %v8157_v20 = vld [vmem:[%s11535_s5 + $0x43c] ss:$12 sps:$4 sm:$0xff]   ;;  %v8155_v24 = vld [vmem:[%s11535_s5 + $0x438] ss:$12 sps:$4 sm:$0xff]  }
 0x3ba   : > { %4067 = vmatprep.subr.bf16.mxu1 %v11581_v26 }
 0x3bc   : > { %4025 = vmatpush1.bf16.msra.mxu0 %v8091_v31  ;;  %v8158_v31 = vld [vmem:[%s11535_s5 + $0x440] ss:$12 sps:$4 sm:$0xff]  }
 0x3bd   : > { %4068 = vmatpush1.bf16.msra.mxu1 %v8094_v53  ;;  %4026 = vmatprep.subr.bf16.mxu0 %v8097_v54  ;;  %v8161_v53 = vld [vmem:[%s11535_s5 + $0x424] ss:$12 sps:$4 sm:$0xff]   ;;  %v8159_v54 = vld [vmem:[%s11535_s5 + $0x420] ss:$12 sps:$4 sm:$0xff]  }
 0x3be   : > { %4069 = vmatprep.subr.bf16.mxu1 %v11581_v26 }
 0x3c0   : > { %4027 = vmatpush1.bf16.msra.mxu0 %v8095_v10  ;;  %v8162_v10 = vld [vmem:[%s11535_s5 + $0x428] ss:$12 sps:$4 sm:$0xff]  }
 0x3c1   : > { %4070 = vmatpush1.bf16.msra.mxu1 %v8098_v3  ;;  %4028 = vmatprep.subr.bf16.mxu0 %v8101_v23  ;;  %v8165_v3 = vld [vmem:[%s11535_s5 + $0x40c] ss:$12 sps:$4 sm:$0xff]   ;;  %v8163_v23 = vld [vmem:[%s11535_s5 + $0x408] ss:$12 sps:$4 sm:$0xff]  }
 0x3c2   : > { %4071 = vmatprep.subr.bf16.mxu1 %v11581_v26 }
 0x3c4   : > { %4029 = vmatpush1.bf16.msra.mxu0 %v8099_v27  ;;  %v8166_v27 = vld [vmem:[%s11535_s5 + $0x410] ss:$12 sps:$4 sm:$0xff]  }
 0x3c5   : > { %4072 = vmatpush1.bf16.msra.mxu1 %v8102_v34  ;;  %4030 = vmatprep.subr.bf16.mxu0 %v8105_v36  ;;  %v8169_v34 = vld [vmem:[%s11535_s5 + $0x3f4] ss:$12 sps:$4 sm:$0xff]   ;;  %v8167_v36 = vld [vmem:[%s11535_s5 + $0x3f0] ss:$12 sps:$4 sm:$0xff]  }
 0x3c6   : > { %4073 = vmatprep.subr.bf16.mxu1 %v11581_v26 }
 0x3c8   : > { %4031 = vmatpush1.bf16.msra.mxu0 %v8103_v29  ;;  %v8170_v29 = vld [vmem:[%s11535_s5 + $0x3f8] ss:$12 sps:$4 sm:$0xff]  }
 0x3c9   : > { %4074 = vmatpush1.bf16.msra.mxu1 %v8106_v0  ;;  %4032 = vmatprep.subr.bf16.mxu0 %v8109_v44  ;;  %v8173_v0 = vld [vmem:[%s11535_s5 + $0x52c] ss:$12 sps:$4 sm:$0xff]   ;;  %v8171_v44 = vld [vmem:[%s11535_s5 + $0x528] ss:$12 sps:$4 sm:$0xff]  }
 0x3ca   : > { %4075 = vmatprep.subr.bf16.mxu1 %v11581_v26 }
 0x3cc   : > { %4033 = vmatpush1.bf16.msra.mxu0 %v8107_v49  ;;  %v8174_v49 = vld [vmem:[%s11535_s5 + $0x530] ss:$12 sps:$4 sm:$0xff]  }
 0x3cd   : > { %4076 = vmatpush1.bf16.msra.mxu1 %v8110_v5  ;;  %4034 = vmatprep.subr.bf16.mxu0 %v8113_v58  ;;  %v8177_v5 = vld [vmem:[%s11535_s5 + $0x514] ss:$12 sps:$4 sm:$0xff]   ;;  %v8175_v58 = vld [vmem:[%s11535_s5 + $0x510] ss:$12 sps:$4 sm:$0xff]  }
 0x3ce   : > { %4077 = vmatprep.subr.bf16.mxu1 %v11581_v26 }
 0x3d0   : > { %4035 = vmatpush1.bf16.msra.mxu0 %v8111_v60  ;;  %v8178_v60 = vld [vmem:[%s11535_s5 + $0x518] ss:$12 sps:$4 sm:$0xff]  }
 0x3d1   : > { %4078 = vmatpush1.bf16.msra.mxu1 %v8114_v42  ;;  %4040 = vmatprep.subr.bf16.mxu0 %v8117_v56  ;;  %v8181_v42 = vld [vmem:[%s11535_s5 + $0x4fc] ss:$12 sps:$4 sm:$0xff]   ;;  %v8179_v56 = vld [vmem:[%s11535_s5 + $0x4f8] ss:$12 sps:$4 sm:$0xff]  }
 0x3d2   : > { %4083 = vmatprep.subr.bf16.mxu1 %v11581_v26 }
 0x3d4   : > { %4041 = vmatpush2.bf16.msra.mxu0 %v8115_v63  ;;  %v8182_v63 = vld [vmem:[%s11535_s5 + $0x500] ss:$12 sps:$4 sm:$0xff]  }
 0x3d5   : > { %4084 = vmatpush2.bf16.msra.mxu1 %v8118_v43  ;;  %4042 = vmatprep.subr.bf16.mxu0 %v8121_v28  ;;  %v8185_v43 = vld [vmem:[%s11535_s5 + $0x4e4] ss:$12 sps:$4 sm:$0xff]  }
 0x3d6   : > { %4085 = vmatprep.subr.bf16.mxu1 %v11581_v26  ;;  %v4112_v28 = vld [vmem:[#allocation2 + $0x10] sm:$0x1f] }
 0x3d8   : > { %4043 = vmatpush2.bf16.msra.mxu0 %v8119_v1  ;;  %v8183_v1 = vld [vmem:[%s11535_s5 + $0x4e0] ss:$12 sps:$4 sm:$0xff]  }
 0x3d9   : > { %4086 = vmatpush2.bf16.msra.mxu1 %v8122_v33  ;;  %4044 = vmatprep.subr.bf16.mxu0 %v8125_v61  ;;  %v4110_v33 = vld [vmem:[#allocation2] sm:$0xf8]  ;;  %v8186_v61 = vld [vmem:[%s11535_s5 + $0x4e8] ss:$12 sps:$4 sm:$0xff]  }
 0x3da   : > { %4087 = vmatprep.subr.bf16.mxu1 %v11581_v26 }
 0x3dc   : > { %4045 = vmatpush2.bf16.msra.mxu0 %v8123_v17  ;;  %v8189_v17 = vld [vmem:[%s11535_s5 + $0x4cc] ss:$12 sps:$4 sm:$0xff]  }
 0x3dd   : > { %4088 = vmatpush2.bf16.msra.mxu1 %v8126_v18  ;;  %4046 = vmatprep.subr.bf16.mxu0 %v8129_v4  ;;  %v4114_v18 = vpack.c.bf16 %v4112_v28, %v4110_v33  ;;  %v8187_v4 = vld [vmem:[%s11535_s5 + $0x4c8] ss:$12 sps:$4 sm:$0xff]   ;;  %v8243_v28 = vld [vmem:[%s11535_s5 + $0x618] ss:$12 sps:$4 sm:$0xff]  }
 0x3de   : > { %4089 = vmatprep.subr.bf16.mxu1 %v11581_v26  ;;  %v8249_v33 = vld [vmem:[%s11535_s5 + $0x604] ss:$12 sps:$4 sm:$0xff]  }
 0x3e0   : > { %4047 = vmatpush2.bf16.msra.mxu0 %v8127_v2  ;;  %v8190_v2 = vld [vmem:[%s11535_s5 + $0x4d0] ss:$12 sps:$4 sm:$0xff]  }
 0x3e1   : > { %4090 = vmatpush2.bf16.msra.mxu1 %v8130_v21  ;;  %4048 = vmatprep.subr.bf16.mxu0 %v8133_v22  ;;  %v4174_v21 = vshrl.u32 %v4114_v18, 16  ;;  %v4177_v22 = vshll.u32 %v4114_v18, 16  ;;  %v4507_v18 = vld [vmem:[#allocation2] sm:$0xf0] }
 0x3e2   : > { %4091 = vmatprep.subr.bf16.mxu1 %v11581_v26 }
 0x3e4   : > { %4049 = vmatpush2.bf16.msra.mxu0 %v8131_v15  ;;  %v8194_v15 = vld [vmem:[%s11535_s5 + $0x4b8] ss:$12 sps:$4 sm:$0xff]  }
 0x3e5   : > { %4092 = vmatpush2.bf16.msra.mxu1 %v8134_v47  ;;  %4050 = vmatprep.subr.bf16.mxu0 %v8137_v45  ;;  %v4176_v47 = vrot.slane %v4174_v21, 1  ;;  %v4179_v45 = vrot.slane %v4177_v22, 2  ;;  %v4952_v21 = vld [vmem:[%s11537_s7 + $0xf8] sm:$0xff]  ;;  %v4951_v22 = vld [vmem:[%s11537_s7 + $0xf0] sm:$0xff] }
 0x3e6   : > { %4093 = vmatprep.subr.bf16.mxu1 %v11581_v26 }
 0x3e7   : > { %v4180_v40 = vor.u32 %v4179_v45, %v4176_v47  ;;  %v4947_v47 = vld [vmem:[%s11537_s7 + $0xd0] sm:$0xff]  ;;  %v4946_v45 = vld [vmem:[%s11537_s7 + $0xc8] sm:$0xff] }
 0x3e8   : > { %4051 = vmatpush2.bf16.msra.mxu0 %v8135_v35  ;;  %v8195_v35 = vld [vmem:[%s11535_s5 + $0x5e8] ss:$12 sps:$4 sm:$0xff]  }
 0x3e9   : > { %4094 = vmatpush2.bf16.msra.mxu1 %v8138_v50  ;;  %4417 = vmatprep.subr.bf16.mxu0 %v8141_v51  ;;  %v8198_v50 = vld [vmem:[%s11535_s5 + $0x5f0] ss:$12 sps:$4 sm:$0xff]   ;;  %v4573_v51 = vrot.slane %v4512_v38, 2 }
 0x3ea   : > { %4460 = vmatprep.subr.bf16.mxu1 %v11581_v26  ;;  %v4943_v38 = vld [vmem:[%s11537_s7 + $0xb0] sm:$0xff] }
 0x3eb   : > { %4053 = vmatmul.mubr.bf16.vlgmr.msra.gmra.mxu0 %v3790_v41 }
 0x3ec   : > { %4096 = vmatmul.mubr.bf16.vlgmr.msra.gmra.mxu1 %v3790_v41  ;;  %4418 = vmatpush1.bf16.msra.mxu0 %v8139_v57  ;;  %v8205_v57 = vld [vmem:[%s11535_s5 + $0x5bc] ss:$12 sps:$4 sm:$0xff]   ;;  %v8203_v41 = vld [vmem:[%s11535_s5 + $0x5b8] ss:$12 sps:$4 sm:$0xff]  }
 0x3ed   : > { %7309 = vmatprep.mubr.msk.bf16.mxu0 %vm2958_vm7, %v4188_v16  ;;  %4461 = vmatpush1.bf16.msra.mxu1 %v8142_v6  ;;  %v8206_v6 = vld [vmem:[%s11535_s5 + $0x5c0] ss:$12 sps:$4 sm:$0xff]  }
 0x3ee   : > { %7310 = vmatprep.mubr.msk.bf16.mxu1 %vm2958_vm7, %v4188_v16  ;;  %4419 = vmatprep.subr.bf16.mxu0 %v8145_v7  ;;  %v8209_v7 = vld [vmem:[%s11535_s5 + $0x5a4] ss:$12 sps:$4 sm:$0xff]   ;;  %v8207_v16 = vld [vmem:[%s11535_s5 + $0x5a0] ss:$12 sps:$4 sm:$0xff]  }
 0x3ef   : > { %4462 = vmatprep.subr.bf16.mxu1 %v11581_v26 }
 0x3f0   : > { %4420 = vmatpush1.bf16.msra.mxu0 %v8143_v30  ;;  %v8210_v30 = vld [vmem:[%s11535_s5 + $0x5a8] ss:$12 sps:$4 sm:$0xff]  }
 0x3f1   : > { %4463 = vmatpush1.bf16.msra.mxu1 %v8146_v59  ;;  %4421 = vmatprep.subr.bf16.mxu0 %v8149_v55  ;;  %v8213_v59 = vld [vmem:[%s11535_s5 + $0x58c] ss:$12 sps:$4 sm:$0xff]   ;;  %v8211_v55 = vld [vmem:[%s11535_s5 + $0x588] ss:$12 sps:$4 sm:$0xff]  }
 0x3f2   : > { %4464 = vmatprep.subr.bf16.mxu1 %v11581_v26 }
 0x3f4   : > { %4422 = vmatpush1.bf16.msra.mxu0 %v8147_v12  ;;  %v8214_v12 = vld [vmem:[%s11535_s5 + $0x590] ss:$12 sps:$4 sm:$0xff]  }
 0x3f5   : > { %4465 = vmatpush1.bf16.msra.mxu1 %v8150_v11  ;;  %4423 = vmatprep.subr.bf16.mxu0 %v8153_v13  ;;  %v8217_v11 = vld [vmem:[%s11535_s5 + $0x574] ss:$12 sps:$4 sm:$0xff]   ;;  %v8215_v13 = vld [vmem:[%s11535_s5 + $0x570] ss:$12 sps:$4 sm:$0xff]  }
 0x3f6   : > { %4466 = vmatprep.subr.bf16.mxu1 %v11581_v26 }
 0x3f8   : > { %4424 = vmatpush1.bf16.msra.mxu0 %v8151_v48  ;;  %v8218_v48 = vld [vmem:[%s11535_s5 + $0x578] ss:$12 sps:$4 sm:$0xff]  }
 0x3f9   : > { %4467 = vmatpush1.bf16.msra.mxu1 %v8154_v52  ;;  %4425 = vmatprep.subr.bf16.mxu0 %v8157_v20  ;;  %v8221_v52 = vld [vmem:[%s11535_s5 + $0x55c] ss:$12 sps:$4 sm:$0xff]   ;;  %v8219_v20 = vld [vmem:[%s11535_s5 + $0x558] ss:$12 sps:$4 sm:$0xff]  }
 0x3fa   : > { %4468 = vmatprep.subr.bf16.mxu1 %v11581_v26 }
 0x3fc   : > { %4426 = vmatpush1.bf16.msra.mxu0 %v8155_v24  ;;  %v8222_v24 = vld [vmem:[%s11535_s5 + $0x560] ss:$12 sps:$4 sm:$0xff]  }
 0x3fd   : > { %4469 = vmatpush1.bf16.msra.mxu1 %v8158_v31  ;;  %4427 = vmatprep.subr.bf16.mxu0 %v8161_v53  ;;  %v8225_v31 = vld [vmem:[%s11535_s5 + $0x544] ss:$12 sps:$4 sm:$0xff]  }
 0x3fe   : > { %4470 = vmatprep.subr.bf16.mxu1 %v11581_v26 }
 0x400   : > { %4428 = vmatpush1.bf16.msra.mxu0 %v8159_v54  ;;  %v8223_v54 = vld [vmem:[%s11535_s5 + $0x540] ss:$12 sps:$4 sm:$0xff]  }
 0x401   : > { %4471 = vmatpush1.bf16.msra.mxu1 %v8162_v10  ;;  %4429 = vmatprep.subr.bf16.mxu0 %v8165_v3  ;;  %v8226_v3 = vld [vmem:[%s11535_s5 + $0x548] ss:$12 sps:$4 sm:$0xff]  }
 0x402   : > { %4472 = vmatprep.subr.bf16.mxu1 %v11581_v26 }
 0x404   : > { %4430 = vmatpush1.bf16.msra.mxu0 %v8163_v23  ;;  %v8229_v23 = vld [vmem:[%s11535_s5 + $0x67c] ss:$12 sps:$4 sm:$0xff]  }
 0x405   : > { %4473 = vmatpush1.bf16.msra.mxu1 %v8166_v27  ;;  %4431 = vmatprep.subr.bf16.mxu0 %v8169_v34  ;;  %v8227_v34 = vld [vmem:[%s11535_s5 + $0x678] ss:$12 sps:$4 sm:$0xff]  }
 0x406   : > { %4474 = vmatprep.subr.bf16.mxu1 %v11581_v26 }
 0x408   : > { %4432 = vmatpush1.bf16.msra.mxu0 %v8167_v36 }
 0x409   : > { %4475 = vmatpush1.bf16.msra.mxu1 %v8170_v29  ;;  %4437 = vmatprep.subr.bf16.mxu0 %v8173_v0  ;;  %v8230_v29 = vld [vmem:[%s11535_s5 + $0x680] ss:$12 sps:$4 sm:$0xff]   ;;  %v8233_v0 = vld [vmem:[%s11535_s5 + $0x664] ss:$12 sps:$4 sm:$0xff]  }
 0x40a   : > { %4480 = vmatprep.subr.bf16.mxu1 %v11581_v26 }
 0x40c   : > { %4438 = vmatpush2.bf16.msra.mxu0 %v8171_v44  ;;  %v8231_v44 = vld [vmem:[%s11535_s5 + $0x660] ss:$12 sps:$4 sm:$0xff]  }
 0x40d   : > { %4481 = vmatpush2.bf16.msra.mxu1 %v8174_v49  ;;  %4439 = vmatprep.subr.bf16.mxu0 %v8177_v5  ;;  %v8234_v49 = vld [vmem:[%s11535_s5 + $0x668] ss:$12 sps:$4 sm:$0xff]   ;;  %v8237_v5 = vld [vmem:[%s11535_s5 + $0x64c] ss:$12 sps:$4 sm:$0xff]  }
 0x40e   : > { %4482 = vmatprep.subr.bf16.mxu1 %v11581_v26 }
 0x410   : > { %4440 = vmatpush2.bf16.msra.mxu0 %v8175_v58  ;;  %v8235_v58 = vld [vmem:[%s11535_s5 + $0x648] ss:$12 sps:$4 sm:$0xff]  }
 0x411   : > { %4483 = vmatpush2.bf16.msra.mxu1 %v8178_v60  ;;  %4441 = vmatprep.subr.bf16.mxu0 %v8181_v42  ;;  %v8238_v60 = vld [vmem:[%s11535_s5 + $0x650] ss:$12 sps:$4 sm:$0xff]   ;;  %v8241_v42 = vld [vmem:[%s11535_s5 + $0x634] ss:$12 sps:$4 sm:$0xff]  }
 0x412   : > { %4484 = vmatprep.subr.bf16.mxu1 %v11581_v26 }
 0x414   : > { %4442 = vmatpush2.bf16.msra.mxu0 %v8179_v56  ;;  %v8239_v56 = vld [vmem:[%s11535_s5 + $0x630] ss:$12 sps:$4 sm:$0xff]  }
 0x415   : > { %4485 = vmatpush2.bf16.msra.mxu1 %v8182_v63  ;;  %4443 = vmatprep.subr.bf16.mxu0 %v8185_v43  ;;  %v8242_v63 = vld [vmem:[%s11535_s5 + $0x638] ss:$12 sps:$4 sm:$0xff]   ;;  %v8245_v43 = vld [vmem:[%s11535_s5 + $0x61c] ss:$12 sps:$4 sm:$0xff]  }
 0x416   : > { %4486 = vmatprep.subr.bf16.mxu1 %v11581_v26 }
 0x418   : > { %4444 = vmatpush2.bf16.msra.mxu0 %v8183_v1  ;;  %v8246_v1 = vld [vmem:[%s11535_s5 + $0x620] ss:$12 sps:$4 sm:$0xff]  }
 0x419   : > { %4487 = vmatpush2.bf16.msra.mxu1 %v8186_v61  ;;  %4445 = vmatprep.subr.bf16.mxu0 %v8189_v17  ;;  %v4509_v61 = vld [vmem:[#allocation2 + $0x10] sm:$0x3f]  ;;  %v8247_v17 = vld [vmem:[%s11535_s5 + $0x600] ss:$12 sps:$4 sm:$0xff]  }
 0x41a   : > { %4488 = vmatprep.subr.bf16.mxu1 %v11581_v26 }
 0x41c   : > { %4446 = vmatpush2.bf16.msra.mxu0 %v8187_v4  ;;  %v8250_v4 = vld [vmem:[%s11535_s5 + $0x608] ss:$12 sps:$4 sm:$0xff]  }
 0x41d   : > { %4489 = vmatpush2.bf16.msra.mxu1 %v8190_v2  ;;  %4447 = vmatprep.subr.bf16.mxu0 %v8193_v8  ;;  %v4511_v2 = vpack.c.bf16 %v4509_v61, %v4507_v18  ;;  %v4977_v61 = vld [vmem:[%s11537_s7 + $0x1c0] sm:$0xff]  ;;  %v4975_v18 = vld [vmem:[%s11537_s7 + $0x1b0] sm:$0xff] }
 0x41e   : > { %4490 = vmatprep.subr.bf16.mxu1 %v11581_v26 }
 0x41f   : > { %v4572_v8 = vrot.slane %v4511_v2, 2  ;;  %v4973_v2 = vld [vmem:[%s11537_s7 + $0x1a0] sm:$0xff] }
 0x420   : > { %4448 = vmatpush2.bf16.msra.mxu0 %v8191_v25  ;;  %v4950_v25 = vld [vmem:[%s11537_s7 + $0xe8] sm:$0xff] }
 0x421   : > { %4491 = vmatpush2.bf16.msra.mxu1 %v8194_v15  ;;  %4802 = vmatprep.subr.bf16.mxu0 %v8197_v32  ;;  %v4948_v15 = vld [vmem:[%s11537_s7 + $0xd8] sm:$0xff]  ;;  %v4945_v32 = vld [vmem:[%s11537_s7 + $0xc0] sm:$0xff] }
 0x422   : > { %4845 = vmatprep.subr.bf16.mxu1 %v11581_v26 }
 0x423   : > { %4450 = vmatmul.mubr.bf16.vlgmr.msra.gmra.mxu0 %v4180_v40 }
 0x424   : > { %4493 = vmatmul.mubr.bf16.vlgmr.msra.gmra.mxu1 %v4180_v40  ;;  %4803 = vmatpush1.bf16.msra.mxu0 %v8195_v35  ;;  %v4942_v35 = vld [vmem:[%s11537_s7 + $0xa8] sm:$0xff]  ;;  %v4941_v40 = vld [vmem:[%s11537_s7 + $0xa0] sm:$0xff] }
 0x425   : > { %7409 = vmatprep.mubr.msk.bf16.mxu0 %vm2958_vm7, %v4573_v51  ;;  %4846 = vmatpush1.bf16.msra.mxu1 %v8198_v50  ;;  %v4940_v50 = vld [vmem:[%s11537_s7 + $0x98] sm:$0xff] }
 0x426   : > { %7410 = vmatprep.mubr.msk.bf16.mxu1 %vm2958_vm7, %v4573_v51  ;;  %4804 = vmatprep.subr.bf16.mxu0 %v8201_v46  ;;  %v4939_v46 = vld [vmem:[%s11537_s7 + $0x90] sm:$0xff]  ;;  %v4938_v51 = vld [vmem:[%s11537_s7 + $0x88] sm:$0xff] }
 0x427   : > { %4847 = vmatprep.subr.bf16.mxu1 %v11581_v26 }
 0x428   : > { %4805 = vmatpush1.bf16.msra.mxu0 %v8199_v19 }
 0x429   : > { %4848 = vmatpush1.bf16.msra.mxu1 %v8202_v9  ;;  %4806 = vmatprep.subr.bf16.mxu0 %v8205_v57  ;;  %v4937_v9 = vld [vmem:[%s11537_s7 + $0x80] sm:$0xff] }
 0x42a   : > { %4849 = vmatprep.subr.bf16.mxu1 %v11581_v26 }
 0x42c   : > { %4807 = vmatpush1.bf16.msra.mxu0 %v8203_v41  ;;  %v4936_v41 = vld [vmem:[%s11537_s7 + $0x78] sm:$0xff] }
 0x42d   : > { %4850 = vmatpush1.bf16.msra.mxu1 %v8206_v6  ;;  %4808 = vmatprep.subr.bf16.mxu0 %v8209_v7  ;;  %v4935_v7 = vld [vmem:[%s11537_s7 + $0x70] sm:$0xff] }
 0x42e   : > { %4851 = vmatprep.subr.bf16.mxu1 %v11581_v26 }
 0x430   : > { %4809 = vmatpush1.bf16.msra.mxu0 %v8207_v16  ;;  %v4934_v16 = vld [vmem:[%s11537_s7 + $0x68] sm:$0xff] }
 0x431   : > { %4852 = vmatpush1.bf16.msra.mxu1 %v8210_v30  ;;  %4810 = vmatprep.subr.bf16.mxu0 %v8213_v59  ;;  %v4933_v59 = vld [vmem:[%s11537_s7 + $0x60] sm:$0xff] }
 0x432   : > { %4853 = vmatprep.subr.bf16.mxu1 %v11581_v26 }
 0x434   : > { %4811 = vmatpush1.bf16.msra.mxu0 %v8211_v55  ;;  %v5000_v55 = vld [vmem:[%s11537_s7 + $0x278] sm:$0xff] }
 0x435   : > { %4854 = vmatpush1.bf16.msra.mxu1 %v8214_v12  ;;  %4812 = vmatprep.subr.bf16.mxu0 %v8217_v11  ;;  %v4932_v11 = vld [vmem:[%s11537_s7 + $0x58] sm:$0xff] }
 0x436   : > { %4855 = vmatprep.subr.bf16.mxu1 %v11581_v26 }
 0x438   : > { %4813 = vmatpush1.bf16.msra.mxu0 %v8215_v13  ;;  %v4999_v13 = vld [vmem:[%s11537_s7 + $0x270] sm:$0xff] }
 0x439   : > { %4856 = vmatpush1.bf16.msra.mxu1 %v8218_v48  ;;  %4814 = vmatprep.subr.bf16.mxu0 %v8221_v52  ;;  %v4931_v52 = vld [vmem:[%s11537_s7 + $0x50] sm:$0xff] }
 0x43a   : > { %4857 = vmatprep.subr.bf16.mxu1 %v11581_v26 }
 0x43b   : > { %v10605_v53 = vpop.f32.mrf.mxu1 }
 0x43c   : > { %4815 = vmatpush1.bf16.msra.mxu0 %v8219_v20  ;;  %v4998_v20 = vld [vmem:[%s11537_s7 + $0x268] sm:$0xff] }
 0x43d   : > { %4858 = vmatpush1.bf16.msra.mxu1 %v8222_v24  ;;  %v3409_v10 = vpop.f32.mrf.mxu1  ;;  %4816 = vmatprep.subr.bf16.mxu0 %v8225_v31  ;;  %v4997_v24 = vld [vmem:[%s11537_s7 + $0x260] sm:$0xff]  ;;  %v4930_v31 = vld [vmem:[%s11537_s7 + $0x48] sm:$0xff] }
 0x43e   : > { %4859 = vmatprep.subr.bf16.mxu1 %v11581_v26  ;;  %v4995_v10 = vld [vmem:[%s11537_s7 + $0x250] sm:$0xff] }
 0x43f   : > { %v10617_v27 = vpop.f32.mrf.mxu1 }
 0x440   : > { %4817 = vmatpush1.bf16.msra.mxu0 %v8223_v54  ;;  %v4929_v54 = vld [vmem:[%s11537_s7 + $0x40] sm:$0xff] }
 0x441   : > { %4860 = vmatpush1.bf16.msra.mxu1 %v8226_v3  ;;  %v3412_v36 = vpop.f32.mrf.mxu1  ;;  %4822 = vmatprep.subr.bf16.mxu0 %v8229_v23  ;;  %v4994_v3 = vld [vmem:[%s11537_s7 + $0x248] sm:$0xff]  ;;  %v4928_v23 = vld [vmem:[%s11537_s7 + $0x38] sm:$0xff] }
 0x442   : > { %4865 = vmatprep.subr.bf16.mxu1 %v11581_v26  ;;  %v4992_v36 = vld [vmem:[%s11537_s7 + $0x238] sm:$0xff] }
 0x444   : > { %4823 = vmatpush2.bf16.msra.mxu0 %v8227_v34  ;;  %v4927_v34 = vld [vmem:[%s11537_s7 + $0x30] sm:$0xff] }
 0x445   : > { %4866 = vmatpush2.bf16.msra.mxu1 %v8230_v29  ;;  %4824 = vmatprep.subr.bf16.mxu0 %v8233_v0  ;;  %v4926_v29 = vld [vmem:[%s11537_s7 + $0x28] sm:$0xff]  ;;  %v4991_v0 = vld [vmem:[%s11537_s7 + $0x230] sm:$0xff] }
 0x446   : > { %4867 = vmatprep.subr.bf16.mxu1 %v11581_v26 }
 0x448   : > { %4825 = vmatpush2.bf16.msra.mxu0 %v8231_v44  ;;  %v4925_v44 = vld [vmem:[%s11537_s7 + $0x20] sm:$0xff] }
 0x449   : > { %4868 = vmatpush2.bf16.msra.mxu1 %v8234_v49  ;;  %4826 = vmatprep.subr.bf16.mxu0 %v8237_v5  ;;  %v4924_v49 = vld [vmem:[%s11537_s7 + $0x18] sm:$0xff]  ;;  %v4923_v5 = vld [vmem:[%s11537_s7 + $0x10] sm:$0xff] }
 0x44a   : > { %4869 = vmatprep.subr.bf16.mxu1 %v11581_v26 }
 0x44c   : > { %4827 = vmatpush2.bf16.msra.mxu0 %v8235_v58  ;;  %v4922_v58 = vld [vmem:[%s11537_s7 + $0x8] sm:$0xff] }
 0x44d   : > { %4870 = vmatpush2.bf16.msra.mxu1 %v8238_v60  ;;  %4828 = vmatprep.subr.bf16.mxu0 %v8241_v42  ;;  %v4921_v60 = vld [vmem:[%s11537_s7] sm:$0xff]  ;;  %v4984_v42 = vld [vmem:[%s11537_s7 + $0x1f8] sm:$0xff] }
 0x44e   : > { %4871 = vmatprep.subr.bf16.mxu1 %v11581_v26 }
 0x450   : > { %4829 = vmatpush2.bf16.msra.mxu0 %v8239_v56  ;;  %v4983_v56 = vld [vmem:[%s11537_s7 + $0x1f0] sm:$0xff] }
 0x451   : > { %4872 = vmatpush2.bf16.msra.mxu1 %v8242_v63  ;;  %4830 = vmatprep.subr.bf16.mxu0 %v8245_v43  ;;  %v4982_v63 = vld [vmem:[%s11537_s7 + $0x1e8] sm:$0xff]  ;;  %v4981_v43 = vld [vmem:[%s11537_s7 + $0x1e0] sm:$0xff] }
 0x452   : > { %4873 = vmatprep.subr.bf16.mxu1 %v11581_v26 }
 0x454   : > { %4831 = vmatpush2.bf16.msra.mxu0 %v8243_v28  ;;  %v4980_v28 = vld [vmem:[%s11537_s7 + $0x1d8] sm:$0xff] }
 0x455   : > { %4874 = vmatpush2.bf16.msra.mxu1 %v8246_v1  ;;  %4832 = vmatprep.subr.bf16.mxu0 %v8249_v33  ;;  %v4979_v1 = vld [vmem:[%s11537_s7 + $0x1d0] sm:$0xff]  ;;  %v4978_v33 = vld [vmem:[%s11537_s7 + $0x1c8] sm:$0xff] }
 0x456   : > { %4875 = vmatprep.subr.bf16.mxu1 %v11581_v26 }
 0x458   : > { %4833 = vmatpush2.bf16.msra.mxu0 %v8247_v17  ;;  %v4976_v17 = vld [vmem:[%s11537_s7 + $0x1b8] sm:$0xff] }
 0x459   : > { %4876 = vmatpush2.bf16.msra.mxu1 %v8250_v4  ;;  %5007 = vmatprep.subr.mxu0 %v4952_v21  ;;  %v4974_v4 = vld [vmem:[%s11537_s7 + $0x1a8] sm:$0xff]  ;;  %v4971_v21 = vld [vmem:[%s11537_s7 + $0x190] sm:$0xff] }
 0x45a   : > { %5100 = vmatprep.subr.mxu1 %v5000_v55  ;;  %v7444_v55 = vld [vmem:[%s11537_s7 + $0x378] sm:$0xff] }
 0x45b   : > { %4835 = vmatmul.mubr.bf16.vlgmr.msra.gmra.mxu0 %v4572_v8 }
 0x45c   : > { %4878 = vmatmul.mubr.bf16.vlgmr.msra.gmra.mxu1 %v4572_v8  ;;  %5008 = vmatpush1.msra.mxu0 %v4951_v22  ;;  %v4972_v8 = vld [vmem:[%s11537_s7 + $0x198] sm:$0xff]  ;;  %v4970_v22 = vld [vmem:[%s11537_s7 + $0x188] sm:$0xff] }
 0x45d   : > { %5148 = vmatprep.mubr.f32.mxu1 %v8327_v39  ;;  %5009 = vmatprep.subr.mxu0 %v4950_v25  ;;  %v4969_v25 = vld [vmem:[%s11537_s7 + $0x180] sm:$0xff] }
 0x45e   : > { %5010 = vmatpush1.msra.mxu0 %v4949_v14  ;;  %5101 = vmatpush1.msra.mxu1 %v4999_v13  ;;  %v4968_v14 = vld [vmem:[%s11537_s7 + $0x178] sm:$0xff]  ;;  %v4953_v13 = vld [vmem:[%s11537_s7 + $0x100] sm:$0xff] }
 0x45f   : > { %5011 = vmatprep.subr.mxu0 %v4948_v15  ;;  %5102 = vmatprep.subr.mxu1 %v4998_v20  ;;  %v4967_v15 = vld [vmem:[%s11537_s7 + $0x170] sm:$0xff] }
 0x460   : > { %5012 = vmatpush1.msra.mxu0 %v4947_v47  ;;  %5103 = vmatpush1.msra.mxu1 %v4997_v24  ;;  %v4966_v47 = vld [vmem:[%s11537_s7 + $0x168] sm:$0xff] }
 0x461   : > { %5013 = vmatprep.subr.mxu0 %v4946_v45  ;;  %v4965_v45 = vld [vmem:[%s11537_s7 + $0x160] sm:$0xff] }
 0x462   : > { %5014 = vmatpush1.msra.mxu0 %v4945_v32  ;;  %v4964_v32 = vld [vmem:[%s11537_s7 + $0x158] sm:$0xff] }
 0x463   : > { %5015 = vmatprep.subr.mxu0 %v4944_v37  ;;  %v4963_v37 = vld [vmem:[%s11537_s7 + $0x150] sm:$0xff] }
 0x464   : > { %5016 = vmatpush1.msra.mxu0 %v4943_v38  ;;  %v4962_v38 = vld [vmem:[%s11537_s7 + $0x148] sm:$0xff] }
 0x465   : > { %5017 = vmatprep.subr.mxu0 %v4942_v35  ;;  %v4961_v35 = vld [vmem:[%s11537_s7 + $0x140] sm:$0xff] }
 0x466   : > { %5018 = vmatpush1.msra.mxu0 %v4941_v40  ;;  %v4990_v40 = vld [vmem:[%s11537_s7 + $0x228] sm:$0xff] }
 0x467   : > { %5019 = vmatprep.subr.mxu0 %v4940_v50  ;;  %v4960_v50 = vld [vmem:[%s11537_s7 + $0x138] sm:$0xff] }
 0x468   : > { %5020 = vmatpush1.msra.mxu0 %v4939_v46  ;;  %v4989_v46 = vld [vmem:[%s11537_s7 + $0x220] sm:$0xff] }
 0x469   : > { %5021 = vmatprep.subr.mxu0 %v4938_v51  ;;  %v4959_v51 = vld [vmem:[%s11537_s7 + $0x130] sm:$0xff] }
 0x46a   : > { %5022 = vmatpush1.msra.mxu0 %v4937_v9  ;;  %v4958_v9 = vld [vmem:[%s11537_s7 + $0x128] sm:$0xff] }
 0x46b   : > { %5023 = vmatprep.subr.mxu0 %v4936_v41  ;;  %v4987_v41 = vld [vmem:[%s11537_s7 + $0x210] sm:$0xff] }
 0x46c   : > { %5024 = vmatpush1.msra.mxu0 %v4935_v7  ;;  %v4986_v7 = vld [vmem:[%s11537_s7 + $0x208] sm:$0xff] }
 0x46d   : > { %5025 = vmatprep.subr.mxu0 %v4934_v16  ;;  %v4956_v16 = vld [vmem:[%s11537_s7 + $0x118] sm:$0xff] }
 0x46e   : > { %5026 = vmatpush1.msra.mxu0 %v4933_v59  ;;  %v4955_v59 = vld [vmem:[%s11537_s7 + $0x110] sm:$0xff] }
 0x46f   : > { %5027 = vmatprep.subr.mxu0 %v4932_v11  ;;  %v4954_v11 = vld [vmem:[%s11537_s7 + $0x108] sm:$0xff] }
 0x470   : > { %5028 = vmatpush1.msra.mxu0 %v4931_v52 }
 0x471   : > { %5029 = vmatprep.subr.mxu0 %v4930_v31 }
 0x472   : > { %5030 = vmatpush1.msra.mxu0 %v4929_v54 }
 0x473   : > { %v3718_v19 = vpop.f32.mrf.mxu1  ;;  %5031 = vmatprep.subr.mxu0 %v4928_v23 }
 0x474   : > { %v10726_v57 = vadd.f32 %v3718_v19, %v10605_v53  ;;  %v4996_v53 = vld [vmem:[%s11537_s7 + $0x258] sm:$0xff]  ;;  %5032 = vmatpush1.msra.mxu0 %v4927_v34 }
 0x475   : > { %v3720_v6 = vpop.f32.mrf.mxu1  ;;  %5104 = vmatprep.subr.mxu1 %v4996_v53  ;;  %5033 = vmatprep.subr.mxu0 %v4926_v29  ;;  %v4988_v19 = vld [vmem:[%s11537_s7 + $0x218] sm:$0xff] }
 0x476   : > { %5105 = vmatpush1.msra.mxu1 %v4995_v10  ;;  %5034 = vmatpush1.msra.mxu0 %v4925_v44  ;;  %v4957_v6 = vld [vmem:[%s11537_s7 + $0x120] sm:$0xff]  ;;  %v3364_v10 = vpop.f32.mrf.mxu0 }
 0x477   : > { %v3721_v30 = vpop.f32.mrf.mxu1  ;;  %5106 = vmatprep.subr.mxu1 %v4994_v3  ;;  %5035 = vmatprep.subr.mxu0 %v4924_v49 }
 0x478   : > { %v10744_v12 = vadd.f32 %v3721_v30, %v10617_v27  ;;  %v4993_v27 = vld [vmem:[%s11537_s7 + $0x240] sm:$0xff]  ;;  %5036 = vmatpush1.msra.mxu0 %v4923_v5 }
 0x479   : > { %v3723_v48 = vpop.f32.mrf.mxu1  ;;  %5107 = vmatpush1.msra.mxu1 %v4993_v27  ;;  %5037 = vmatprep.subr.mxu0 %v4922_v58  ;;  %v4985_v30 = vld [vmem:[%s11537_s7 + $0x200] sm:$0xff]  ;;  %v3366_v27 = vpop.f32.mrf.mxu0 }
 0x47a   : > { %5108 = vmatprep.subr.mxu1 %v4992_v36  ;;  %5038 = vmatpush1.msra.mxu0 %v4921_v60  ;;  %v7492_v48 = vld [vmem:[%s11537_s7 + $0x4f8] sm:$0xff] }
 0x47b   : > { %5109 = vmatpush1.msra.mxu1 %v4991_v0  ;;  %5039 = vmatprep.subr.mxu0 %v4984_v42  ;;  %v3368_v29 = vpop.f32.mrf.mxu0 }
 0x47c   : > { %5040 = vmatpush2.msra.mxu0 %v4983_v56  ;;  %5110 = vmatprep.subr.mxu1 %v4990_v40 }
 0x47d   : > { %5041 = vmatprep.subr.mxu0 %v4982_v63  ;;  %5111 = vmatpush1.msra.mxu1 %v4989_v46  ;;  %v3370_v0 = vpop.f32.mrf.mxu0 }
 0x47e   : > { %5042 = vmatpush2.msra.mxu0 %v4981_v43  ;;  %5112 = vmatprep.subr.mxu1 %v4988_v19 }
 0x47f   : > { %5043 = vmatprep.subr.mxu0 %v4980_v28  ;;  %5113 = vmatpush1.msra.mxu1 %v4987_v41  ;;  %v3675_v44 = vpop.f32.mrf.mxu0 }
 0x480   : > { %5044 = vmatpush2.msra.mxu0 %v4979_v1  ;;  %5114 = vmatprep.subr.mxu1 %v4986_v7  ;;  %v3676_v28 = vadd.f32 %v3675_v44, %v3364_v10 }
 0x481   : > { %5045 = vmatprep.subr.mxu0 %v4978_v33  ;;  %5115 = vmatpush1.msra.mxu1 %v4985_v30  ;;  %v3677_v49 = vpop.f32.mrf.mxu0 }
 0x482   : > { %5046 = vmatpush2.msra.mxu0 %v4977_v61  ;;  %5242 = vmatprep.subr.mxu1 %v7444_v55  ;;  %v3678_v1 = vadd.f32 %v3677_v49, %v3366_v27  ;;  %v4892_v61 = vld [vmem:[%s11536_s6] sm:$0x7]  ;;  %v7439_v49 = vld [vmem:[%s11537_s7 + $0x350] sm:$0xff] }
 0x483   : > { %5047 = vmatprep.subr.mxu0 %v4976_v17  ;;  %v3679_v5 = vpop.f32.mrf.mxu0 }
 0x484   : > { %5048 = vmatpush2.msra.mxu0 %v4975_v18 }
 0x485   : > { %5049 = vmatprep.subr.mxu0 %v4974_v4  ;;  %v3681_v58 = vpop.f32.mrf.mxu0 }
 0x486   : > { %5050 = vmatpush2.msra.mxu0 %v4973_v2  ;;  %v3680_v2 = vadd.f32 %v3679_v5, %v3368_v29 }
 0x487   : > { %5051 = vmatprep.subr.mxu0 %v4972_v8 }
 0x488   : > { %5052 = vmatpush2.msra.mxu0 %v4971_v21 }
 0x489   : > { %5053 = vmatprep.subr.mxu0 %v4970_v22  ;;  %v11582_v22 = vld [vmem:[#allocation15_spill] sm:$0xff] }
 0x48a   : > { %5054 = vmatpush2.msra.mxu0 %v4969_v25  ;;  %v4897_v25 = vrot.slane %v4892_v61, %v11582_v22 }
 0x48b   : > { %5055 = vmatprep.subr.mxu0 %v4968_v14  ;;  %v11583_v14 = vsub.s32 2, %v9382_v62 }
 0x48c   : > { %5056 = vmatpush2.msra.mxu0 %v4967_v15 }
 0x48d   : > { %5057 = vmatprep.subr.mxu0 %v4966_v47  ;;  %v4905_v15 = vrot.slane %v4892_v61, %v11583_v14  ;;  %v3682_v47 = vadd.f32 %v3681_v58, %v3370_v0  ;;  %v7490_v0 = vld [vmem:[%s11537_s7 + $0x4e8] sm:$0xff]  ;;  %v7429_v14 = vld [vmem:[%s11537_s7 + $0x300] sm:$0xff] }
 0x48e   : > { %5058 = vmatpush2.msra.mxu0 %v4965_v45  ;;  %v7438_v58 = vld [vmem:[%s11537_s7 + $0x348] sm:$0xff] }
 0x48f   : > { %5059 = vmatprep.subr.mxu0 %v4964_v32 }
 0x490   : > { %5060 = vmatpush2.msra.mxu0 %v4963_v37 }
 0x491   : > { %5061 = vmatprep.subr.mxu0 %v4962_v38  ;;  %v11584_v38 = vld [vmem:[#allocation16_spill] sm:$0xff] }
 0x492   : > { %5062 = vmatpush2.msra.mxu0 %v4961_v35  ;;  %v4901_v35 = vrot.slane %v4892_v61, %v11584_v38  ;;  %v7433_v61 = vld [vmem:[%s11537_s7 + $0x320] sm:$0xff] }
 0x493   : > { %5063 = vmatprep.subr.mxu0 %v4960_v50 }
 0x494   : > { %5064 = vmatpush2.msra.mxu0 %v4959_v51 }
 0x495   : > { %5065 = vmatprep.subr.mxu0 %v4958_v9 }
 0x496   : > { %5066 = vmatpush2.msra.mxu0 %v4957_v6 }
 0x497   : > { %5067 = vmatprep.subr.mxu0 %v4956_v16 }
 0x498   : > { %5068 = vmatpush2.msra.mxu0 %v4955_v59 }
 0x499   : > { %5069 = vmatprep.subr.mxu0 %v4954_v11 }
 0x49a   : > { %5070 = vmatpush2.msra.mxu0 %v4953_v13 }
 0x49b   : > { %5335 = vmatprep.subr.mxu0 %v7492_v48 }
 0x4ab   : > { %v4054_v60 = vpop.f32.mrf.mxu0 }
 0x4ac   : > { %v4097_v52 = vpop.f32.mrf.mxu1  ;;  %v4104_v33 = vadd.f32 %v4054_v60, %v3676_v28  ;;  %v7489_v60 = vld [vmem:[%s11537_s7 + $0x4e0] sm:$0xff]  ;;  %v7486_v28 = vld [vmem:[%s11537_s7 + $0x4c8] sm:$0xff] }
 0x4ad   : > { %v4106_v20 = vadd.f32 %v4097_v52, %v10726_v57  ;;  %v4056_v42 = vpop.f32.mrf.mxu0  ;;  %v7443_v52 = vld [vmem:[%s11537_s7 + $0x370] sm:$0xff] }
 0x4ae   : > { %v4099_v24 = vpop.f32.mrf.mxu1  ;;  %v4105_v18 = vadd.f32 %v4056_v42, %v3678_v1  ;;  %v7437_v42 = vld [vmem:[%s11537_s7 + $0x340] sm:$0xff]  ;;  %v7434_v1 = vld [vmem:[%s11537_s7 + $0x328] sm:$0xff] }
 0x4af   : > { %v4058_v57 = vpop.f32.mrf.mxu0 }
 0x4b0   : > { %v4100_v31 = vpop.f32.mrf.mxu1  ;;  %v4107_v46 = vadd.f32 %v4058_v57, %v3680_v2  ;;  %v7488_v57 = vld [vmem:[%s11537_s7 + $0x4d8] sm:$0xff]  ;;  %v7431_v2 = vld [vmem:[%s11537_s7 + $0x310] sm:$0xff] }
 0x4b1   : > { %v4109_v53 = vadd.f32 %v4100_v31, %v10744_v12  ;;  %v4060_v56 = vpop.f32.mrf.mxu0 }
 0x4b2   : > { %v4102_v54 = vpop.f32.mrf.mxu1  ;;  %v4108_v51 = vadd.f32 %v4060_v56, %v3682_v47  ;;  %v7428_v47 = vld [vmem:[%s11537_s7 + $0x2f8] sm:$0xff] }
 0x4b3   : > { %v7442_v54 = vld [vmem:[%s11537_s7 + $0x368] sm:$0xff] }
 0x4e3   : > { %v4451_v63 = vpop.f32.mrf.mxu0 }
 0x4e4   : > { %v4494_v3 = vpop.f32.mrf.mxu1  ;;  %v4501_v4 = vadd.f32 %v4451_v63, %v4104_v33  ;;  %v7436_v63 = vld [vmem:[%s11537_s7 + $0x338] sm:$0xff]  ;;  %v7485_v33 = vld [vmem:[%s11537_s7 + $0x4c0] sm:$0xff] }
 0x4e5   : > { %v4453_v43 = vpop.f32.mrf.mxu0  ;;  %v4503_v8 = vadd.f32 %v4494_v3, %v4106_v20 }
 0x4e6   : > { %v4496_v23 = vpop.f32.mrf.mxu1  ;;  %v4502_v45 = vadd.f32 %v4453_v43, %v4105_v18  ;;  %v7487_v43 = vld [vmem:[%s11537_s7 + $0x4d0] sm:$0xff]  ;;  %v7432_v18 = vld [vmem:[%s11537_s7 + $0x318] sm:$0xff] }
 0x4e7   : > { %v4455_v12 = vpop.f32.mrf.mxu0  ;;  %v7441_v23 = vld [vmem:[%s11537_s7 + $0x360] sm:$0xff] }
 0x4e8   : > { %v4497_v34 = vpop.f32.mrf.mxu1  ;;  %v4504_v62 = vadd.f32 %v4455_v12, %v4107_v46  ;;  %v7435_v12 = vld [vmem:[%s11537_s7 + $0x330] sm:$0xff]  ;;  %v7424_v46 = vld [vmem:[%s11537_s7 + $0x2d8] sm:$0xff] }
 0x4e9   : > { %v4457_v17 = vpop.f32.mrf.mxu0  ;;  %v4506_v41 = vadd.f32 %v4497_v34, %v4109_v53  ;;  %v7440_v34 = vld [vmem:[%s11537_s7 + $0x358] sm:$0xff] }
 0x4ea   : > { %v4499_v36 = vpop.f32.mrf.mxu1  ;;  %v4505_v30 = vadd.f32 %v4457_v17, %v4108_v51  ;;  %v7484_v17 = vld [vmem:[%s11537_s7 + $0x4b8] sm:$0xff]  ;;  %v7423_v51 = vld [vmem:[%s11537_s7 + $0x2d0] sm:$0xff] }
 0x4eb   : > { %v7491_v36 = vld [vmem:[%s11537_s7 + $0x4f0] sm:$0xff] }
 0x51b   : > { %v4836_v21 = vpop.f32.mrf.mxu0 }
 0x51c   : > { %v4886_v32 = vadd.f32 %v4836_v21, %v4501_v4  ;;  %v4879_v37 = vpop.f32.mrf.mxu1  ;;  %v7483_v4 = vld [vmem:[%s11537_s7 + $0x4b0] sm:$0xff]  ;;  %v7430_v21 = vld [vmem:[%s11537_s7 + $0x308] sm:$0xff] }
 0x51d   : > { %v4888_v40 = vadd.f32 %v4879_v37, %v4503_v8  ;;  %v4838_v50 = vpop.f32.mrf.mxu0  ;;  %v7482_v8 = vld [vmem:[%s11537_s7 + $0x4a8] sm:$0xff] }
 0x51e   : > { %v4887_v19 = vadd.f32 %v4838_v50, %v4502_v45  ;;  %v4881_v9 = vpop.f32.mrf.mxu1  ;;  %v10938_v6 = vadd.f32 %v4897_v25, %v4886_v32  ;;  %v7479_v45 = vld [vmem:[%s11537_s7 + $0x490] sm:$0xff]  ;;  %v7478_v37 = vld [vmem:[%s11537_s7 + $0x488] sm:$0xff]  ;;  %v7425_v50 = vld [vmem:[%s11537_s7 + $0x2e0] sm:$0xff] }
 0x51f   : > { %v10940_v7 = vadd.f32 %v4905_v15, %v4888_v40  ;;  %v4840_v16 = vpop.f32.mrf.mxu0  ;;  %v7427_v32 = vld [vmem:[%s11537_s7 + $0x2f0] sm:$0xff]  ;;  %v7477_v40 = vld [vmem:[%s11537_s7 + $0x480] sm:$0xff] }
 0x520   : > { %v4910_v59 = vadd.f32 %v4901_v35, %v4887_v19  ;;  %v4882_v55 = vpop.f32.mrf.mxu1  ;;  %v4889_v24 = vadd.f32 %v4840_v16, %v4504_v62  ;;  %v4915_v10 = vmax.f32 %v10938_v6, 0.0  ;;  %v7422_v19 = vld [vmem:[%s11537_s7 + $0x2c8] sm:$0xff]  ;;  %v7421_v9 = vld [vmem:[%s11537_s7 + $0x2c0] sm:$0xff]  ;;  %v7419_v16 = vld [vmem:[%s11537_s7 + $0x2b0] sm:$0xff] }
 0x521   : > { %v4917_v11 = vmax.f32 %v10940_v7, 0.0  ;;  %v4891_v13 = vadd.f32 %v4882_v55, %v4506_v41  ;;  %v4842_v48 = vpop.f32.mrf.mxu0  ;;  %v7420_v41 = vld [vmem:[%s11537_s7 + $0x2b8] sm:$0xff]  ;;  %v7418_v7 = vld [vmem:[%s11537_s7 + $0x2a8] sm:$0xff]  ;;  %v7417_v62 = vld [vmem:[%s11537_s7 + $0x2a0] sm:$0xff] }
 0x522   : > { %v4916_v20 = vmax.f32 %v4910_v59, 0.0  ;;  %v4890_v31 = vadd.f32 %v4842_v48, %v4505_v30  ;;  %v4884_v53 = vpop.f32.mrf.mxu1  ;;  %v10972_v44 = vadd.f32 %v4897_v25, %v4889_v24  ;;  %v7481_v25 = vld [vmem:[%s11537_s7 + $0x4a0] sm:$0xff]  ;;  %v7416_v30 = vld [vmem:[%s11537_s7 + $0x298] sm:$0xff]  ;;  %v7415_v59 = vld [vmem:[%s11537_s7 + $0x290] sm:$0xff] }
 0x523   : > { %v10950_v3 = vadd.f32 %v4905_v15, %v4891_v13  ;;  %7411 = vmatmul.mubr.msk.f32.vlgmr.msra.gmra.mxu1 %vm2284_vm4, %v4917_v11  ;;  %v7480_v15 = vld [vmem:[%s11537_s7 + $0x498] sm:$0xff]  ;;  %v7414_v55 = vld [vmem:[%s11537_s7 + $0x288] sm:$0xff]  ;;  %v7475_v48 = vld [vmem:[%s11537_s7 + $0x470] sm:$0xff] }
 0x524   : > { %v10958_v27 = vadd.f32 %v4901_v35, %v4890_v31  ;;  %5243 = vmatpush1.msra.mxu1 %v7443_v52  ;;  %5071 = vmatprep.mubr.f32.mxu0 %v4916_v20  ;;  %v4918_v56 = vmax.f32 %v10972_v44, 0.0  ;;  %v7426_v35 = vld [vmem:[%s11537_s7 + $0x2e8] sm:$0xff]  ;;  %v7476_v13 = vld [vmem:[%s11537_s7 + $0x478] sm:$0xff]  ;;  %v7471_v31 = vld [vmem:[%s11537_s7 + $0x450] sm:$0xff] }
 0x525   : > { %v4920_v29 = vmax.f32 %v10950_v3, 0.0  ;;  %5244 = vmatprep.subr.mxu1 %v7442_v54  ;;  %5072 = vmatmul.mubr.f32.vlgmr.msra.gmra.mxu0 %v4915_v10  ;;  %v7474_v52 = vld [vmem:[%s11537_s7 + $0x468] sm:$0xff]  ;;  %v7472_v24 = vld [vmem:[%s11537_s7 + $0x458] sm:$0xff]  ;;  %v7469_v54 = vld [vmem:[%s11537_s7 + $0x440] sm:$0xff] }
 0x526   : > { %5245 = vmatpush1.msra.mxu1 %v7441_v23  ;;  %5154 = vmatprep.mubr.f32.mxu1 %v8327_v39  ;;  %v4919_v5 = vmax.f32 %v10958_v27, 0.0  ;;  %v7470_v53 = vld [vmem:[%s11537_s7 + $0x448] sm:$0xff]  ;;  %v7468_v3 = vld [vmem:[%s11537_s7 + $0x438] sm:$0xff]  ;;  %v7467_v23 = vld [vmem:[%s11537_s7 + $0x430] sm:$0xff] }
 0x527   : > { %5246 = vmatprep.subr.mxu1 %v7440_v34  ;;  %5336 = vmatpush1.msra.mxu0 %v7491_v36  ;;  %v7466_v34 = vld [vmem:[%s11537_s7 + $0x428] sm:$0xff]  ;;  %v7465_v36 = vld [vmem:[%s11537_s7 + $0x420] sm:$0xff] }
 0x528   : > { %7412 = vmatmul.mubr.msk.f32.gmra.mxu1 %vm2284_vm4, %v4920_v29  ;;  %5337 = vmatprep.subr.mxu0 %v7490_v0  ;;  %v7463_v0 = vld [vmem:[%s11537_s7 + $0x410] sm:$0xff] }
 0x529   : > { %5247 = vmatpush1.msra.mxu1 %v7439_v49  ;;  %5306 = vmatprep.mubr.f32.mxu1 %v4916_v20  ;;  %v7473_v20 = vld [vmem:[%s11537_s7 + $0x460] sm:$0xff]  ;;  %v7462_v49 = vld [vmem:[%s11537_s7 + $0x408] sm:$0xff] }
 0x52a   : > { %5248 = vmatprep.subr.mxu1 %v7438_v58  ;;  %5338 = vmatpush1.msra.mxu0 %v7489_v60  ;;  %v7461_v58 = vld [vmem:[%s11537_s7 + $0x400] sm:$0xff]  ;;  %v7460_v60 = vld [vmem:[%s11537_s7 + $0x3f8] sm:$0xff] }
 0x52b   : > { %5077 = vmatprep.mubr.f32.mxu0 %v4919_v5  ;;  %5249 = vmatpush1.msra.mxu1 %v7437_v42  ;;  %v7459_v42 = vld [vmem:[%s11537_s7 + $0x3f0] sm:$0xff] }
 0x52c   : > { %5339 = vmatprep.subr.mxu0 %v7488_v57  ;;  %5078 = vmatmul.mubr.f32.gmra.mxu0 %v4918_v56  ;;  %v7458_v57 = vld [vmem:[%s11537_s7 + $0x3e8] sm:$0xff] }
 0x52d   : > { %5250 = vmatprep.subr.mxu1 %v7436_v63  ;;  %5340 = vmatpush1.msra.mxu0 %v7487_v43  ;;  %v7457_v63 = vld [vmem:[%s11537_s7 + $0x3e0] sm:$0xff]  ;;  %v7456_v43 = vld [vmem:[%s11537_s7 + $0x3d8] sm:$0xff] }
 0x52e   : > { %5251 = vmatpush1.msra.mxu1 %v7435_v12  ;;  %5341 = vmatprep.subr.mxu0 %v7486_v28  ;;  %v7455_v12 = vld [vmem:[%s11537_s7 + $0x3d0] sm:$0xff]  ;;  %v7454_v28 = vld [vmem:[%s11537_s7 + $0x3c8] sm:$0xff] }
 0x52f   : > { %5252 = vmatprep.subr.mxu1 %v7434_v1  ;;  %5342 = vmatpush1.msra.mxu0 %v7485_v33  ;;  %v7453_v1 = vld [vmem:[%s11537_s7 + $0x3c0] sm:$0xff]  ;;  %v7452_v33 = vld [vmem:[%s11537_s7 + $0x3b8] sm:$0xff] }
 0x530   : > { %5253 = vmatpush1.msra.mxu1 %v7433_v61  ;;  %5343 = vmatprep.subr.mxu0 %v7484_v17  ;;  %v7451_v61 = vld [vmem:[%s11537_s7 + $0x3b0] sm:$0xff]  ;;  %v7450_v17 = vld [vmem:[%s11537_s7 + $0x3a8] sm:$0xff] }
 0x531   : > { %5254 = vmatprep.subr.mxu1 %v7432_v18  ;;  %5344 = vmatpush1.msra.mxu0 %v7483_v4  ;;  %v7449_v18 = vld [vmem:[%s11537_s7 + $0x3a0] sm:$0xff]  ;;  %v7448_v4 = vld [vmem:[%s11537_s7 + $0x398] sm:$0xff] }
 0x532   : > { %5255 = vmatpush1.msra.mxu1 %v7431_v2  ;;  %5345 = vmatprep.subr.mxu0 %v7482_v8  ;;  %v7447_v2 = vld [vmem:[%s11537_s7 + $0x390] sm:$0xff]  ;;  %v7446_v8 = vld [vmem:[%s11537_s7 + $0x388] sm:$0xff] }
 0x533   : > { %5256 = vmatprep.subr.mxu1 %v7430_v21  ;;  %5346 = vmatpush1.msra.mxu0 %v7481_v25  ;;  %v7445_v21 = vld [vmem:[%s11537_s7 + $0x380] sm:$0xff] }
 0x534   : > { %5257 = vmatpush1.msra.mxu1 %v7429_v14  ;;  %5347 = vmatprep.subr.mxu0 %v7480_v15 }
 0x535   : > { %5258 = vmatprep.subr.mxu1 %v7428_v47  ;;  %5348 = vmatpush1.msra.mxu0 %v7479_v45 }
 0x536   : > { %5259 = vmatpush1.msra.mxu1 %v7427_v32  ;;  %5349 = vmatprep.subr.mxu0 %v7478_v37 }
 0x537   : > { %5260 = vmatprep.subr.mxu1 %v7426_v35  ;;  %5350 = vmatpush1.msra.mxu0 %v7477_v40 }
 0x538   : > { %5383 = vmatprep.mubr.f32.mxu0 %v8327_v39  ;;  %5261 = vmatpush1.msra.mxu1 %v7425_v50 }
 0x539   : > { %7493 = vmatmul.mubr.msk.f32.vlgmr.msra.gmra.mxu0 %vm2284_vm4, %v4917_v11  ;;  %5262 = vmatprep.subr.mxu1 %v7424_v46  ;;  %v7413_v11 = vld [vmem:[%s11537_s7 + $0x280] sm:$0xff] }
 0x53a   : > { %5263 = vmatpush1.msra.mxu1 %v7423_v51  ;;  %5389 = vmatprep.mubr.f32.mxu0 %v8327_v39 }
 0x53b   : > { %5264 = vmatprep.subr.mxu1 %v7422_v19 }
 0x53c   : > { %5265 = vmatpush1.msra.mxu1 %v7421_v9 }
 0x53d   : > { %7494 = vmatmul.mubr.msk.f32.gmra.mxu0 %vm2284_vm4, %v4920_v29  ;;  %5266 = vmatprep.subr.mxu1 %v7420_v41  ;;  %v7464_v29 = vld [vmem:[%s11537_s7 + $0x418] sm:$0xff] }
 0x53e   : > { %5267 = vmatpush1.msra.mxu1 %v7419_v16  ;;  %5476 = vmatprep.mubr.f32.mxu0 %v8327_v39 }
 0x53f   : > { %5268 = vmatprep.subr.mxu1 %v7418_v7 }
 0x540   : > { %5269 = vmatpush1.msra.mxu1 %v7417_v62 }
 0x541   : > { %5270 = vmatprep.subr.mxu1 %v7416_v30 }
 0x542   : > { %5271 = vmatpush1.msra.mxu1 %v7415_v59 }
 0x543   : > { %5272 = vmatprep.subr.mxu1 %v7414_v55 }
 0x544   : > { %5273 = vmatpush1.msra.mxu1 %v7413_v11 }
 0x545   : > { %5274 = vmatprep.subr.mxu1 %v7476_v13  ;;  %v5400_v13 = vld [vmem:[%s11538_s8] sm:$0x1f] }
 0x546   : > { %5275 = vmatpush2.msra.mxu1 %v7475_v48  ;;  %v7498_v48 = vld [vmem:[%s11538_s8 + $0x8] sm:$0x1f] }
 0x547   : > { %5276 = vmatprep.subr.mxu1 %v7474_v52  ;;  %v8251_v52 = vld [vmem:[%s11539_s9 + $0x88] sm:$0xff]  }
 0x548   : > { %5277 = vmatpush2.msra.mxu1 %v7473_v20  ;;  %v8252_v20 = vld [vmem:[%s11539_s9 + $0x38] sm:$0xff]  }
 0x549   : > { %5278 = vmatprep.subr.mxu1 %v7472_v24  ;;  %v8253_v24 = vld [vmem:[%s11539_s9 + $0x80] sm:$0xff]  }
 0x54a   : > { %5279 = vmatpush2.msra.mxu1 %v7471_v31  ;;  %v8254_v31 = vld [vmem:[%s11539_s9 + $0x30] sm:$0xff]  }
 0x54b   : > { %5280 = vmatprep.subr.mxu1 %v7470_v53  ;;  %v8255_v53 = vld [vmem:[%s11539_s9 + $0x78] sm:$0xff]  }
 0x54c   : > { %5281 = vmatpush2.msra.mxu1 %v7469_v54  ;;  %v8256_v54 = vld [vmem:[%s11539_s9 + $0x28] sm:$0xff]  }
 0x54d   : > { %5282 = vmatprep.subr.mxu1 %v7468_v3  ;;  %v8257_v3 = vld [vmem:[%s11539_s9 + $0x70] sm:$0xff]  }
 0x54e   : > { %5283 = vmatpush2.msra.mxu1 %v7467_v23  ;;  %v8258_v23 = vld [vmem:[%s11539_s9 + $0x20] sm:$0xff]  }
 0x54f   : > { %5284 = vmatprep.subr.mxu1 %v7466_v34  ;;  %v8259_v34 = vld [vmem:[%s11539_s9 + $0x68] sm:$0xff]  }
 0x550   : > { %5285 = vmatpush2.msra.mxu1 %v7465_v36  ;;  %v8260_v36 = vld [vmem:[%s11539_s9 + $0x18] sm:$0xff]  }
 0x551   : > { %5286 = vmatprep.subr.mxu1 %v7464_v29  ;;  %v8261_v29 = vld [vmem:[%s11539_s9 + $0x60] sm:$0xff]  }
 0x552   : > { %5287 = vmatpush2.msra.mxu1 %v7463_v0  ;;  %v8262_v0 = vld [vmem:[%s11539_s9 + $0x10] sm:$0xff]  }
 0x553   : > { %5288 = vmatprep.subr.mxu1 %v7462_v49  ;;  %v8263_v49 = vld [vmem:[%s11539_s9 + $0x58] sm:$0xff]  }
 0x554   : > { %5289 = vmatpush2.msra.mxu1 %v7461_v58  ;;  %v8264_v58 = vld [vmem:[%s11539_s9 + $0x8] sm:$0xff]  }
 0x555   : > { %5290 = vmatprep.subr.mxu1 %v7460_v60  ;;  %v8265_v60 = vld [vmem:[%s11539_s9 + $0x50] sm:$0xff]  }
 0x556   : > { %5291 = vmatpush2.msra.mxu1 %v7459_v42  ;;  %v8266_v42 = vld [vmem:[%s11539_s9] sm:$0xff]  }
 0x557   : > { %5292 = vmatprep.subr.mxu1 %v7458_v57  ;;  %v8267_v57 = vld [vmem:[%s11539_s9 + $0x98] sm:$0xff]  }
 0x558   : > { %5293 = vmatpush2.msra.mxu1 %v7457_v63  ;;  %v8268_v63 = vld [vmem:[%s11539_s9 + $0x48] sm:$0xff]  }
 0x559   : > { %5294 = vmatprep.subr.mxu1 %v7456_v43  ;;  %v8269_v43 = vld [vmem:[%s11539_s9 + $0x90] sm:$0xff]  }
 0x55a   : > { %5295 = vmatpush2.msra.mxu1 %v7455_v12  ;;  %v8270_v12 = vld [vmem:[%s11539_s9 + $0x40] sm:$0xff]  }
 0x55b   : > { %5296 = vmatprep.subr.mxu1 %v7454_v28 }
 0x55c   : > { %5297 = vmatpush2.msra.mxu1 %v7453_v1 }
 0x55d   : > { %5298 = vmatprep.subr.mxu1 %v7452_v33 }
 0x55e   : > { %5299 = vmatpush2.msra.mxu1 %v7451_v61 }
 0x55f   : > { %5300 = vmatprep.subr.mxu1 %v7450_v17 }
 0x560   : > { %5301 = vmatpush2.msra.mxu1 %v7449_v18 }
 0x561   : > { %5302 = vmatprep.subr.mxu1 %v7448_v4 }
 0x562   : > { %5303 = vmatpush2.msra.mxu1 %v7447_v2 }
 0x563   : > { %5304 = vmatprep.subr.mxu1 %v7446_v8 }
 0x564   : > { %5305 = vmatpush2.msra.mxu1 %v7445_v21 }
 0x565   : > { %5307 = vmatmul.mubr.f32.vlgmr.msra.gmra.mxu1 %v4915_v10 }
 0x566   : > { %5312 = vmatprep.mubr.f32.mxu1 %v4919_v5 }
 0x569   : > { %5313 = vmatmul.mubr.f32.gmra.mxu1 %v4918_v56 }
 0x56a   : > { %5552 = vmatprep.mubr.f32.mxu1 %v8327_v39 }
 0x5e3   : > { %v5150_v15 = vpop.f32.mrf.mxu1 }
 0x5e5   : > { %v5073_v25 = vpop.f32.mrf.mxu0  ;;  %v5152_v45 = vpop.f32.mrf.mxu1 }
 0x5e6   : > { %v5151_v30 = vadd.f32 %v5150_v15, %v5073_v25 }
 0x5e7   : > { %v5075_v14 = vpop.f32.mrf.mxu0 }
 0x5e8   : > { %v5156_v37 = vpop.f32.mrf.mxu1  ;;  %v5153_v7 = vadd.f32 %v5152_v45, %v5075_v14 }
 0x5ea   : > { %v5158_v40 = vpop.f32.mrf.mxu1 }
 0x5ec   : > { %v5079_v47 = vpop.f32.mrf.mxu0 }
 0x5ed   : > { %v5157_v41 = vadd.f32 %v5156_v37, %v5079_v47 }
 0x5ee   : > { %v5081_v32 = vpop.f32.mrf.mxu0 }
 0x5ef   : > { %v5159_v56 = vadd.f32 %v5158_v40, %v5081_v32 }
 0x5f9   : > { %v5385_v35 = vpop.f32.mrf.mxu0 }
 0x5fb   : > { %v5387_v50 = vpop.f32.mrf.mxu0 }
 0x5fd   : > { %v5391_v10 = vpop.f32.mrf.mxu0 }
 0x5ff   : > { %v5393_v5 = vpop.f32.mrf.mxu0 }
 0x625   : > { %v5308_v6 = vpop.f32.mrf.mxu1 }
 0x626   : > { %v5386_v16 = vadd.f32 %v5385_v35, %v5308_v6  ;;  %v8271_v6 = vld [vmem:[%s11539_s9 + $0xd8] sm:$0xff]  }
 0x627   : > { %v5310_v46 = vpop.f32.mrf.mxu1 }
 0x628   : > { %v5388_v19 = vadd.f32 %v5387_v50, %v5310_v46  ;;  %v5396_v11 = vmax.f32 %v5151_v30, %v5386_v16  ;;  %v8273_v46 = vld [vmem:[%s11539_s9 + $0xd0] sm:$0xff]   ;;  %v8280_v16 = vld [vmem:[%s11539_s9 + $0x108] sm:$0xff]  }
 0x629   : > { %v5314_v27 = vpop.f32.mrf.mxu1  ;;  %v8283_v30 = vld [vmem:[%s11539_s9 + $0xa8] sm:$0xff]  }
 0x62a   : > { %v5392_v51 = vadd.f32 %v5391_v10, %v5314_v27  ;;  %v5397_v55 = vmax.f32 %v5153_v7, %v5388_v19  ;;  %v8272_v10 = vld [vmem:[%s11539_s9 + $0x128] sm:$0xff]   ;;  %v8274_v27 = vld [vmem:[%s11539_s9 + $0x120] sm:$0xff]   ;;  %v8281_v7 = vld [vmem:[%s11539_s9 + $0xb0] sm:$0xff]  }
 0x62b   : > { %v5316_v44 = vpop.f32.mrf.mxu1  ;;  %v8277_v19 = vld [vmem:[%s11539_s9 + $0xc0] sm:$0xff]  }
 0x62c   : > { %v5394_v9 = vadd.f32 %v5393_v5, %v5316_v44  ;;  %v5398_v59 = vmax.f32 %v5157_v41, %v5392_v51  ;;  %v8275_v44 = vld [vmem:[%s11539_s9 + $0xc8] sm:$0xff]   ;;  %v8279_v41 = vld [vmem:[%s11539_s9 + $0xb8] sm:$0xff]  }
 0x62e   : > { %v5399_v62 = vmax.f32 %v5159_v56, %v5394_v9  ;;  %v8276_v56 = vld [vmem:[%s11539_s9 + $0x118] sm:$0xff]   ;;  %v8278_v9 = vld [vmem:[%s11539_s9 + $0x110] sm:$0xff]  }
 0x630   : > { %7495 = vmatprep.subr.msk.mxu0 %vm5405_vm9, %v5399_v62  ;;  %7499 = vmatprep.subr.msk.mxu1 %vm5405_vm9, %v5399_v62  ;;  %v8282_v62 = vld [vmem:[%s11539_s9 + $0x100] sm:$0xff]  }
 0x631   : > { %7496 = vmatpush1.msk.msra.mxu0 %vm5405_vm9, %v5398_v59  ;;  %7500 = vmatpush1.msk.msra.mxu1 %vm5405_vm9, %v5398_v59  ;;  %v8284_v59 = vld [vmem:[%s11539_s9 + $0xf8] sm:$0xff]  }
 0x632   : > { %5442 = vmatprep.subr.mxu0 %v5397_v55  ;;  %5518 = vmatprep.subr.mxu1 %v5397_v55  ;;  %v8285_v55 = vld [vmem:[%s11539_s9 + $0xa0] sm:$0xff]  }
 0x633   : > { %5443 = vmatpush1.msra.mxu0 %v5396_v11  ;;  %5519 = vmatpush1.msra.mxu1 %v5396_v11  ;;  %v8286_v11 = vld [vmem:[%s11539_s9 + $0xf0] sm:$0xff]  }
 0x634   : > { %7497 = vmatmul.mubr.msk.f32.vlgmr.msra.gmra.mxu0 %vm5401_vm10, %v5400_v13  ;;  %7501 = vmatmul.mubr.msk.f32.vlgmr.msra.gmra.mxu1 %vm5401_vm10, %v7498_v48  ;;  %v8287_v13 = vld [vmem:[%s11539_s9 + $0xe8] sm:$0xff]   ;;  %v8288_v48 = vld [vmem:[%s11539_s9 + $0x138] sm:$0xff]  }
 0x635   : > { %5698 = vmatprep.subr.bf16.mxu0 %v11581_v26  ;;  %5801 = vmatprep.subr.bf16.mxu1 %v11581_v26 }
 0x636   : > { %5699 = vmatpush1.bf16.msra.mxu0 %v8251_v52  ;;  %5802 = vmatpush1.bf16.msra.mxu1 %v8252_v20  ;;  %v8289_v20 = vld [vmem:[%s11539_s9 + $0xe0] sm:$0xff]  }
 0x637   : > { %5700 = vmatprep.subr.bf16.mxu0 %v11581_v26  ;;  %5803 = vmatprep.subr.bf16.mxu1 %v11581_v26 }
 0x63a   : > { %5701 = vmatpush1.bf16.msra.mxu0 %v8253_v24  ;;  %5804 = vmatpush1.bf16.msra.mxu1 %v8254_v31  ;;  %v8290_v24 = vld [vmem:[%s11539_s9 + $0x130] sm:$0xff]  }
 0x63b   : > { %5702 = vmatprep.subr.bf16.mxu0 %v11581_v26  ;;  %5805 = vmatprep.subr.bf16.mxu1 %v11581_v26 }
 0x63e   : > { %5703 = vmatpush1.bf16.msra.mxu0 %v8255_v53  ;;  %5806 = vmatpush1.bf16.msra.mxu1 %v8256_v54 }
 0x63f   : > { %5704 = vmatprep.subr.bf16.mxu0 %v11581_v26  ;;  %5807 = vmatprep.subr.bf16.mxu1 %v11581_v26 }
 0x642   : > { %5705 = vmatpush1.bf16.msra.mxu0 %v8257_v3  ;;  %5808 = vmatpush1.bf16.msra.mxu1 %v8258_v23  ;;  %v8291_v3 = vld [vmem:[%s11539_s9 + $0x178] sm:$0xff]  }
 0x643   : > { %5706 = vmatprep.subr.bf16.mxu0 %v11581_v26  ;;  %5809 = vmatprep.subr.bf16.mxu1 %v11581_v26 }
 0x646   : > { %5707 = vmatpush1.bf16.msra.mxu0 %v8259_v34  ;;  %5810 = vmatpush1.bf16.msra.mxu1 %v8260_v36 }
 0x647   : > { %5708 = vmatprep.subr.bf16.mxu0 %v11581_v26  ;;  %5811 = vmatprep.subr.bf16.mxu1 %v11581_v26 }
 0x64a   : > { %5709 = vmatpush1.bf16.msra.mxu0 %v8261_v29  ;;  %5812 = vmatpush1.bf16.msra.mxu1 %v8262_v0  ;;  %v8293_v29 = vld [vmem:[%s11539_s9 + $0x168] sm:$0xff]   ;;  %v8294_v0 = vld [vmem:[%s11539_s9 + $0x160] sm:$0xff]  }
 0x64b   : > { %5710 = vmatprep.subr.bf16.mxu0 %v11581_v26  ;;  %5813 = vmatprep.subr.bf16.mxu1 %v11581_v26 }
 0x64e   : > { %5711 = vmatpush1.bf16.msra.mxu0 %v8263_v49  ;;  %5814 = vmatpush1.bf16.msra.mxu1 %v8264_v58  ;;  %v8295_v49 = vld [vmem:[%s11539_s9 + $0x158] sm:$0xff]   ;;  %v8296_v58 = vld [vmem:[%s11539_s9 + $0x150] sm:$0xff]  }
 0x64f   : > { %5712 = vmatprep.subr.bf16.mxu0 %v11581_v26  ;;  %5815 = vmatprep.subr.bf16.mxu1 %v11581_v26 }
 0x652   : > { %5713 = vmatpush1.bf16.msra.mxu0 %v8265_v60  ;;  %5816 = vmatpush1.bf16.msra.mxu1 %v8266_v42  ;;  %v8297_v60 = vld [vmem:[%s11539_s9 + $0x148] sm:$0xff]   ;;  %v8298_v42 = vld [vmem:[%s11539_s9 + $0x140] sm:$0xff]  }
 0x653   : > { %5726 = vmatprep.subr.bf16.mxu0 %v11581_v26  ;;  %5829 = vmatprep.subr.bf16.mxu1 %v11581_v26 }
 0x656   : > { %5727 = vmatpush2.bf16.msra.mxu0 %v8267_v57  ;;  %5830 = vmatpush2.bf16.msra.mxu1 %v8268_v63  ;;  %v8299_v57 = vld [vmem:[%s11539_s9 + $0x188] sm:$0xff]   ;;  %v8300_v63 = vld [vmem:[%s11539_s9 + $0x180] sm:$0xff]  }
 0x657   : > { %5728 = vmatprep.subr.bf16.mxu0 %v11581_v26  ;;  %5831 = vmatprep.subr.bf16.mxu1 %v11581_v26 }
 0x65a   : > { %5729 = vmatpush2.bf16.msra.mxu0 %v8269_v43  ;;  %5832 = vmatpush2.bf16.msra.mxu1 %v8270_v12 }
 0x65b   : > { %5940 = vmatprep.subr.bf16.mxu0 %v11581_v26  ;;  %6080 = vmatprep.subr.bf16.mxu1 %v11581_v26 }
 0x6f4   : > { %v5478_v28 = vpop.f32.mrf.mxu0  ;;  %v5554_v1 = vpop.f32.mrf.mxu1 }
 0x6f5   : > { %v5559_v33 = vmax.f32 %v5478_v28, %v5554_v1  ;;  %v8301_v28 = vld [vmem:[%s11541_s11 + $0x38] sm:$0xff]   ;;  %v8302_v1 = vld [vmem:[%s11541_s11 + $0x30] sm:$0xff]  }
 0x6f6   : > { %v5480_v61 = vpop.f32.mrf.mxu0  ;;  %v5556_v17 = vpop.f32.mrf.mxu1 }
 0x6f7   : > { %5561 = vst [vmem:[#allocation3] sm:$0x1f] %v5559_v33  ;;  %v5560_v18 = vmax.f32 %v5480_v61, %v5556_v17  ;;  %v8304_v33 = vld [vmem:[%s11541_s11 + $0x20] sm:$0xff]   ;;  %v8305_v61 = vld [vmem:[%s11541_s11 + $0x18] sm:$0xff]   ;;  %v8306_v17 = vld [vmem:[%s11541_s11 + $0x10] sm:$0xff]  }
 0x6f9   : > { %5563 = vst.msk [vmem:[#allocation3 + $0x8] sm:$0x1f] %vm5562_vm11, %v5560_v18  ;;  %v8307_v18 = vld [vmem:[%s11541_s11 + $0x8] sm:$0xff]  }
 0x700   : > { %v5599_v4 = vld [vmem:[#allocation3 + $0x1] ss:$8 sm:$0x3]  ;;  %v5564_v2 = vld [vmem:[#allocation3] ss:$8 sm:$0x3] }
 0x701   : > { %v5608_v8 = vrot.slane %v5599_v4, %v11584_v38  ;;  %v5573_v21 = vrot.slane %v5564_v2, %v11584_v38  ;;  %v5604_v25 = vrot.slane %v5599_v4, %v11582_v22  ;;  %v5569_v14 = vrot.slane %v5564_v2, %v11582_v22  ;;  %v11308_v15 = vld [vmem:[#allocation3 + $0x2] ss:$8 sm:$0x3]  ;;  %v11310_v47 = vld [vmem:[#allocation3 + $0x3] ss:$8 sm:$0x3] }
 0x702   : > { %v5851_v45 = vrot.slane %v11308_v15, %v11584_v38  ;;  %v5991_v32 = vrot.slane %v11310_v47, %v11584_v38  ;;  %v6122_v52 = vld [vmem:[#allocation3 + $0x4] ss:$8 sm:$0x3]  ;;  %v5847_v31 = vrot.slane %v11308_v15, %v11582_v22  ;;  %v5987_v53 = vrot.slane %v11310_v47, %v11582_v22 }
 0x703   : > { %v5612_v37 = vpack.c.bf16 %v5608_v8, %v5608_v8  ;;  %v5577_v35 = vpack.c.bf16 %v5573_v21, %v5573_v21  ;;  %v5611_v40 = vpack.c.bf16 %v5604_v25, %v5604_v25  ;;  %v5576_v50 = vpack.c.bf16 %v5569_v14, %v5569_v14  ;;  %v8308_v4 = vld [vmem:[%s11541_s11] sm:$0xff]  }
 0x704   : > { %v5855_v5 = vpack.c.bf16 %v5851_v45, %v5851_v45  ;;  %v5995_v51 = vpack.c.bf16 %v5991_v32, %v5991_v32  ;;  %v6131_v54 = vrot.slane %v6122_v52, %v11584_v38  ;;  %v5854_v23 = vpack.c.bf16 %v5847_v31, %v5847_v31  ;;  %v8292_v38 = vld [vmem:[%s11539_s9 + $0x170] sm:$0xff]   ;;  %v6281_v31 = vld [vmem:[%s11542_s12] sm:$0x1] }
 0x705   : > { %7532 = vmatprep.mubr.msk.bf16.mxu0 %vm5694_vm12, %v5612_v37  ;;  %7543 = vmatprep.mubr.msk.bf16.mxu1 %vm5694_vm12, %v5577_v35  ;;  %v5994_v34 = vpack.c.bf16 %v5987_v53, %v5987_v53  ;;  %v6127_v43 = vrot.slane %v6122_v52, %v11582_v22  ;;  %v8314_v52 = vld [vmem:[%s11543_s13 + $0x10] sm:$0xff]  }
 0x706   : > { %5731 = vmatmul.mubr.bf16.vlgmr.msra.gmra.mxu0 %v5611_v40  ;;  %5834 = vmatmul.mubr.bf16.vlgmr.msra.gmra.mxu1 %v5576_v50  ;;  %v6135_v36 = vpack.c.bf16 %v6131_v54, %v6131_v54 }
 0x707   : > { %5941 = vmatpush1.bf16.msra.mxu0 %v8271_v6  ;;  %6081 = vmatpush1.bf16.msra.mxu1 %v8272_v10  ;;  %v6134_v12 = vpack.c.bf16 %v6127_v43, %v6127_v43 }
 0x708   : > { %5942 = vmatprep.subr.bf16.mxu0 %v11581_v26  ;;  %6082 = vmatprep.subr.bf16.mxu1 %v11581_v26 }
 0x709   : > { %7574 = vmatprep.mubr.msk.bf16.mxu0 %vm5694_vm12, %v5855_v5  ;;  %7605 = vmatprep.mubr.msk.bf16.mxu1 %vm5694_vm12, %v5995_v51 }
 0x70b   : > { %5943 = vmatpush1.bf16.msra.mxu0 %v8273_v46  ;;  %6083 = vmatpush1.bf16.msra.mxu1 %v8274_v27 }
 0x70c   : > { %5944 = vmatprep.subr.bf16.mxu0 %v11581_v26  ;;  %6084 = vmatprep.subr.bf16.mxu1 %v11581_v26 }
 0x70f   : > { %5945 = vmatpush1.bf16.msra.mxu0 %v8275_v44  ;;  %6085 = vmatpush1.bf16.msra.mxu1 %v8276_v56  ;;  %v6261_v56 = vld [vmem:[%s11540_s10] sm:$0x1] }
 0x710   : > { %5946 = vmatprep.subr.bf16.mxu0 %v11581_v26  ;;  %6086 = vmatprep.subr.bf16.mxu1 %v11581_v26 }
 0x713   : > { %5947 = vmatpush1.bf16.msra.mxu0 %v8277_v19  ;;  %6087 = vmatpush1.bf16.msra.mxu1 %v8278_v9 }
 0x714   : > { %5948 = vmatprep.subr.bf16.mxu0 %v11581_v26  ;;  %6088 = vmatprep.subr.bf16.mxu1 %v11581_v26 }
 0x717   : > { %5949 = vmatpush1.bf16.msra.mxu0 %v8279_v41  ;;  %6089 = vmatpush1.bf16.msra.mxu1 %v8280_v16 }
 0x718   : > { %5950 = vmatprep.subr.bf16.mxu0 %v11581_v26  ;;  %6090 = vmatprep.subr.bf16.mxu1 %v11581_v26 }
 0x71b   : > { %5951 = vmatpush1.bf16.msra.mxu0 %v8281_v7  ;;  %6091 = vmatpush1.bf16.msra.mxu1 %v8282_v62 }
 0x71c   : > { %5952 = vmatprep.subr.bf16.mxu0 %v11581_v26  ;;  %6092 = vmatprep.subr.bf16.mxu1 %v11581_v26 }
 0x71f   : > { %5953 = vmatpush1.bf16.msra.mxu0 %v8283_v30  ;;  %6093 = vmatpush1.bf16.msra.mxu1 %v8284_v59  ;;  %v8309_v30 = vld [vmem:[%s11543_s13 + $0x38] sm:$0xff]  }
 0x720   : > { %5954 = vmatprep.subr.bf16.mxu0 %v11581_v26  ;;  %6094 = vmatprep.subr.bf16.mxu1 %v11581_v26 }
 0x723   : > { %5955 = vmatpush1.bf16.msra.mxu0 %v8285_v55  ;;  %6095 = vmatpush1.bf16.msra.mxu1 %v8286_v11  ;;  %v8310_v55 = vld [vmem:[%s11543_s13 + $0x30] sm:$0xff]   ;;  %v8311_v11 = vld [vmem:[%s11543_s13 + $0x28] sm:$0xff]  }
 0x724   : > { %5968 = vmatprep.subr.bf16.mxu0 %v11581_v26  ;;  %6108 = vmatprep.subr.bf16.mxu1 %v11581_v26 }
 0x727   : > { %5969 = vmatpush2.bf16.msra.mxu0 %v8287_v13  ;;  %6109 = vmatpush2.bf16.msra.mxu1 %v8288_v48  ;;  %v8312_v13 = vld [vmem:[%s11543_s13 + $0x20] sm:$0xff]   ;;  %v8313_v48 = vld [vmem:[%s11543_s13 + $0x18] sm:$0xff]  }
 0x728   : > { %5970 = vmatprep.subr.bf16.mxu0 %v11581_v26  ;;  %6110 = vmatprep.subr.bf16.mxu1 %v11581_v26 }
 0x72b   : > { %5971 = vmatpush2.bf16.msra.mxu0 %v8289_v20  ;;  %6111 = vmatpush2.bf16.msra.mxu1 %v8290_v24  ;;  %v8315_v20 = vld [vmem:[%s11543_s13 + $0x8] sm:$0xff]   ;;  %v8316_v24 = vld [vmem:[%s11543_s13] sm:$0xff]  }
 0x72c   : > { %6220 = vmatprep.subr.bf16.mxu0 %v11581_v26  ;;  %7674 = vmatprep.subr.bf16.mxu1 %v8327_v39 }
 0x72e   : > { %5973 = vmatmul.mubr.bf16.vlgmr.msra.gmra.mxu0 %v5854_v23  ;;  %6113 = vmatmul.mubr.bf16.vlgmr.msra.gmra.mxu1 %v5994_v34 }
 0x72f   : > { %6221 = vmatpush1.bf16.msra.mxu0 %v8291_v3  ;;  %7636 = vmatprep.mubr.msk.bf16.mxu0 %vm5694_vm12, %v6135_v36 }
 0x730   : > { %6222 = vmatprep.subr.bf16.mxu0 %v11581_v26  ;;  %7675 = vmatpush3.bf16.msra.mxu1 %v8301_v28 }
 0x731   : > { %7676 = vmatprep.subr.bf16.mxu1 %v8327_v39  ;;  %7690 = vmatprep.mubr.msk.bf16.mxu1 %vm8328_vm13, %v8327_v39 }
 0x733   : > { %6223 = vmatpush1.bf16.msra.mxu0 %v8292_v38 }
 0x734   : > { %6224 = vmatprep.subr.bf16.mxu0 %v11581_v26  ;;  %7677 = vmatpush3.bf16.msra.mxu1 %v8302_v1 }
 0x735   : > { %7678 = vmatprep.subr.bf16.mxu1 %v8327_v39 }
 0x737   : > { %6225 = vmatpush1.bf16.msra.mxu0 %v8293_v29 }
 0x738   : > { %6226 = vmatprep.subr.bf16.mxu0 %v11581_v26 }
 0x73b   : > { %6227 = vmatpush1.bf16.msra.mxu0 %v8294_v0 }
 0x73c   : > { %6228 = vmatprep.subr.bf16.mxu0 %v11581_v26 }
 0x73f   : > { %6229 = vmatpush1.bf16.msra.mxu0 %v8295_v49 }
 0x740   : > { %6230 = vmatprep.subr.bf16.mxu0 %v11581_v26 }
 0x743   : > { %6231 = vmatpush1.bf16.msra.mxu0 %v8296_v58 }
 0x744   : > { %6232 = vmatprep.subr.bf16.mxu0 %v11581_v26 }
 0x747   : > { %6233 = vmatpush1.bf16.msra.mxu0 %v8297_v60 }
 0x748   : > { %6234 = vmatprep.subr.bf16.mxu0 %v11581_v26 }
 0x74b   : > { %6235 = vmatpush1.bf16.msra.mxu0 %v8298_v42 }
 0x74c   : > { %6248 = vmatprep.subr.bf16.mxu0 %v11581_v26 }
 0x74f   : > { %6249 = vmatpush2.bf16.msra.mxu0 %v8299_v57 }
 0x750   : > { %6250 = vmatprep.subr.bf16.mxu0 %v11581_v26  ;;  %v8303_v26 = vld [vmem:[%s11541_s11 + $0x28] sm:$0xff]  }
 0x751   : > { %7679 = vmatpush3.bf16.msra.mxu1 %v8303_v26 }
 0x752   : > { %7680 = vmatprep.subr.bf16.mxu1 %v8327_v39 }
 0x753   : > { %6251 = vmatpush2.bf16.msra.mxu0 %v8300_v63 }
 0x755   : > { %7681 = vmatpush3.bf16.msra.mxu1 %v8304_v33 }
 0x756   : > { %6253 = vmatmul.mubr.bf16.vlgmr.msra.gmra.mxu0 %v6134_v12  ;;  %7682 = vmatprep.subr.bf16.mxu1 %v8327_v39 }
 0x759   : > { %7683 = vmatpush3.bf16.msra.mxu1 %v8305_v61 }
 0x75a   : > { %7684 = vmatprep.subr.bf16.mxu1 %v8327_v39 }
 0x75d   : > { %7685 = vmatpush3.bf16.msra.mxu1 %v8306_v17 }
 0x75e   : > { %7686 = vmatprep.subr.bf16.mxu1 %v8327_v39 }
 0x761   : > { %7687 = vmatpush3.bf16.msra.mxu1 %v8307_v18 }
 0x762   : > { %7688 = vmatprep.subr.bf16.mxu1 %v8327_v39 }
 0x765   : > { %7689 = vmatpush3.bf16.msra.mxu1 %v8308_v4 }
 0x766   : > { %7694 = vmatprep.subr.bf16.mxu1 %v8327_v39 }
 0x7c6   : > { %v5732_v2 = vpop.f32.mrf.mxu0  ;;  %v5835_v8 = vpop.f32.mrf.mxu1 }
 0x7c7   : > { %v5836_v21 = vadd.f32 %v5835_v8, %v5732_v2 }
 0x7c8   : > { %v5734_v25 = vpop.f32.mrf.mxu0  ;;  %v5837_v14 = vpop.f32.mrf.mxu1 }
 0x7ca   : > { %v5735_v15 = vpop.f32.mrf.mxu0  ;;  %v5838_v47 = vpop.f32.mrf.mxu1 }
 0x7cc   : > { %v5736_v45 = vpop.f32.mrf.mxu0  ;;  %v5839_v32 = vpop.f32.mrf.mxu1 }
 0x7ee   : > { %v5974_v37 = vpop.f32.mrf.mxu0  ;;  %v6114_v35 = vpop.f32.mrf.mxu1 }
 0x7ef   : > { %v5980_v5 = vadd.f32 %v5974_v37, %v5836_v21 }
 0x7f0   : > { %v5976_v40 = vpop.f32.mrf.mxu0  ;;  %v6116_v50 = vpop.f32.mrf.mxu1 }
 0x7f1   : > { %v6120_v51 = vadd.f32 %v6114_v35, %v5980_v5 }
 0x7f2   : > { %v5977_v6 = vpop.f32.mrf.mxu0  ;;  %v6117_v10 = vpop.f32.mrf.mxu1 }
 0x7f4   : > { %v5978_v46 = vpop.f32.mrf.mxu0  ;;  %v6118_v27 = vpop.f32.mrf.mxu1 }
 0x816   : > { %v6254_v44 = vpop.f32.mrf.mxu0 }
 0x817   : > { %v6260_v19 = vadd.f32 %v6254_v44, %v6120_v51 }
 0x818   : > { %v6256_v9 = vpop.f32.mrf.mxu0 }
 0x819   : > { %v6262_v41 = vadd.f32 %v6261_v56, %v6260_v19 }
 0x81a   : > { %v6257_v16 = vpop.f32.mrf.mxu0 }
 0x81b   : > { %v6263_v7 = vmax.f32 %v6262_v41, 0.0 }
 0x81c   : > { %v6258_v62 = vpop.f32.mrf.mxu0 }
 0x81d   : > { %v6264_v59 = vpack.c.bf16 %v6263_v7, %v6263_v7 }
 0x81f   : > { %7691 = vmatmul.mubr.bf16.vlgmr.msra.gmra.mxu1 %v6264_v59 }
 0x820   : > { %7695 = vmatpush3.bf16.msra.mxu1 %v8309_v30  ;;  %7710 = vmatprep.mubr.msk.bf16.mxu1 %vm8328_vm13, %v8327_v39 }
 0x821   : > { %7696 = vmatprep.subr.bf16.mxu1 %v8327_v39 }
 0x824   : > { %7697 = vmatpush3.bf16.msra.mxu1 %v8310_v55 }
 0x825   : > { %7698 = vmatprep.subr.bf16.mxu1 %v8327_v39 }
 0x828   : > { %7699 = vmatpush3.bf16.msra.mxu1 %v8311_v11 }
 0x829   : > { %7700 = vmatprep.subr.bf16.mxu1 %v8327_v39 }
 0x82c   : > { %7701 = vmatpush3.bf16.msra.mxu1 %v8312_v13 }
 0x82d   : > { %7702 = vmatprep.subr.bf16.mxu1 %v8327_v39 }
 0x830   : > { %7703 = vmatpush3.bf16.msra.mxu1 %v8313_v48 }
 0x831   : > { %7704 = vmatprep.subr.bf16.mxu1 %v8327_v39 }
 0x834   : > { %7705 = vmatpush3.bf16.msra.mxu1 %v8314_v52 }
 0x835   : > { %7706 = vmatprep.subr.bf16.mxu1 %v8327_v39 }
 0x838   : > { %7707 = vmatpush3.bf16.msra.mxu1 %v8315_v20 }
 0x839   : > { %7708 = vmatprep.subr.bf16.mxu1 %v8327_v39  ;;  %v6388_v39 = vld [vmem:[%s11544_s14] sm:$0x1] }
 0x83c   : > { %7709 = vmatpush3.bf16.msra.mxu1 %v8316_v24 }
 0x8df   : > { %v6364_v53 = vpop.f32.mrf.mxu1 }
 0x8e0   : > { %v6365_v54 = vadd.f32 %v6364_v53, %v6281_v31 }
 0x8e1   : > { %v7692_v3 = vpop.f32.mrf.mxu1 }
 0x8e2   : > { %v6370_v23 = vmax.f32 %v6365_v54, 0.0 }
 0x8e3   : > { %v6367_v34 = vpop.f32.mrf.mxu1 }
 0x8e4   : > { %v6371_v36 = vpack.c.bf16 %v6370_v23, %v6370_v23 }
 0x8e5   : > { %v7693_v38 = vpop.f32.mrf.mxu1 }
 0x8e6   : > { %7711 = vmatmul.mubr.bf16.vlgmr.msra.gmra.mxu1 %v6371_v36 }
 0x9a6   : > { %v6471_v29 = vpop.f32.mrf.mxu1 }
 0x9a7   : > { %v6472_v0 = vadd.f32 %v6471_v29, %v6388_v39 }
 0x9a8   : > { %v7712_v49 = vpop.f32.mrf.mxu1 }
 0x9a9   : > { %v6480_v58 = vrot.slane %v6472_v0, %v11582_v22 }
 0x9aa   : > { %v6474_v60 = vpop.f32.mrf.mxu1 }
 0x9ab   : > { %6481 = vst [vmem:[%s492_s22] sm:$0xff] %v6480_v58 }
 0x9ac   : > { %v7713_v42 = vpop.f32.mrf.mxu1 }
 0x9ad PF: > { %s25_s18 = sadd.s32 1, %s8324_s18  }
 0x9ae   : > { %p22_p4 = scmp.ge.s32.totalorder %s25_s18, 4  }
 0x9b0   :  { %24 = sbr.rel (!%p22_p4) target bundleno = 1 (0x1), region = 130 }

</bundles_post_ra>
